<compile_context>
chip_gen: v5e
topology: v5e:2x2
jax: 0.10.0
libtpu: 0.0.40
codegen_flags: <defaults>
</compile_context>

<pallas_src>
import functools

import jax
import jax.numpy as jnp
from jax.experimental import pallas as pl
from jax.experimental.pallas import tpu as pltpu

NEG_INF = -1e30  # finite stand-in for float('-inf'); avoids inf-inf NaNs in online softmax


def _vmem_limit_bytes():
    # v5e/v6e: 128 MiB physical -> 96 MiB limit; v7x: 64 MiB physical -> 48 MiB limit.
    try:
        cap = pltpu.get_tpu_info().vmem_capacity_bytes
    except Exception:
        cap = 128 * 1024 * 1024
    return int(min(cap * 3 // 4, 96 * 1024 * 1024))


VMEM_LIMIT = _vmem_limit_bytes()


def _tile(n, target):
    """Largest t <= target with n % t == 0 and t % 8 == 0 (or t == n)."""
    if n <= target:
        return n
    t = (target // 8) * 8
    while t >= 8:
        if n % t == 0:
            return t
        t -= 8
    return n


def _lane_tile(n, target):
    """Largest t <= target with n % t == 0 and t % 128 == 0 (or t == n)."""
    if n <= target:
        return n
    t = (target // 128) * 128
    while t >= 128:
        if n % t == 0:
            return t
        t -= 128
    return n


# ----------------------------- Pallas kernels -----------------------------

def _kv_proj_kernel(x_ref, w_ref, b_ref, k_ref, v_ref):
    """Head-major K/V projection for one (batch, row-tile) grid step.

    x: (1, tm, E) f32; w: (2*nh, E, hd) bf16; b: (2*nh, 1, hd) f32;
    k/v out: (1, nh, tm, hd) bf16.  Each per-head matmul contracts over the full E
    (full-K MXU fill) and addresses its head on a leading axis -- no lane slicing.
    """
    num_heads = k_ref.shape[1]
    x = x_ref[0].astype(jnp.bfloat16)
    for h in range(num_heads):  # temporaries die at each output store -> bounded live ranges
        k_ref[0, h] = (jnp.dot(x, w_ref[h], preferred_element_type=jnp.float32)
                       + b_ref[h]).astype(k_ref.dtype)
        v_ref[0, h] = (jnp.dot(x, w_ref[num_heads + h], preferred_element_type=jnp.float32)
                       + b_ref[num_heads + h]).astype(v_ref.dtype)


def _flash_attn_kernel(resid_ref, wq_ref, bq_ref, k_ref, v_ref, wo_ref, bo_ref,
                       g_ref, beta_ref, o_ref,
                       q_scr, m_scr, l_scr, acc_scr, o_scr, *, causal, eps):
    """Flash attention + output projection + residual + LayerNorm.

    Grid: (batch, q-tile, kv-tile); the kv-tile axis is the ("arbitrary") reduction axis.
    """
    qi = pl.program_id(1)
    ki = pl.program_id(2)
    num_heads, tq, hd = q_scr.shape
    tk = k_ref.shape[2]

    @pl.when(ki == 0)
    def _init():
        m_scr[...] = jnp.full(m_scr.shape, NEG_INF, m_scr.dtype)
        l_scr[...] = jnp.zeros(l_scr.shape, l_scr.dtype)
        acc_scr[...] = jnp.zeros(acc_scr.shape, acc_scr.dtype)
        # Q projection for this q-tile (1/sqrt(hd) already folded into wq/bq).  Weights are
        # pre-laid-out (nh, E, hd): per-head full-K matmul, head indexed on the leading axis.
        x = resid_ref[0].astype(jnp.bfloat16)                      # (tq, E)
        for h in range(num_heads):
            q_scr[h] = (jnp.dot(x, wq_ref[h], preferred_element_type=jnp.float32)
                        + bq_ref[h]).astype(q_scr.dtype)

    def _step():
        q = q_scr[...]                                             # (nh, tq, hd) bf16
        s = jnp.einsum("hqd,hkd->hqk", q, k_ref[0],
                       preferred_element_type=jnp.float32)         # (nh, tq, tk) f32
        if causal:
            # mask as an in-loop predicate (no (Sq,Sk) f32 mask buffer)
            rows = qi * tq + jax.lax.broadcasted_iota(jnp.int32, (1, tq, tk), 1)
            cols = ki * tk + jax.lax.broadcasted_iota(jnp.int32, (1, tq, tk), 2)
            s = jnp.where(cols <= rows, s, NEG_INF)
        m_prev = m_scr[...]
        m_new = jnp.maximum(m_prev, jnp.max(s, axis=-1, keepdims=True))
        alpha = jnp.exp(m_prev - m_new)
        p = jnp.exp(s - m_new)
        l_scr[...] = alpha * l_scr[...] + jnp.sum(p, axis=-1, keepdims=True)
        acc_scr[...] = alpha * acc_scr[...] + jnp.einsum(
            "hqk,hkd->hqd", p.astype(jnp.bfloat16), v_ref[0],
            preferred_element_type=jnp.float32)
        m_scr[...] = m_new

    if causal:
        # skip kv tiles that lie entirely in the masked (future) region
        pl.when(qi * tq + tq > ki * tk)(_step)
    else:
        _step()

    @pl.when(ki == pl.num_programs(2) - 1)
    def _finalize():
        inv_l = pl.reciprocal(l_scr[...], approx=True)             # (nh, tq, 1), EUP slot
        for h in range(num_heads):                                 # concat heads in VMEM scratch
            o_scr[:, h * hd:(h + 1) * hd] = acc_scr[h] * inv_l[h]
        # single full-K output projection (instead of num_heads small-K matmuls)
        attn = jnp.dot(o_scr[...].astype(jnp.bfloat16), wo_ref[...],
                       preferred_element_type=jnp.float32) + bo_ref[...]
        y = resid_ref[0] + attn                                    # residual add
        mu = jnp.mean(y, axis=-1, keepdims=True)
        var = jnp.mean((y - mu) ** 2, axis=-1, keepdims=True)
        o_ref[0] = ((y - mu) * jax.lax.rsqrt(var + eps) * g_ref[...]
                    + beta_ref[...]).astype(o_ref.dtype)


def _ffn_block_kernel(y_ref, w1_ref, b1_ref, w2_ref, b2_ref, g_ref, beta_ref,
                      o_ref, acc_ref, *, eps):
    """Fused Linear -> ReLU -> Linear -> residual -> LayerNorm, dff blocked on axis 1."""
    j = pl.program_id(1)

    @pl.when(j == 0)
    def _init():
        acc_ref[...] = jnp.zeros(acc_ref.shape, acc_ref.dtype)

    y = y_ref[...]                                                 # (tm, E) f32
    h = jnp.dot(y.astype(jnp.bfloat16), w1_ref[...],
                preferred_element_type=jnp.float32) + b1_ref[...]  # (tm, tdff)
    h = jnp.maximum(h, 0.0)
    acc_ref[...] += jnp.dot(h.astype(jnp.bfloat16), w2_ref[...],
                            preferred_element_type=jnp.float32)

    @pl.when(j == pl.num_programs(1) - 1)
    def _finalize():
        z = y_ref[...] + acc_ref[...] + b2_ref[...]
        mu = jnp.mean(z, axis=-1, keepdims=True)
        var = jnp.mean((z - mu) ** 2, axis=-1, keepdims=True)
        o_ref[...] = ((z - mu) * jax.lax.rsqrt(var + eps) * g_ref[...]
                      + beta_ref[...]).astype(o_ref.dtype)


# ----------------------------- Pallas wrappers -----------------------------

def kv_projection(x, wkv_heads, bkv_heads, num_heads):
    """Row-tiled K/V projection producing head-major (B, nh, S, hd) bf16 tensors."""
    B, S, E = x.shape
    hd = E // num_heads
    H = 2 * num_heads
    tm = _tile(S, 512)
    cost = pl.CostEstimate(
        flops=int(4 * B * S * E * E), transcendentals=0,
        bytes_accessed=int(B * S * E * 4 + H * E * hd * 2 + 2 * B * S * E * 2))
    return pl.pallas_call(
        _kv_proj_kernel,
        out_shape=(jax.ShapeDtypeStruct((B, num_heads, S, hd), jnp.bfloat16),
                   jax.ShapeDtypeStruct((B, num_heads, S, hd), jnp.bfloat16)),
        grid=(B, S // tm),
        in_specs=[
            pl.BlockSpec((1, tm, E), lambda b, i: (b, i, 0)),
            pl.BlockSpec((H, E, hd), lambda b, i: (0, 0, 0),
                         pipeline_mode=pl.Buffered(1)),            # constant -> single-buffer
            pl.BlockSpec((H, 1, hd), lambda b, i: (0, 0, 0),
                         pipeline_mode=pl.Buffered(1)),
        ],
        out_specs=(pl.BlockSpec((1, num_heads, tm, hd), lambda b, i: (b, 0, i, 0)),
                   pl.BlockSpec((1, num_heads, tm, hd), lambda b, i: (b, 0, i, 0))),
        compiler_params=pltpu.CompilerParams(
            dimension_semantics=("parallel", "parallel"),
            vmem_limit_bytes=VMEM_LIMIT),
        cost_estimate=cost,
    )(x, wkv_heads, bkv_heads)


def flash_attention_block(resid, wq_heads, bq_heads, k, v, wo, bo, ln_g, ln_b,
                          *, causal, eps=1e-5):
    """Fused MHA(resid, kv) + residual(resid) + LayerNorm; flash-tiled over q and kv."""
    B, Sq, E = resid.shape
    _, num_heads, Sk, hd = k.shape
    tq = _tile(Sq, 256)
    tk = _tile(Sk, 512)
    n_q = Sq // tq
    cost = pl.CostEstimate(
        flops=int(4 * B * Sq * E * E + 4 * B * num_heads * Sq * Sk * hd),
        transcendentals=int(B * num_heads * Sq * Sk),
        bytes_accessed=int(2 * B * Sq * E * 4
                           + 2 * B * n_q * num_heads * Sk * hd * 2
                           + 2 * E * E * 2))
    kernel = functools.partial(_flash_attn_kernel, causal=causal, eps=eps)
    return pl.pallas_call(
        kernel,
        out_shape=jax.ShapeDtypeStruct((B, Sq, E), jnp.float32),
        grid=(B, n_q, Sk // tk),
        in_specs=[
            pl.BlockSpec((1, tq, E), lambda b, qi, ki: (b, qi, 0)),            # residual / q src
            pl.BlockSpec((num_heads, E, hd), lambda b, qi, ki: (0, 0, 0),
                         pipeline_mode=pl.Buffered(1)),                        # wq (per-head)
            pl.BlockSpec((num_heads, 1, hd), lambda b, qi, ki: (0, 0, 0),
                         pipeline_mode=pl.Buffered(1)),                        # bq
            pl.BlockSpec((1, num_heads, tk, hd), lambda b, qi, ki: (b, 0, ki, 0)),  # k
            pl.BlockSpec((1, num_heads, tk, hd), lambda b, qi, ki: (b, 0, ki, 0)),  # v
            pl.BlockSpec((E, E), lambda b, qi, ki: (0, 0),
                         pipeline_mode=pl.Buffered(1)),                        # wo
            pl.BlockSpec((1, E), lambda b, qi, ki: (0, 0),
                         pipeline_mode=pl.Buffered(1)),                        # bo
            pl.BlockSpec((1, E), lambda b, qi, ki: (0, 0),
                         pipeline_mode=pl.Buffered(1)),                        # ln gamma
            pl.BlockSpec((1, E), lambda b, qi, ki: (0, 0),
                         pipeline_mode=pl.Buffered(1)),                        # ln beta
        ],
        out_specs=pl.BlockSpec((1, tq, E), lambda b, qi, ki: (b, qi, 0)),
        scratch_shapes=[
            pltpu.VMEM((num_heads, tq, hd), jnp.bfloat16),   # projected q (head-major)
            pltpu.VMEM((num_heads, tq, 1), jnp.float32),     # running max
            pltpu.VMEM((num_heads, tq, 1), jnp.float32),     # running denominator
            pltpu.VMEM((num_heads, tq, hd), jnp.float32),    # running PV accumulator
            pltpu.VMEM((tq, E), jnp.float32),                # concatenated head outputs
        ],
        compiler_params=pltpu.CompilerParams(
            dimension_semantics=("parallel", "parallel", "arbitrary"),
            vmem_limit_bytes=VMEM_LIMIT),
        cost_estimate=cost,
    )(resid, wq_heads, bq_heads, k, v, wo, bo, ln_g, ln_b)


def ffn_block(y, w1, b1, w2, b2, ln_g, ln_b, eps=1e-5):
    """Fused FFN + residual + LayerNorm; rows parallel, dff as a reduction grid axis."""
    B, S, E = y.shape
    M = B * S
    dff = w1.shape[1]
    tm = _tile(M, 1024)
    tdff = _lane_tile(dff, 2048)
    kd = dff // tdff
    wmode = pl.Buffered(1) if kd == 1 else pl.Buffered(2)  # single-buffer only if constant-index
    cost = pl.CostEstimate(
        flops=int(4 * M * E * dff), transcendentals=0,
        bytes_accessed=int(2 * M * E * 4 + 2 * E * dff * 2))
    out = pl.pallas_call(
        functools.partial(_ffn_block_kernel, eps=eps),
        out_shape=jax.ShapeDtypeStruct((M, E), jnp.float32),
        grid=(M // tm, kd),
        in_specs=[
            pl.BlockSpec((tm, E), lambda i, j: (i, 0)),                       # rows
            pl.BlockSpec((E, tdff), lambda i, j: (0, j), pipeline_mode=wmode),  # w1 (dff cols)
            pl.BlockSpec((1, tdff), lambda i, j: (0, j), pipeline_mode=wmode),  # b1
            pl.BlockSpec((tdff, E), lambda i, j: (j, 0), pipeline_mode=wmode),  # w2 (dff rows)
            pl.BlockSpec((1, E), lambda i, j: (0, 0), pipeline_mode=pl.Buffered(1)),  # b2
            pl.BlockSpec((1, E), lambda i, j: (0, 0), pipeline_mode=pl.Buffered(1)),  # gamma
            pl.BlockSpec((1, E), lambda i, j: (0, 0), pipeline_mode=pl.Buffered(1)),  # beta
        ],
        out_specs=pl.BlockSpec((tm, E), lambda i, j: (i, 0)),
        scratch_shapes=[pltpu.VMEM((tm, E), jnp.float32)],
        compiler_params=pltpu.CompilerParams(
            dimension_semantics=("parallel", "arbitrary"),
            vmem_limit_bytes=VMEM_LIMIT),
        cost_estimate=cost,
    )(y.reshape(M, E), w1, b1, w2, b2, ln_g, ln_b)
    return out.reshape(B, S, E)


# ----------------------------- one-time parameter prep -----------------------------

def prepare_params(params, d_model, num_heads):
    """One-time host-side weight prep (bf16 casts, per-head layout, scale folding, reshapes).

    Hoisted out of the per-forward path so no weight-formatting XLA ops (or their HBM
    round-trips) run on every forward call.
    """
    E = d_model
    hd = E // num_heads
    scale = 1.0 / float(hd) ** 0.5

    def w_heads(w):   # (E, E) -> (nh, E, hd) bf16
        return jnp.transpose(w.reshape(E, num_heads, hd), (1, 0, 2)).astype(jnp.bfloat16)

    def b_heads(b):   # (E,) -> (nh, 1, hd) f32
        return b.reshape(num_heads, 1, hd).astype(jnp.float32)

    def attn(p):
        return dict(
            wq=w_heads(p["wq"] * scale),
            bq=b_heads(p["bq"] * scale),
            wkv=jnp.concatenate([w_heads(p["wk"]), w_heads(p["wv"])], axis=0),  # (2nh, E, hd)
            bkv=jnp.concatenate([b_heads(p["bk"]), b_heads(p["bv"])], axis=0),  # (2nh, 1, hd)
            wo=p["wo"].astype(jnp.bfloat16),
            bo=p["bo"].reshape(1, E).astype(jnp.float32),
        )

    return dict(
        self_attn=attn(params["mha"]),
        cross_attn=attn(params["cross"]),
        w1=params["w1"].astype(jnp.bfloat16),
        b1=params["b1"].reshape(1, -1).astype(jnp.float32),
        w2=params["w2"].astype(jnp.bfloat16),
        b2=params["b2"].reshape(1, E).astype(jnp.float32),
        ln1_g=params["ln1_g"].reshape(1, E), ln1_b=params["ln1_b"].reshape(1, E),
        ln2_g=params["ln2_g"].reshape(1, E), ln2_b=params["ln2_b"].reshape(1, E),
        ln3_g=params["ln3_g"].reshape(1, E), ln3_b=params["ln3_b"].reshape(1, E),
    )


# ----------------------------- module forward -----------------------------

def decoder_layer(x_enc, y, prep, num_heads):
    # 1) masked self-attention -> add & LN   (K/V projection + flash kernel)
    sa = prep["self_attn"]
    k, v = kv_projection(y, sa["wkv"], sa["bkv"], num_heads)
    y = flash_attention_block(y, sa["wq"], sa["bq"], k, v, sa["wo"], sa["bo"],
                              prep["ln1_g"], prep["ln1_b"], causal=True)
    # 2) cross-attention (q = decoder state, k/v = encoder output) -> add & LN
    ca = prep["cross_attn"]
    k, v = kv_projection(x_enc, ca["wkv"], ca["bkv"], num_heads)
    y = flash_attention_block(y, ca["wq"], ca["bq"], k, v, ca["wo"], ca["bo"],
                              prep["ln2_g"], prep["ln2_b"], causal=False)
    # 3) feed-forward -> add & LN            (one fused kernel)
    y = ffn_block(y, prep["w1"], prep["b1"], prep["w2"], prep["b2"],
                  prep["ln3_g"], prep["ln3_b"])
    return y


# ----------------------------- param init & pure-JAX reference -----------------------------

def init_params(key, d_model, num_heads, dff):
    ks = jax.random.split(key, 16)
    s = 0.05

    def attn_params(k0, k1, k2, k3):
        kq, kk, kv, ko = jax.random.split(k0, 4)
        return dict(
            wq=jax.random.normal(kq, (d_model, d_model), jnp.float32) * s,
            wk=jax.random.normal(kk, (d_model, d_model), jnp.float32) * s,
            wv=jax.random.normal(kv, (d_model, d_model), jnp.float32) * s,
            wo=jax.random.normal(ko, (d_model, d_model), jnp.float32) * s,
            bq=jax.random.normal(k1, (d_model,), jnp.float32) * s,
            bk=jax.random.normal(k2, (d_model,), jnp.float32) * s,
            bv=jax.random.normal(k3, (d_model,), jnp.float32) * s,
            bo=jnp.zeros((d_model,), jnp.float32),
        )

    return dict(
        mha=attn_params(ks[0], ks[1], ks[2], ks[3]),
        cross=attn_params(ks[4], ks[5], ks[6], ks[7]),
        w1=jax.random.normal(ks[8], (d_model, dff), jnp.float32) * s,
        b1=jax.random.normal(ks[9], (dff,), jnp.float32) * s,
        w2=jax.random.normal(ks[10], (dff, d_model), jnp.float32) * s,
        b2=jax.random.normal(ks[11], (d_model,), jnp.float32) * s,
        ln1_g=jnp.ones((d_model,), jnp.float32), ln1_b=jnp.zeros((d_model,), jnp.float32),
        ln2_g=jnp.ones((d_model,), jnp.float32), ln2_b=jnp.zeros((d_model,), jnp.float32),
        ln3_g=jnp.ones((d_model,), jnp.float32), ln3_b=jnp.zeros((d_model,), jnp.float32),
    )


def _ref_mha(q_in, kv_in, p, num_heads, mask):
    B, Sq, E = q_in.shape
    Sk = kv_in.shape[1]
    hd = E // num_heads
    q = (q_in @ p["wq"] + p["bq"]).reshape(B, Sq, num_heads, hd).transpose(0, 2, 1, 3)
    k = (kv_in @ p["wk"] + p["bk"]).reshape(B, Sk, num_heads, hd).transpose(0, 2, 1, 3)
    v = (kv_in @ p["wv"] + p["bv"]).reshape(B, Sk, num_heads, hd).transpose(0, 2, 1, 3)
    s = jnp.einsum("bhqd,bhkd->bhqk", q, k) / (hd ** 0.5) + mask
    a = jax.nn.softmax(s, axis=-1)
    o = jnp.einsum("bhqk,bhkd->bhqd", a, v).transpose(0, 2, 1, 3).reshape(B, Sq, E)
    return o @ p["wo"] + p["bo"]


def _ref_ln(x, g, b, eps=1e-5):
    mu = jnp.mean(x, axis=-1, keepdims=True)
    var = jnp.mean((x - mu) ** 2, axis=-1, keepdims=True)
    return (x - mu) * jax.lax.rsqrt(var + eps) * g + b


def decoder_layer_ref(x_enc, y, params, num_heads):
    S_dec = y.shape[1]
    causal = jnp.where(jnp.triu(jnp.ones((S_dec, S_dec), bool), k=1),
                       jnp.float32(NEG_INF), jnp.float32(0.0))
    y = _ref_ln(y + _ref_mha(y, y, params["mha"], num_heads, causal),
                params["ln1_g"], params["ln1_b"])
    y = _ref_ln(y + _ref_mha(y, x_enc, params["cross"], num_heads, 0.0),
                params["ln2_g"], params["ln2_b"])
    h = jnp.maximum(y @ params["w1"] + params["b1"], 0.0)
    ffn = h @ params["w2"] + params["b2"]
    return _ref_ln(y + ffn, params["ln3_g"], params["ln3_b"])


# ----------------------------- main -----------------------------

if __name__ == "__main__":
    d_model, num_heads, dff = 32, 4, 64
    B, S_enc, S_dec = 2, 16, 8

    key = jax.random.PRNGKey(0)
    k_p, k_x, k_y = jax.random.split(key, 3)
    params = init_params(k_p, d_model, num_heads, dff)
    x_enc = jax.random.normal(k_x, (B, S_enc, d_model), jnp.float32)
    y = jax.random.normal(k_y, (B, S_dec, d_model), jnp.float32)

    # one-time weight prep (hoisted out of the forward path)
    prep = prepare_params(params, d_model, num_heads)

    fwd = jax.jit(decoder_layer, static_argnums=(3,))
    out = jax.block_until_ready(fwd(x_enc, y, prep, num_heads))

    ref = decoder_layer_ref(x_enc, y, params, num_heads)
    assert out.shape == (B, S_dec, d_model)
    # bf16 weights / bf16 MXU operands inside the kernels vs. an all-f32 reference
    assert jnp.allclose(out, ref, atol=2e-2, rtol=2e-2), "mismatch vs pure-JAX reference"

    print("KERNEL_OK")
</pallas_src>

<mosaic_0001>
module attributes {stable_mosaic.version = 11 : i64} {
  func.func @_kv_proj_kernel(%arg0: i32, %arg1: i32, %arg2: memref<1x8x32xf32, #tpu.memory_space<vmem>>, %arg3: memref<8x32x8xbf16, #tpu.memory_space<vmem>>, %arg4: memref<8x1x8xf32, #tpu.memory_space<vmem>>, %arg5: memref<1x4x8x8xbf16, #tpu.memory_space<vmem>>, %arg6: memref<1x4x8x8xbf16, #tpu.memory_space<vmem>>) attributes {dimension_semantics = [#tpu.dimension_semantics<parallel>, #tpu.dimension_semantics<parallel>], iteration_bounds = array<i64: 2, 1>, scalar_prefetch = 0 : i64, scratch_operands = 0 : i64, tpu.core_type = #tpu.core_type<tc>, window_params = [{transform_indices = @transform_0, window_bounds = array<i64: 1, 8, 32>}, {pipeline_mode = #tpu.pipeline_mode<synchronous>, transform_indices = @transform_1, window_bounds = array<i64: 8, 32, 8>}, {pipeline_mode = #tpu.pipeline_mode<synchronous>, transform_indices = @transform_2, window_bounds = array<i64: 8, 1, 8>}, {transform_indices = @transform_3, window_bounds = array<i64: 1, 4, 8, 8>}, {transform_indices = @transform_4, window_bounds = array<i64: 1, 4, 8, 8>}]} {
    %c0 = arith.constant 0 : index
    %c0_0 = arith.constant 0 : index
    %c0_1 = arith.constant 0 : index
    %0 = vector.load %arg2[%c0, %c0_0, %c0_1] : memref<1x8x32xf32, #tpu.memory_space<vmem>>, vector<1x8x32xf32>
    %1 = vector.shape_cast %0 : vector<1x8x32xf32> to vector<8x32xf32>
    %2 = arith.truncf %1 : vector<8x32xf32> to vector<8x32xbf16>
    %c0_2 = arith.constant 0 : index
    %c0_3 = arith.constant 0 : index
    %c0_4 = arith.constant 0 : index
    %3 = vector.load %arg3[%c0_2, %c0_3, %c0_4] : memref<8x32x8xbf16, #tpu.memory_space<vmem>>, vector<1x32x8xbf16>
    %4 = vector.shape_cast %3 : vector<1x32x8xbf16> to vector<32x8xbf16>
    %cst = arith.constant dense<0.000000e+00> : vector<8x8xf32>
    %5 = tpu.matmul %2, %4, %cst {dimension_numbers = #tpu.dot_dimension_numbers<[1], [0], [0], [1], [0, 0, 1, 1], [], []>} : vector<8x32xbf16>, vector<32x8xbf16>, vector<8x8xf32> -> vector<8x8xf32>
    %c0_5 = arith.constant 0 : index
    %c0_6 = arith.constant 0 : index
    %c0_7 = arith.constant 0 : index
    %6 = vector.load %arg4[%c0_5, %c0_6, %c0_7] : memref<8x1x8xf32, #tpu.memory_space<vmem>>, vector<1x1x8xf32>
    %7 = vector.shape_cast %6 : vector<1x1x8xf32> to vector<1x8xf32>
    %8 = vector.broadcast %7 : vector<1x8xf32> to vector<8x8xf32>
    %9 = arith.addf %5, %8 : vector<8x8xf32>
    %10 = arith.truncf %9 : vector<8x8xf32> to vector<8x8xbf16>
    %c0_8 = arith.constant 0 : index
    %c0_9 = arith.constant 0 : index
    %c0_10 = arith.constant 0 : index
    %c0_11 = arith.constant 0 : index
    %11 = vector.load %arg5[%c0_8, %c0_9, %c0_10, %c0_11] : memref<1x4x8x8xbf16, #tpu.memory_space<vmem>>, vector<1x1x8x8xbf16>
    %12 = vector.shape_cast %11 : vector<1x1x8x8xbf16> to vector<8x8xbf16>
    %13 = vector.shape_cast %10 : vector<8x8xbf16> to vector<1x1x8x8xbf16>
    tpu.vector_store %arg5[%c0_8, %c0_9, %c0_10, %c0_11], %13 {strides = array<i32>} : memref<1x4x8x8xbf16, #tpu.memory_space<vmem>>, vector<1x1x8x8xbf16>,
    %c4 = arith.constant 4 : index
    %c0_12 = arith.constant 0 : index
    %c0_13 = arith.constant 0 : index
    %14 = vector.load %arg3[%c4, %c0_12, %c0_13] : memref<8x32x8xbf16, #tpu.memory_space<vmem>>, vector<1x32x8xbf16>
    %15 = vector.shape_cast %14 : vector<1x32x8xbf16> to vector<32x8xbf16>
    %cst_14 = arith.constant dense<0.000000e+00> : vector<8x8xf32>
    %16 = tpu.matmul %2, %15, %cst_14 {dimension_numbers = #tpu.dot_dimension_numbers<[1], [0], [0], [1], [0, 0, 1, 1], [], []>} : vector<8x32xbf16>, vector<32x8xbf16>, vector<8x8xf32> -> vector<8x8xf32>
    %c4_15 = arith.constant 4 : index
    %c0_16 = arith.constant 0 : index
    %c0_17 = arith.constant 0 : index
    %17 = vector.load %arg4[%c4_15, %c0_16, %c0_17] : memref<8x1x8xf32, #tpu.memory_space<vmem>>, vector<1x1x8xf32>
    %18 = vector.shape_cast %17 : vector<1x1x8xf32> to vector<1x8xf32>
    %19 = vector.broadcast %18 : vector<1x8xf32> to vector<8x8xf32>
    %20 = arith.addf %16, %19 : vector<8x8xf32>
    %21 = arith.truncf %20 : vector<8x8xf32> to vector<8x8xbf16>
    %c0_18 = arith.constant 0 : index
    %c0_19 = arith.constant 0 : index
    %c0_20 = arith.constant 0 : index
    %c0_21 = arith.constant 0 : index
    %22 = vector.load %arg6[%c0_18, %c0_19, %c0_20, %c0_21] : memref<1x4x8x8xbf16, #tpu.memory_space<vmem>>, vector<1x1x8x8xbf16>
    %23 = vector.shape_cast %22 : vector<1x1x8x8xbf16> to vector<8x8xbf16>
    %24 = vector.shape_cast %21 : vector<8x8xbf16> to vector<1x1x8x8xbf16>
    tpu.vector_store %arg6[%c0_18, %c0_19, %c0_20, %c0_21], %24 {strides = array<i32>} : memref<1x4x8x8xbf16, #tpu.memory_space<vmem>>, vector<1x1x8x8xbf16>,
    %c1 = arith.constant 1 : index
    %c0_22 = arith.constant 0 : index
    %c0_23 = arith.constant 0 : index
    %25 = vector.load %arg3[%c1, %c0_22, %c0_23] : memref<8x32x8xbf16, #tpu.memory_space<vmem>>, vector<1x32x8xbf16>
    %26 = vector.shape_cast %25 : vector<1x32x8xbf16> to vector<32x8xbf16>
    %cst_24 = arith.constant dense<0.000000e+00> : vector<8x8xf32>
    %27 = tpu.matmul %2, %26, %cst_24 {dimension_numbers = #tpu.dot_dimension_numbers<[1], [0], [0], [1], [0, 0, 1, 1], [], []>} : vector<8x32xbf16>, vector<32x8xbf16>, vector<8x8xf32> -> vector<8x8xf32>
    %c1_25 = arith.constant 1 : index
    %c0_26 = arith.constant 0 : index
    %c0_27 = arith.constant 0 : index
    %28 = vector.load %arg4[%c1_25, %c0_26, %c0_27] : memref<8x1x8xf32, #tpu.memory_space<vmem>>, vector<1x1x8xf32>
    %29 = vector.shape_cast %28 : vector<1x1x8xf32> to vector<1x8xf32>
    %30 = vector.broadcast %29 : vector<1x8xf32> to vector<8x8xf32>
    %31 = arith.addf %27, %30 : vector<8x8xf32>
    %32 = arith.truncf %31 : vector<8x8xf32> to vector<8x8xbf16>
    %c0_28 = arith.constant 0 : index
    %c1_29 = arith.constant 1 : index
    %c0_30 = arith.constant 0 : index
    %c0_31 = arith.constant 0 : index
    %33 = vector.load %arg5[%c0_28, %c1_29, %c0_30, %c0_31] : memref<1x4x8x8xbf16, #tpu.memory_space<vmem>>, vector<1x1x8x8xbf16>
    %34 = vector.shape_cast %33 : vector<1x1x8x8xbf16> to vector<8x8xbf16>
    %35 = vector.shape_cast %32 : vector<8x8xbf16> to vector<1x1x8x8xbf16>
    tpu.vector_store %arg5[%c0_28, %c1_29, %c0_30, %c0_31], %35 {strides = array<i32>} : memref<1x4x8x8xbf16, #tpu.memory_space<vmem>>, vector<1x1x8x8xbf16>,
    %c5 = arith.constant 5 : index
    %c0_32 = arith.constant 0 : index
    %c0_33 = arith.constant 0 : index
    %36 = vector.load %arg3[%c5, %c0_32, %c0_33] : memref<8x32x8xbf16, #tpu.memory_space<vmem>>, vector<1x32x8xbf16>
    %37 = vector.shape_cast %36 : vector<1x32x8xbf16> to vector<32x8xbf16>
    %cst_34 = arith.constant dense<0.000000e+00> : vector<8x8xf32>
    %38 = tpu.matmul %2, %37, %cst_34 {dimension_numbers = #tpu.dot_dimension_numbers<[1], [0], [0], [1], [0, 0, 1, 1], [], []>} : vector<8x32xbf16>, vector<32x8xbf16>, vector<8x8xf32> -> vector<8x8xf32>
    %c5_35 = arith.constant 5 : index
    %c0_36 = arith.constant 0 : index
    %c0_37 = arith.constant 0 : index
    %39 = vector.load %arg4[%c5_35, %c0_36, %c0_37] : memref<8x1x8xf32, #tpu.memory_space<vmem>>, vector<1x1x8xf32>
    %40 = vector.shape_cast %39 : vector<1x1x8xf32> to vector<1x8xf32>
    %41 = vector.broadcast %40 : vector<1x8xf32> to vector<8x8xf32>
    %42 = arith.addf %38, %41 : vector<8x8xf32>
    %43 = arith.truncf %42 : vector<8x8xf32> to vector<8x8xbf16>
    %c0_38 = arith.constant 0 : index
    %c1_39 = arith.constant 1 : index
    %c0_40 = arith.constant 0 : index
    %c0_41 = arith.constant 0 : index
    %44 = vector.load %arg6[%c0_38, %c1_39, %c0_40, %c0_41] : memref<1x4x8x8xbf16, #tpu.memory_space<vmem>>, vector<1x1x8x8xbf16>
    %45 = vector.shape_cast %44 : vector<1x1x8x8xbf16> to vector<8x8xbf16>
    %46 = vector.shape_cast %43 : vector<8x8xbf16> to vector<1x1x8x8xbf16>
    tpu.vector_store %arg6[%c0_38, %c1_39, %c0_40, %c0_41], %46 {strides = array<i32>} : memref<1x4x8x8xbf16, #tpu.memory_space<vmem>>, vector<1x1x8x8xbf16>,
    %c2 = arith.constant 2 : index
    %c0_42 = arith.constant 0 : index
    %c0_43 = arith.constant 0 : index
    %47 = vector.load %arg3[%c2, %c0_42, %c0_43] : memref<8x32x8xbf16, #tpu.memory_space<vmem>>, vector<1x32x8xbf16>
    %48 = vector.shape_cast %47 : vector<1x32x8xbf16> to vector<32x8xbf16>
    %cst_44 = arith.constant dense<0.000000e+00> : vector<8x8xf32>
    %49 = tpu.matmul %2, %48, %cst_44 {dimension_numbers = #tpu.dot_dimension_numbers<[1], [0], [0], [1], [0, 0, 1, 1], [], []>} : vector<8x32xbf16>, vector<32x8xbf16>, vector<8x8xf32> -> vector<8x8xf32>
    %c2_45 = arith.constant 2 : index
    %c0_46 = arith.constant 0 : index
    %c0_47 = arith.constant 0 : index
    %50 = vector.load %arg4[%c2_45, %c0_46, %c0_47] : memref<8x1x8xf32, #tpu.memory_space<vmem>>, vector<1x1x8xf32>
    %51 = vector.shape_cast %50 : vector<1x1x8xf32> to vector<1x8xf32>
    %52 = vector.broadcast %51 : vector<1x8xf32> to vector<8x8xf32>
    %53 = arith.addf %49, %52 : vector<8x8xf32>
    %54 = arith.truncf %53 : vector<8x8xf32> to vector<8x8xbf16>
    %c0_48 = arith.constant 0 : index
    %c2_49 = arith.constant 2 : index
    %c0_50 = arith.constant 0 : index
    %c0_51 = arith.constant 0 : index
    %55 = vector.load %arg5[%c0_48, %c2_49, %c0_50, %c0_51] : memref<1x4x8x8xbf16, #tpu.memory_space<vmem>>, vector<1x1x8x8xbf16>
    %56 = vector.shape_cast %55 : vector<1x1x8x8xbf16> to vector<8x8xbf16>
    %57 = vector.shape_cast %54 : vector<8x8xbf16> to vector<1x1x8x8xbf16>
    tpu.vector_store %arg5[%c0_48, %c2_49, %c0_50, %c0_51], %57 {strides = array<i32>} : memref<1x4x8x8xbf16, #tpu.memory_space<vmem>>, vector<1x1x8x8xbf16>,
    %c6 = arith.constant 6 : index
    %c0_52 = arith.constant 0 : index
    %c0_53 = arith.constant 0 : index
    %58 = vector.load %arg3[%c6, %c0_52, %c0_53] : memref<8x32x8xbf16, #tpu.memory_space<vmem>>, vector<1x32x8xbf16>
    %59 = vector.shape_cast %58 : vector<1x32x8xbf16> to vector<32x8xbf16>
    %cst_54 = arith.constant dense<0.000000e+00> : vector<8x8xf32>
    %60 = tpu.matmul %2, %59, %cst_54 {dimension_numbers = #tpu.dot_dimension_numbers<[1], [0], [0], [1], [0, 0, 1, 1], [], []>} : vector<8x32xbf16>, vector<32x8xbf16>, vector<8x8xf32> -> vector<8x8xf32>
    %c6_55 = arith.constant 6 : index
    %c0_56 = arith.constant 0 : index
    %c0_57 = arith.constant 0 : index
    %61 = vector.load %arg4[%c6_55, %c0_56, %c0_57] : memref<8x1x8xf32, #tpu.memory_space<vmem>>, vector<1x1x8xf32>
    %62 = vector.shape_cast %61 : vector<1x1x8xf32> to vector<1x8xf32>
    %63 = vector.broadcast %62 : vector<1x8xf32> to vector<8x8xf32>
    %64 = arith.addf %60, %63 : vector<8x8xf32>
    %65 = arith.truncf %64 : vector<8x8xf32> to vector<8x8xbf16>
    %c0_58 = arith.constant 0 : index
    %c2_59 = arith.constant 2 : index
    %c0_60 = arith.constant 0 : index
    %c0_61 = arith.constant 0 : index
    %66 = vector.load %arg6[%c0_58, %c2_59, %c0_60, %c0_61] : memref<1x4x8x8xbf16, #tpu.memory_space<vmem>>, vector<1x1x8x8xbf16>
    %67 = vector.shape_cast %66 : vector<1x1x8x8xbf16> to vector<8x8xbf16>
    %68 = vector.shape_cast %65 : vector<8x8xbf16> to vector<1x1x8x8xbf16>
    tpu.vector_store %arg6[%c0_58, %c2_59, %c0_60, %c0_61], %68 {strides = array<i32>} : memref<1x4x8x8xbf16, #tpu.memory_space<vmem>>, vector<1x1x8x8xbf16>,
    %c3 = arith.constant 3 : index
    %c0_62 = arith.constant 0 : index
    %c0_63 = arith.constant 0 : index
    %69 = vector.load %arg3[%c3, %c0_62, %c0_63] : memref<8x32x8xbf16, #tpu.memory_space<vmem>>, vector<1x32x8xbf16>
    %70 = vector.shape_cast %69 : vector<1x32x8xbf16> to vector<32x8xbf16>
    %cst_64 = arith.constant dense<0.000000e+00> : vector<8x8xf32>
    %71 = tpu.matmul %2, %70, %cst_64 {dimension_numbers = #tpu.dot_dimension_numbers<[1], [0], [0], [1], [0, 0, 1, 1], [], []>} : vector<8x32xbf16>, vector<32x8xbf16>, vector<8x8xf32> -> vector<8x8xf32>
    %c3_65 = arith.constant 3 : index
    %c0_66 = arith.constant 0 : index
    %c0_67 = arith.constant 0 : index
    %72 = vector.load %arg4[%c3_65, %c0_66, %c0_67] : memref<8x1x8xf32, #tpu.memory_space<vmem>>, vector<1x1x8xf32>
    %73 = vector.shape_cast %72 : vector<1x1x8xf32> to vector<1x8xf32>
    %74 = vector.broadcast %73 : vector<1x8xf32> to vector<8x8xf32>
    %75 = arith.addf %71, %74 : vector<8x8xf32>
    %76 = arith.truncf %75 : vector<8x8xf32> to vector<8x8xbf16>
    %c0_68 = arith.constant 0 : index
    %c3_69 = arith.constant 3 : index
    %c0_70 = arith.constant 0 : index
    %c0_71 = arith.constant 0 : index
    %77 = vector.load %arg5[%c0_68, %c3_69, %c0_70, %c0_71] : memref<1x4x8x8xbf16, #tpu.memory_space<vmem>>, vector<1x1x8x8xbf16>
    %78 = vector.shape_cast %77 : vector<1x1x8x8xbf16> to vector<8x8xbf16>
    %79 = vector.shape_cast %76 : vector<8x8xbf16> to vector<1x1x8x8xbf16>
    tpu.vector_store %arg5[%c0_68, %c3_69, %c0_70, %c0_71], %79 {strides = array<i32>} : memref<1x4x8x8xbf16, #tpu.memory_space<vmem>>, vector<1x1x8x8xbf16>,
    %c7 = arith.constant 7 : index
    %c0_72 = arith.constant 0 : index
    %c0_73 = arith.constant 0 : index
    %80 = vector.load %arg3[%c7, %c0_72, %c0_73] : memref<8x32x8xbf16, #tpu.memory_space<vmem>>, vector<1x32x8xbf16>
    %81 = vector.shape_cast %80 : vector<1x32x8xbf16> to vector<32x8xbf16>
    %cst_74 = arith.constant dense<0.000000e+00> : vector<8x8xf32>
    %82 = tpu.matmul %2, %81, %cst_74 {dimension_numbers = #tpu.dot_dimension_numbers<[1], [0], [0], [1], [0, 0, 1, 1], [], []>} : vector<8x32xbf16>, vector<32x8xbf16>, vector<8x8xf32> -> vector<8x8xf32>
    %c7_75 = arith.constant 7 : index
    %c0_76 = arith.constant 0 : index
    %c0_77 = arith.constant 0 : index
    %83 = vector.load %arg4[%c7_75, %c0_76, %c0_77] : memref<8x1x8xf32, #tpu.memory_space<vmem>>, vector<1x1x8xf32>
    %84 = vector.shape_cast %83 : vector<1x1x8xf32> to vector<1x8xf32>
    %85 = vector.broadcast %84 : vector<1x8xf32> to vector<8x8xf32>
    %86 = arith.addf %82, %85 : vector<8x8xf32>
    %87 = arith.truncf %86 : vector<8x8xf32> to vector<8x8xbf16>
    %c0_78 = arith.constant 0 : index
    %c3_79 = arith.constant 3 : index
    %c0_80 = arith.constant 0 : index
    %c0_81 = arith.constant 0 : index
    %88 = vector.load %arg6[%c0_78, %c3_79, %c0_80, %c0_81] : memref<1x4x8x8xbf16, #tpu.memory_space<vmem>>, vector<1x1x8x8xbf16>
    %89 = vector.shape_cast %88 : vector<1x1x8x8xbf16> to vector<8x8xbf16>
    %90 = vector.shape_cast %87 : vector<8x8xbf16> to vector<1x1x8x8xbf16>
    tpu.vector_store %arg6[%c0_78, %c3_79, %c0_80, %c0_81], %90 {strides = array<i32>} : memref<1x4x8x8xbf16, #tpu.memory_space<vmem>>, vector<1x1x8x8xbf16>,
    return
  }
  func.func @transform_0(%arg0: i32, %arg1: i32) -> (i32, i32, i32) {
    %c0_i32 = arith.constant 0 : i32
    %c0_i32_0 = arith.constant 0 : i32
    return %arg0, %arg1, %c0_i32 : i32, i32, i32
  }
  func.func @transform_1(%arg0: i32, %arg1: i32) -> (i32, i32, i32) {
    %c0_i32 = arith.constant 0 : i32
    %c0_i32_0 = arith.constant 0 : i32
    %c0_i32_1 = arith.constant 0 : i32
    %c0_i32_2 = arith.constant 0 : i32
    return %c0_i32, %c0_i32_0, %c0_i32_1 : i32, i32, i32
  }
  func.func @transform_2(%arg0: i32, %arg1: i32) -> (i32, i32, i32) {
    %c0_i32 = arith.constant 0 : i32
    %c0_i32_0 = arith.constant 0 : i32
    %c0_i32_1 = arith.constant 0 : i32
    %c0_i32_2 = arith.constant 0 : i32
    return %c0_i32, %c0_i32_0, %c0_i32_1 : i32, i32, i32
  }
  func.func @transform_3(%arg0: i32, %arg1: i32) -> (i32, i32, i32, i32) {
    %c0_i32 = arith.constant 0 : i32
    %c0_i32_0 = arith.constant 0 : i32
    %c0_i32_1 = arith.constant 0 : i32
    return %arg0, %c0_i32, %arg1, %c0_i32_0 : i32, i32, i32, i32
  }
  func.func @transform_4(%arg0: i32, %arg1: i32) -> (i32, i32, i32, i32) {
    %c0_i32 = arith.constant 0 : i32
    %c0_i32_0 = arith.constant 0 : i32
    %c0_i32_1 = arith.constant 0 : i32
    return %arg0, %c0_i32, %arg1, %c0_i32_0 : i32, i32, i32, i32
  }
}

module attributes {stable_mosaic.version = 11 : i64} {
  func.func @_flash_attn_kernel(%arg0: i32, %arg1: i32, %arg2: i32, %arg3: memref<1x8x32xf32, #tpu.memory_space<vmem>>, %arg4: memref<4x32x8xbf16, #tpu.memory_space<vmem>>, %arg5: memref<4x1x8xf32, #tpu.memory_space<vmem>>, %arg6: memref<1x4x8x8xbf16, #tpu.memory_space<vmem>>, %arg7: memref<1x4x8x8xbf16, #tpu.memory_space<vmem>>, %arg8: memref<32x32xbf16, #tpu.memory_space<vmem>>, %arg9: memref<1x32xf32, #tpu.memory_space<vmem>>, %arg10: memref<1x32xf32, #tpu.memory_space<vmem>>, %arg11: memref<1x32xf32, #tpu.memory_space<vmem>>, %arg12: memref<1x8x32xf32, #tpu.memory_space<vmem>>, %arg13: memref<4x8x8xbf16, #tpu.memory_space<vmem>>, %arg14: memref<4x8x1xf32, #tpu.memory_space<vmem>>, %arg15: memref<4x8x1xf32, #tpu.memory_space<vmem>>, %arg16: memref<4x8x8xf32, #tpu.memory_space<vmem>>, %arg17: memref<8x32xf32, #tpu.memory_space<vmem>>) attributes {dimension_semantics = [#tpu.dimension_semantics<parallel>, #tpu.dimension_semantics<parallel>, #tpu.dimension_semantics<arbitrary>], iteration_bounds = array<i64: 2, 1, 1>, scalar_prefetch = 0 : i64, scratch_operands = 5 : i64, tpu.core_type = #tpu.core_type<tc>, window_params = [{transform_indices = @transform_0, window_bounds = array<i64: 1, 8, 32>}, {pipeline_mode = #tpu.pipeline_mode<synchronous>, transform_indices = @transform_1, window_bounds = array<i64: 4, 32, 8>}, {pipeline_mode = #tpu.pipeline_mode<synchronous>, transform_indices = @transform_2, window_bounds = array<i64: 4, 1, 8>}, {transform_indices = @transform_3, window_bounds = array<i64: 1, 4, 8, 8>}, {transform_indices = @transform_4, window_bounds = array<i64: 1, 4, 8, 8>}, {pipeline_mode = #tpu.pipeline_mode<synchronous>, transform_indices = @transform_5, window_bounds = array<i64: 32, 32>}, {pipeline_mode = #tpu.pipeline_mode<synchronous>, transform_indices = @transform_6, window_bounds = array<i64: 1, 32>}, {pipeline_mode = #tpu.pipeline_mode<synchronous>, transform_indices = @transform_7, window_bounds = array<i64: 1, 32>}, {pipeline_mode = #tpu.pipeline_mode<synchronous>, transform_indices = @transform_8, window_bounds = array<i64: 1, 32>}, {transform_indices = @transform_9, window_bounds = array<i64: 1, 8, 32>}]} {
    %c0_i32 = arith.constant 0 : i32
    %0 = arith.cmpi eq, %arg2, %c0_i32 : i32
    %1 = arith.extui %0 : i1 to i32
    %c0_i32_0 = arith.constant 0 : i32
    %2 = arith.cmpi ne, %1, %c0_i32_0 : i32
    scf.if %2 {
      %cst = arith.constant -1.000000e+30 : f32
      %12 = vector.broadcast %cst : f32 to vector<4x8x1xf32>
      %c0 = arith.constant 0 : index
      %c0_6 = arith.constant 0 : index
      %c0_7 = arith.constant 0 : index
      %13 = vector.load %arg14[%c0, %c0_6, %c0_7] : memref<4x8x1xf32, #tpu.memory_space<vmem>>, vector<4x8x1xf32>
      tpu.vector_store %arg14[%c0, %c0_6, %c0_7], %12 {strides = array<i32>} : memref<4x8x1xf32, #tpu.memory_space<vmem>>, vector<4x8x1xf32>,
      %cst_8 = arith.constant 0.000000e+00 : f32
      %14 = vector.broadcast %cst_8 : f32 to vector<4x8x1xf32>
      %c0_9 = arith.constant 0 : index
      %c0_10 = arith.constant 0 : index
      %c0_11 = arith.constant 0 : index
      %15 = vector.load %arg15[%c0_9, %c0_10, %c0_11] : memref<4x8x1xf32, #tpu.memory_space<vmem>>, vector<4x8x1xf32>
      tpu.vector_store %arg15[%c0_9, %c0_10, %c0_11], %14 {strides = array<i32>} : memref<4x8x1xf32, #tpu.memory_space<vmem>>, vector<4x8x1xf32>,
      %cst_12 = arith.constant 0.000000e+00 : f32
      %16 = vector.broadcast %cst_12 : f32 to vector<4x8x8xf32>
      %c0_13 = arith.constant 0 : index
      %c0_14 = arith.constant 0 : index
      %c0_15 = arith.constant 0 : index
      %17 = vector.load %arg16[%c0_13, %c0_14, %c0_15] : memref<4x8x8xf32, #tpu.memory_space<vmem>>, vector<4x8x8xf32>
      tpu.vector_store %arg16[%c0_13, %c0_14, %c0_15], %16 {strides = array<i32>} : memref<4x8x8xf32, #tpu.memory_space<vmem>>, vector<4x8x8xf32>,
      %c0_16 = arith.constant 0 : index
      %c0_17 = arith.constant 0 : index
      %c0_18 = arith.constant 0 : index
      %18 = vector.load %arg3[%c0_16, %c0_17, %c0_18] : memref<1x8x32xf32, #tpu.memory_space<vmem>>, vector<1x8x32xf32>
      %19 = vector.shape_cast %18 : vector<1x8x32xf32> to vector<8x32xf32>
      %20 = arith.truncf %19 : vector<8x32xf32> to vector<8x32xbf16>
      %c0_19 = arith.constant 0 : index
      %c0_20 = arith.constant 0 : index
      %c0_21 = arith.constant 0 : index
      %21 = vector.load %arg4[%c0_19, %c0_20, %c0_21] : memref<4x32x8xbf16, #tpu.memory_space<vmem>>, vector<1x32x8xbf16>
      %22 = vector.shape_cast %21 : vector<1x32x8xbf16> to vector<32x8xbf16>
      %cst_22 = arith.constant dense<0.000000e+00> : vector<8x8xf32>
      %23 = tpu.matmul %20, %22, %cst_22 {dimension_numbers = #tpu.dot_dimension_numbers<[1], [0], [0], [1], [0, 0, 1, 1], [], []>} : vector<8x32xbf16>, vector<32x8xbf16>, vector<8x8xf32> -> vector<8x8xf32>
      %c0_23 = arith.constant 0 : index
      %c0_24 = arith.constant 0 : index
      %c0_25 = arith.constant 0 : index
      %24 = vector.load %arg5[%c0_23, %c0_24, %c0_25] : memref<4x1x8xf32, #tpu.memory_space<vmem>>, vector<1x1x8xf32>
      %25 = vector.shape_cast %24 : vector<1x1x8xf32> to vector<1x8xf32>
      %26 = vector.broadcast %25 : vector<1x8xf32> to vector<8x8xf32>
      %27 = arith.addf %23, %26 : vector<8x8xf32>
      %28 = arith.truncf %27 : vector<8x8xf32> to vector<8x8xbf16>
      %c0_26 = arith.constant 0 : index
      %c0_27 = arith.constant 0 : index
      %c0_28 = arith.constant 0 : index
      %29 = vector.load %arg13[%c0_26, %c0_27, %c0_28] : memref<4x8x8xbf16, #tpu.memory_space<vmem>>, vector<1x8x8xbf16>
      %30 = vector.shape_cast %29 : vector<1x8x8xbf16> to vector<8x8xbf16>
      %31 = vector.shape_cast %28 : vector<8x8xbf16> to vector<1x8x8xbf16>
      tpu.vector_store %arg13[%c0_26, %c0_27, %c0_28], %31 {strides = array<i32>} : memref<4x8x8xbf16, #tpu.memory_space<vmem>>, vector<1x8x8xbf16>,
      %c1 = arith.constant 1 : index
      %c0_29 = arith.constant 0 : index
      %c0_30 = arith.constant 0 : index
      %32 = vector.load %arg4[%c1, %c0_29, %c0_30] : memref<4x32x8xbf16, #tpu.memory_space<vmem>>, vector<1x32x8xbf16>
      %33 = vector.shape_cast %32 : vector<1x32x8xbf16> to vector<32x8xbf16>
      %cst_31 = arith.constant dense<0.000000e+00> : vector<8x8xf32>
      %34 = tpu.matmul %20, %33, %cst_31 {dimension_numbers = #tpu.dot_dimension_numbers<[1], [0], [0], [1], [0, 0, 1, 1], [], []>} : vector<8x32xbf16>, vector<32x8xbf16>, vector<8x8xf32> -> vector<8x8xf32>
      %c1_32 = arith.constant 1 : index
      %c0_33 = arith.constant 0 : index
      %c0_34 = arith.constant 0 : index
      %35 = vector.load %arg5[%c1_32, %c0_33, %c0_34] : memref<4x1x8xf32, #tpu.memory_space<vmem>>, vector<1x1x8xf32>
      %36 = vector.shape_cast %35 : vector<1x1x8xf32> to vector<1x8xf32>
      %37 = vector.broadcast %36 : vector<1x8xf32> to vector<8x8xf32>
      %38 = arith.addf %34, %37 : vector<8x8xf32>
      %39 = arith.truncf %38 : vector<8x8xf32> to vector<8x8xbf16>
      %c1_35 = arith.constant 1 : index
      %c0_36 = arith.constant 0 : index
      %c0_37 = arith.constant 0 : index
      %40 = vector.load %arg13[%c1_35, %c0_36, %c0_37] : memref<4x8x8xbf16, #tpu.memory_space<vmem>>, vector<1x8x8xbf16>
      %41 = vector.shape_cast %40 : vector<1x8x8xbf16> to vector<8x8xbf16>
      %42 = vector.shape_cast %39 : vector<8x8xbf16> to vector<1x8x8xbf16>
      tpu.vector_store %arg13[%c1_35, %c0_36, %c0_37], %42 {strides = array<i32>} : memref<4x8x8xbf16, #tpu.memory_space<vmem>>, vector<1x8x8xbf16>,
      %c2 = arith.constant 2 : index
      %c0_38 = arith.constant 0 : index
      %c0_39 = arith.constant 0 : index
      %43 = vector.load %arg4[%c2, %c0_38, %c0_39] : memref<4x32x8xbf16, #tpu.memory_space<vmem>>, vector<1x32x8xbf16>
      %44 = vector.shape_cast %43 : vector<1x32x8xbf16> to vector<32x8xbf16>
      %cst_40 = arith.constant dense<0.000000e+00> : vector<8x8xf32>
      %45 = tpu.matmul %20, %44, %cst_40 {dimension_numbers = #tpu.dot_dimension_numbers<[1], [0], [0], [1], [0, 0, 1, 1], [], []>} : vector<8x32xbf16>, vector<32x8xbf16>, vector<8x8xf32> -> vector<8x8xf32>
      %c2_41 = arith.constant 2 : index
      %c0_42 = arith.constant 0 : index
      %c0_43 = arith.constant 0 : index
      %46 = vector.load %arg5[%c2_41, %c0_42, %c0_43] : memref<4x1x8xf32, #tpu.memory_space<vmem>>, vector<1x1x8xf32>
      %47 = vector.shape_cast %46 : vector<1x1x8xf32> to vector<1x8xf32>
      %48 = vector.broadcast %47 : vector<1x8xf32> to vector<8x8xf32>
      %49 = arith.addf %45, %48 : vector<8x8xf32>
      %50 = arith.truncf %49 : vector<8x8xf32> to vector<8x8xbf16>
      %c2_44 = arith.constant 2 : index
      %c0_45 = arith.constant 0 : index
      %c0_46 = arith.constant 0 : index
      %51 = vector.load %arg13[%c2_44, %c0_45, %c0_46] : memref<4x8x8xbf16, #tpu.memory_space<vmem>>, vector<1x8x8xbf16>
      %52 = vector.shape_cast %51 : vector<1x8x8xbf16> to vector<8x8xbf16>
      %53 = vector.shape_cast %50 : vector<8x8xbf16> to vector<1x8x8xbf16>
      tpu.vector_store %arg13[%c2_44, %c0_45, %c0_46], %53 {strides = array<i32>} : memref<4x8x8xbf16, #tpu.memory_space<vmem>>, vector<1x8x8xbf16>,
      %c3 = arith.constant 3 : index
      %c0_47 = arith.constant 0 : index
      %c0_48 = arith.constant 0 : index
      %54 = vector.load %arg4[%c3, %c0_47, %c0_48] : memref<4x32x8xbf16, #tpu.memory_space<vmem>>, vector<1x32x8xbf16>
      %55 = vector.shape_cast %54 : vector<1x32x8xbf16> to vector<32x8xbf16>
      %cst_49 = arith.constant dense<0.000000e+00> : vector<8x8xf32>
      %56 = tpu.matmul %20, %55, %cst_49 {dimension_numbers = #tpu.dot_dimension_numbers<[1], [0], [0], [1], [0, 0, 1, 1], [], []>} : vector<8x32xbf16>, vector<32x8xbf16>, vector<8x8xf32> -> vector<8x8xf32>
      %c3_50 = arith.constant 3 : index
      %c0_51 = arith.constant 0 : index
      %c0_52 = arith.constant 0 : index
      %57 = vector.load %arg5[%c3_50, %c0_51, %c0_52] : memref<4x1x8xf32, #tpu.memory_space<vmem>>, vector<1x1x8xf32>
      %58 = vector.shape_cast %57 : vector<1x1x8xf32> to vector<1x8xf32>
      %59 = vector.broadcast %58 : vector<1x8xf32> to vector<8x8xf32>
      %60 = arith.addf %56, %59 : vector<8x8xf32>
      %61 = arith.truncf %60 : vector<8x8xf32> to vector<8x8xbf16>
      %c3_53 = arith.constant 3 : index
      %c0_54 = arith.constant 0 : index
      %c0_55 = arith.constant 0 : index
      %62 = vector.load %arg13[%c3_53, %c0_54, %c0_55] : memref<4x8x8xbf16, #tpu.memory_space<vmem>>, vector<1x8x8xbf16>
      %63 = vector.shape_cast %62 : vector<1x8x8xbf16> to vector<8x8xbf16>
      %64 = vector.shape_cast %61 : vector<8x8xbf16> to vector<1x8x8xbf16>
      tpu.vector_store %arg13[%c3_53, %c0_54, %c0_55], %64 {strides = array<i32>} : memref<4x8x8xbf16, #tpu.memory_space<vmem>>, vector<1x8x8xbf16>,
    } else {
    }
    %c8_i32 = arith.constant 8 : i32
    %3 = arith.muli %arg1, %c8_i32 : i32
    %c8_i32_1 = arith.constant 8 : i32
    %4 = arith.addi %3, %c8_i32_1 : i32
    %c8_i32_2 = arith.constant 8 : i32
    %5 = arith.muli %arg2, %c8_i32_2 : i32
    %6 = arith.cmpi sgt, %4, %5 : i32
    %7 = arith.extui %6 : i1 to i32
    %c0_i32_3 = arith.constant 0 : i32
    %8 = arith.cmpi ne, %7, %c0_i32_3 : i32
    scf.if %8 {
      %c0 = arith.constant 0 : index
      %c0_6 = arith.constant 0 : index
      %c0_7 = arith.constant 0 : index
      %12 = vector.load %arg13[%c0, %c0_6, %c0_7] : memref<4x8x8xbf16, #tpu.memory_space<vmem>>, vector<4x8x8xbf16>
      %c0_8 = arith.constant 0 : index
      %c0_9 = arith.constant 0 : index
      %c0_10 = arith.constant 0 : index
      %c0_11 = arith.constant 0 : index
      %13 = vector.load %arg6[%c0_8, %c0_9, %c0_10, %c0_11] : memref<1x4x8x8xbf16, #tpu.memory_space<vmem>>, vector<1x4x8x8xbf16>
      %14 = vector.shape_cast %13 : vector<1x4x8x8xbf16> to vector<4x8x8xbf16>
      "tpu.trace_start"() <{level = 10 : i32, message = "hqd,hkd->hqk"}> : () -> ()
      %cst = arith.constant dense<0.000000e+00> : vector<4x8x8xf32>
      %15 = tpu.matmul %12, %14, %cst {dimension_numbers = #tpu.dot_dimension_numbers<[2], [2], [1], [1], [0, 0, 0, 1, 1, 1], [0], [0]>} : vector<4x8x8xbf16>, vector<4x8x8xbf16>, vector<4x8x8xf32> -> vector<4x8x8xf32>
      "tpu.trace_stop"() : () -> ()
      %c8_i32_12 = arith.constant 8 : i32
      %16 = arith.muli %arg1, %c8_i32_12 : i32
      %17 = tpu.iota {dimensions = array<i32: 1>} : vector<1x8x8xi32>
      %18 = vector.broadcast %16 : i32 to vector<1x8x8xi32>
      %19 = arith.addi %18, %17 : vector<1x8x8xi32>
      %c8_i32_13 = arith.constant 8 : i32
      %20 = arith.muli %arg2, %c8_i32_13 : i32
      %21 = tpu.iota {dimensions = array<i32: 2>} : vector<1x8x8xi32>
      %22 = vector.broadcast %20 : i32 to vector<1x8x8xi32>
      %23 = arith.addi %22, %21 : vector<1x8x8xi32>
      %24 = arith.cmpi sle, %23, %19 : vector<1x8x8xi32>
      %cst_14 = arith.constant -1.000000e+30 : f32
      %25 = vector.shape_cast %24 : vector<1x8x8xi1> to vector<1x8x8xi1>
      %26 = vector.broadcast %25 : vector<1x8x8xi1> to vector<4x8x8xi1>
      %27 = vector.broadcast %cst_14 : f32 to vector<4x8x8xf32>
      %28 = arith.select %26, %15, %27 : vector<4x8x8xi1>, vector<4x8x8xf32>
      %c0_15 = arith.constant 0 : index
      %c0_16 = arith.constant 0 : index
      %c0_17 = arith.constant 0 : index
      %29 = vector.load %arg14[%c0_15, %c0_16, %c0_17] : memref<4x8x1xf32, #tpu.memory_space<vmem>>, vector<4x8x1xf32>
      %cst_18 = arith.constant dense<0xFF800000> : vector<4x8xf32>
      %30 = vector.multi_reduction <maximumf>, %28, %cst_18 [2] : vector<4x8x8xf32> to vector<4x8xf32>
      %31 = vector.shape_cast %30 : vector<4x8xf32> to vector<4x8x1xf32>
      %32 = arith.maximumf %29, %31 : vector<4x8x1xf32>
      %33 = arith.subf %29, %32 : vector<4x8x1xf32>
      %34 = math.exp %33 : vector<4x8x1xf32>
      %35 = vector.broadcast %32 : vector<4x8x1xf32> to vector<4x8x8xf32>
      %36 = arith.subf %28, %35 : vector<4x8x8xf32>
      %37 = math.exp %36 : vector<4x8x8xf32>
      %c0_19 = arith.constant 0 : index
      %c0_20 = arith.constant 0 : index
      %c0_21 = arith.constant 0 : index
      %38 = vector.load %arg15[%c0_19, %c0_20, %c0_21] : memref<4x8x1xf32, #tpu.memory_space<vmem>>, vector<4x8x1xf32>
      %39 = arith.mulf %34, %38 : vector<4x8x1xf32>
      %cst_22 = arith.constant dense<0.000000e+00> : vector<4x8xf32>
      %40 = vector.multi_reduction <add>, %37, %cst_22 [2] : vector<4x8x8xf32> to vector<4x8xf32>
      %41 = vector.shape_cast %40 : vector<4x8xf32> to vector<4x8x1xf32>
      %42 = arith.addf %39, %41 : vector<4x8x1xf32>
      %c0_23 = arith.constant 0 : index
      %c0_24 = arith.constant 0 : index
      %c0_25 = arith.constant 0 : index
      %43 = vector.load %arg15[%c0_23, %c0_24, %c0_25] : memref<4x8x1xf32, #tpu.memory_space<vmem>>, vector<4x8x1xf32>
      tpu.vector_store %arg15[%c0_23, %c0_24, %c0_25], %42 {strides = array<i32>} : memref<4x8x1xf32, #tpu.memory_space<vmem>>, vector<4x8x1xf32>,
      %c0_26 = arith.constant 0 : index
      %c0_27 = arith.constant 0 : index
      %c0_28 = arith.constant 0 : index
      %44 = vector.load %arg16[%c0_26, %c0_27, %c0_28] : memref<4x8x8xf32, #tpu.memory_space<vmem>>, vector<4x8x8xf32>
      %45 = vector.broadcast %34 : vector<4x8x1xf32> to vector<4x8x8xf32>
      %46 = arith.mulf %45, %44 : vector<4x8x8xf32>
      %47 = arith.truncf %37 : vector<4x8x8xf32> to vector<4x8x8xbf16>
      %c0_29 = arith.constant 0 : index
      %c0_30 = arith.constant 0 : index
      %c0_31 = arith.constant 0 : index
      %c0_32 = arith.constant 0 : index
      %48 = vector.load %arg7[%c0_29, %c0_30, %c0_31, %c0_32] : memref<1x4x8x8xbf16, #tpu.memory_space<vmem>>, vector<1x4x8x8xbf16>
      %49 = vector.shape_cast %48 : vector<1x4x8x8xbf16> to vector<4x8x8xbf16>
      "tpu.trace_start"() <{level = 10 : i32, message = "hqk,hkd->hqd"}> : () -> ()
      %cst_33 = arith.constant dense<0.000000e+00> : vector<4x8x8xf32>
      %50 = tpu.matmul %47, %49, %cst_33 {dimension_numbers = #tpu.dot_dimension_numbers<[2], [1], [1], [2], [0, 0, 0, 1, 1, 2], [0], [0]>} : vector<4x8x8xbf16>, vector<4x8x8xbf16>, vector<4x8x8xf32> -> vector<4x8x8xf32>
      "tpu.trace_stop"() : () -> ()
      %51 = arith.addf %46, %50 : vector<4x8x8xf32>
      %c0_34 = arith.constant 0 : index
      %c0_35 = arith.constant 0 : index
      %c0_36 = arith.constant 0 : index
      %52 = vector.load %arg16[%c0_34, %c0_35, %c0_36] : memref<4x8x8xf32, #tpu.memory_space<vmem>>, vector<4x8x8xf32>
      tpu.vector_store %arg16[%c0_34, %c0_35, %c0_36], %51 {strides = array<i32>} : memref<4x8x8xf32, #tpu.memory_space<vmem>>, vector<4x8x8xf32>,
      %c0_37 = arith.constant 0 : index
      %c0_38 = arith.constant 0 : index
      %c0_39 = arith.constant 0 : index
      %53 = vector.load %arg14[%c0_37, %c0_38, %c0_39] : memref<4x8x1xf32, #tpu.memory_space<vmem>>, vector<4x8x1xf32>
      tpu.vector_store %arg14[%c0_37, %c0_38, %c0_39], %32 {strides = array<i32>} : memref<4x8x1xf32, #tpu.memory_space<vmem>>, vector<4x8x1xf32>,
    } else {
    }
    %c0_i32_4 = arith.constant 0 : i32
    %9 = arith.cmpi eq, %arg2, %c0_i32_4 : i32
    %10 = arith.extui %9 : i1 to i32
    %c0_i32_5 = arith.constant 0 : i32
    %11 = arith.cmpi ne, %10, %c0_i32_5 : i32
    scf.if %11 {
      %c0 = arith.constant 0 : index
      %c0_6 = arith.constant 0 : index
      %c0_7 = arith.constant 0 : index
      %12 = vector.load %arg15[%c0, %c0_6, %c0_7] : memref<4x8x1xf32, #tpu.memory_space<vmem>>, vector<4x8x1xf32>
      %13 = tpu.reciprocal %12 {approx = true} : vector<4x8x1xf32> -> vector<4x8x1xf32>
      %c0_8 = arith.constant 0 : index
      %c0_9 = arith.constant 0 : index
      %c0_10 = arith.constant 0 : index
      %14 = vector.load %arg16[%c0_8, %c0_9, %c0_10] : memref<4x8x8xf32, #tpu.memory_space<vmem>>, vector<1x8x8xf32>
      %15 = vector.shape_cast %14 : vector<1x8x8xf32> to vector<8x8xf32>
      %16 = vector.extract_strided_slice %13 {offsets = [0, 0, 0], sizes = [1, 8, 1], strides = [1, 1, 1]} : vector<4x8x1xf32> to vector<1x8x1xf32>
      %17 = vector.shape_cast %16 : vector<1x8x1xf32> to vector<8x1xf32>
      %18 = vector.broadcast %17 : vector<8x1xf32> to vector<8x8xf32>
      %19 = arith.mulf %15, %18 : vector<8x8xf32>
      %c0_11 = arith.constant 0 : index
      %c0_12 = arith.constant 0 : index
      %20 = vector.load %arg17[%c0_11, %c0_12] : memref<8x32xf32, #tpu.memory_space<vmem>>, vector<8x8xf32>
      tpu.vector_store %arg17[%c0_11, %c0_12], %19 {strides = array<i32>} : memref<8x32xf32, #tpu.memory_space<vmem>>, vector<8x8xf32>,
      %c1 = arith.constant 1 : index
      %c0_13 = arith.constant 0 : index
      %c0_14 = arith.constant 0 : index
      %21 = vector.load %arg16[%c1, %c0_13, %c0_14] : memref<4x8x8xf32, #tpu.memory_space<vmem>>, vector<1x8x8xf32>
      %22 = vector.shape_cast %21 : vector<1x8x8xf32> to vector<8x8xf32>
      %23 = vector.extract_strided_slice %13 {offsets = [1, 0, 0], sizes = [1, 8, 1], strides = [1, 1, 1]} : vector<4x8x1xf32> to vector<1x8x1xf32>
      %24 = vector.shape_cast %23 : vector<1x8x1xf32> to vector<8x1xf32>
      %25 = vector.broadcast %24 : vector<8x1xf32> to vector<8x8xf32>
      %26 = arith.mulf %22, %25 : vector<8x8xf32>
      %c0_15 = arith.constant 0 : index
      %c8 = arith.constant 8 : index
      %27 = vector.load %arg17[%c0_15, %c8] : memref<8x32xf32, #tpu.memory_space<vmem>>, vector<8x8xf32>
      tpu.vector_store %arg17[%c0_15, %c8], %26 {strides = array<i32>} : memref<8x32xf32, #tpu.memory_space<vmem>>, vector<8x8xf32>,
      %c2 = arith.constant 2 : index
      %c0_16 = arith.constant 0 : index
      %c0_17 = arith.constant 0 : index
      %28 = vector.load %arg16[%c2, %c0_16, %c0_17] : memref<4x8x8xf32, #tpu.memory_space<vmem>>, vector<1x8x8xf32>
      %29 = vector.shape_cast %28 : vector<1x8x8xf32> to vector<8x8xf32>
      %30 = vector.extract_strided_slice %13 {offsets = [2, 0, 0], sizes = [1, 8, 1], strides = [1, 1, 1]} : vector<4x8x1xf32> to vector<1x8x1xf32>
      %31 = vector.shape_cast %30 : vector<1x8x1xf32> to vector<8x1xf32>
      %32 = vector.broadcast %31 : vector<8x1xf32> to vector<8x8xf32>
      %33 = arith.mulf %29, %32 : vector<8x8xf32>
      %c0_18 = arith.constant 0 : index
      %c16 = arith.constant 16 : index
      %34 = vector.load %arg17[%c0_18, %c16] : memref<8x32xf32, #tpu.memory_space<vmem>>, vector<8x8xf32>
      tpu.vector_store %arg17[%c0_18, %c16], %33 {strides = array<i32>} : memref<8x32xf32, #tpu.memory_space<vmem>>, vector<8x8xf32>,
      %c3 = arith.constant 3 : index
      %c0_19 = arith.constant 0 : index
      %c0_20 = arith.constant 0 : index
      %35 = vector.load %arg16[%c3, %c0_19, %c0_20] : memref<4x8x8xf32, #tpu.memory_space<vmem>>, vector<1x8x8xf32>
      %36 = vector.shape_cast %35 : vector<1x8x8xf32> to vector<8x8xf32>
      %37 = vector.extract_strided_slice %13 {offsets = [3, 0, 0], sizes = [1, 8, 1], strides = [1, 1, 1]} : vector<4x8x1xf32> to vector<1x8x1xf32>
      %38 = vector.shape_cast %37 : vector<1x8x1xf32> to vector<8x1xf32>
      %39 = vector.broadcast %38 : vector<8x1xf32> to vector<8x8xf32>
      %40 = arith.mulf %36, %39 : vector<8x8xf32>
      %c0_21 = arith.constant 0 : index
      %c24 = arith.constant 24 : index
      %41 = vector.load %arg17[%c0_21, %c24] : memref<8x32xf32, #tpu.memory_space<vmem>>, vector<8x8xf32>
      tpu.vector_store %arg17[%c0_21, %c24], %40 {strides = array<i32>} : memref<8x32xf32, #tpu.memory_space<vmem>>, vector<8x8xf32>,
      %c0_22 = arith.constant 0 : index
      %c0_23 = arith.constant 0 : index
      %42 = vector.load %arg17[%c0_22, %c0_23] : memref<8x32xf32, #tpu.memory_space<vmem>>, vector<8x32xf32>
      %43 = arith.truncf %42 : vector<8x32xf32> to vector<8x32xbf16>
      %c0_24 = arith.constant 0 : index
      %c0_25 = arith.constant 0 : index
      %44 = vector.load %arg8[%c0_24, %c0_25] : memref<32x32xbf16, #tpu.memory_space<vmem>>, vector<32x32xbf16>
      %cst = arith.constant dense<0.000000e+00> : vector<8x32xf32>
      %45 = tpu.matmul %43, %44, %cst {dimension_numbers = #tpu.dot_dimension_numbers<[1], [0], [0], [1], [0, 0, 1, 1], [], []>} : vector<8x32xbf16>, vector<32x32xbf16>, vector<8x32xf32> -> vector<8x32xf32>
      %c0_26 = arith.constant 0 : index
      %c0_27 = arith.constant 0 : index
      %46 = vector.load %arg9[%c0_26, %c0_27] : memref<1x32xf32, #tpu.memory_space<vmem>>, vector<1x32xf32>
      %47 = vector.broadcast %46 : vector<1x32xf32> to vector<8x32xf32>
      %48 = arith.addf %45, %47 : vector<8x32xf32>
      %c0_28 = arith.constant 0 : index
      %c0_29 = arith.constant 0 : index
      %c0_30 = arith.constant 0 : index
      %49 = vector.load %arg3[%c0_28, %c0_29, %c0_30] : memref<1x8x32xf32, #tpu.memory_space<vmem>>, vector<1x8x32xf32>
      %50 = vector.shape_cast %49 : vector<1x8x32xf32> to vector<8x32xf32>
      %51 = arith.addf %50, %48 : vector<8x32xf32>
      %cst_31 = arith.constant dense<0.000000e+00> : vector<8xf32>
      %52 = vector.multi_reduction <add>, %51, %cst_31 [1] : vector<8x32xf32> to vector<8xf32>
      %53 = vector.shape_cast %52 : vector<8xf32> to vector<8x1xf32>
      %cst_32 = arith.constant 3.200000e+01 : f32
      %54 = vector.broadcast %cst_32 : f32 to vector<8x1xf32>
      %55 = arith.divf %53, %54 : vector<8x1xf32>
      %56 = vector.broadcast %55 : vector<8x1xf32> to vector<8x32xf32>
      %57 = arith.subf %51, %56 : vector<8x32xf32>
      %58 = arith.mulf %57, %57 : vector<8x32xf32>
      %cst_33 = arith.constant dense<0.000000e+00> : vector<8xf32>
      %59 = vector.multi_reduction <add>, %58, %cst_33 [1] : vector<8x32xf32> to vector<8xf32>
      %60 = vector.shape_cast %59 : vector<8xf32> to vector<8x1xf32>
      %cst_34 = arith.constant 3.200000e+01 : f32
      %61 = vector.broadcast %cst_34 : f32 to vector<8x1xf32>
      %62 = arith.divf %60, %61 : vector<8x1xf32>
      %63 = vector.broadcast %55 : vector<8x1xf32> to vector<8x32xf32>
      %64 = arith.subf %51, %63 : vector<8x32xf32>
      %cst_35 = arith.constant 9.99999974E-6 : f32
      %65 = vector.broadcast %cst_35 : f32 to vector<8x1xf32>
      %66 = arith.addf %62, %65 : vector<8x1xf32>
      %67 = math.rsqrt %66 : vector<8x1xf32>
      %68 = vector.broadcast %67 : vector<8x1xf32> to vector<8x32xf32>
      %69 = arith.mulf %64, %68 : vector<8x32xf32>
      %c0_36 = arith.constant 0 : index
      %c0_37 = arith.constant 0 : index
      %70 = vector.load %arg10[%c0_36, %c0_37] : memref<1x32xf32, #tpu.memory_space<vmem>>, vector<1x32xf32>
      %71 = vector.broadcast %70 : vector<1x32xf32> to vector<8x32xf32>
      %72 = arith.mulf %69, %71 : vector<8x32xf32>
      %c0_38 = arith.constant 0 : index
      %c0_39 = arith.constant 0 : index
      %73 = vector.load %arg11[%c0_38, %c0_39] : memref<1x32xf32, #tpu.memory_space<vmem>>, vector<1x32xf32>
      %74 = vector.broadcast %73 : vector<1x32xf32> to vector<8x32xf32>
      %75 = arith.addf %72, %74 : vector<8x32xf32>
      %c0_40 = arith.constant 0 : index
      %c0_41 = arith.constant 0 : index
      %c0_42 = arith.constant 0 : index
      %76 = vector.load %arg12[%c0_40, %c0_41, %c0_42] : memref<1x8x32xf32, #tpu.memory_space<vmem>>, vector<1x8x32xf32>
      %77 = vector.shape_cast %76 : vector<1x8x32xf32> to vector<8x32xf32>
      %78 = vector.shape_cast %75 : vector<8x32xf32> to vector<1x8x32xf32>
      tpu.vector_store %arg12[%c0_40, %c0_41, %c0_42], %78 {strides = array<i32>} : memref<1x8x32xf32, #tpu.memory_space<vmem>>, vector<1x8x32xf32>,
    } else {
    }
    return
  }
  func.func @transform_0(%arg0: i32, %arg1: i32, %arg2: i32) -> (i32, i32, i32) {
    %c0_i32 = arith.constant 0 : i32
    %c0_i32_0 = arith.constant 0 : i32
    return %arg0, %arg1, %c0_i32 : i32, i32, i32
  }
  func.func @transform_1(%arg0: i32, %arg1: i32, %arg2: i32) -> (i32, i32, i32) {
    %c0_i32 = arith.constant 0 : i32
    %c0_i32_0 = arith.constant 0 : i32
    %c0_i32_1 = arith.constant 0 : i32
    %c0_i32_2 = arith.constant 0 : i32
    return %c0_i32, %c0_i32_0, %c0_i32_1 : i32, i32, i32
  }
  func.func @transform_2(%arg0: i32, %arg1: i32, %arg2: i32) -> (i32, i32, i32) {
    %c0_i32 = arith.constant 0 : i32
    %c0_i32_0 = arith.constant 0 : i32
    %c0_i32_1 = arith.constant 0 : i32
    %c0_i32_2 = arith.constant 0 : i32
    return %c0_i32, %c0_i32_0, %c0_i32_1 : i32, i32, i32
  }
  func.func @transform_3(%arg0: i32, %arg1: i32, %arg2: i32) -> (i32, i32, i32, i32) {
    %c0_i32 = arith.constant 0 : i32
    %c0_i32_0 = arith.constant 0 : i32
    %c0_i32_1 = arith.constant 0 : i32
    return %arg0, %c0_i32, %arg2, %c0_i32_0 : i32, i32, i32, i32
  }
  func.func @transform_4(%arg0: i32, %arg1: i32, %arg2: i32) -> (i32, i32, i32, i32) {
    %c0_i32 = arith.constant 0 : i32
    %c0_i32_0 = arith.constant 0 : i32
    %c0_i32_1 = arith.constant 0 : i32
    return %arg0, %c0_i32, %arg2, %c0_i32_0 : i32, i32, i32, i32
  }
  func.func @transform_5(%arg0: i32, %arg1: i32, %arg2: i32) -> (i32, i32) {
    %c0_i32 = arith.constant 0 : i32
    %c0_i32_0 = arith.constant 0 : i32
    %c0_i32_1 = arith.constant 0 : i32
    return %c0_i32, %c0_i32_0 : i32, i32
  }
  func.func @transform_6(%arg0: i32, %arg1: i32, %arg2: i32) -> (i32, i32) {
    %c0_i32 = arith.constant 0 : i32
    %c0_i32_0 = arith.constant 0 : i32
    %c0_i32_1 = arith.constant 0 : i32
    return %c0_i32, %c0_i32_0 : i32, i32
  }
  func.func @transform_7(%arg0: i32, %arg1: i32, %arg2: i32) -> (i32, i32) {
    %c0_i32 = arith.constant 0 : i32
    %c0_i32_0 = arith.constant 0 : i32
    %c0_i32_1 = arith.constant 0 : i32
    return %c0_i32, %c0_i32_0 : i32, i32
  }
  func.func @transform_8(%arg0: i32, %arg1: i32, %arg2: i32) -> (i32, i32) {
    %c0_i32 = arith.constant 0 : i32
    %c0_i32_0 = arith.constant 0 : i32
    %c0_i32_1 = arith.constant 0 : i32
    return %c0_i32, %c0_i32_0 : i32, i32
  }
  func.func @transform_9(%arg0: i32, %arg1: i32, %arg2: i32) -> (i32, i32, i32) {
    %c0_i32 = arith.constant 0 : i32
    %c0_i32_0 = arith.constant 0 : i32
    return %arg0, %arg1, %c0_i32 : i32, i32, i32
  }
}

module attributes {stable_mosaic.version = 11 : i64} {
  func.func @_kv_proj_kernel(%arg0: i32, %arg1: i32, %arg2: memref<1x16x32xf32, #tpu.memory_space<vmem>>, %arg3: memref<8x32x8xbf16, #tpu.memory_space<vmem>>, %arg4: memref<8x1x8xf32, #tpu.memory_space<vmem>>, %arg5: memref<1x4x16x8xbf16, #tpu.memory_space<vmem>>, %arg6: memref<1x4x16x8xbf16, #tpu.memory_space<vmem>>) attributes {dimension_semantics = [#tpu.dimension_semantics<parallel>, #tpu.dimension_semantics<parallel>], iteration_bounds = array<i64: 2, 1>, scalar_prefetch = 0 : i64, scratch_operands = 0 : i64, tpu.core_type = #tpu.core_type<tc>, window_params = [{transform_indices = @transform_0, window_bounds = array<i64: 1, 16, 32>}, {pipeline_mode = #tpu.pipeline_mode<synchronous>, transform_indices = @transform_1, window_bounds = array<i64: 8, 32, 8>}, {pipeline_mode = #tpu.pipeline_mode<synchronous>, transform_indices = @transform_2, window_bounds = array<i64: 8, 1, 8>}, {transform_indices = @transform_3, window_bounds = array<i64: 1, 4, 16, 8>}, {transform_indices = @transform_4, window_bounds = array<i64: 1, 4, 16, 8>}]} {
    %c0 = arith.constant 0 : index
    %c0_0 = arith.constant 0 : index
    %c0_1 = arith.constant 0 : index
    %0 = vector.load %arg2[%c0, %c0_0, %c0_1] : memref<1x16x32xf32, #tpu.memory_space<vmem>>, vector<1x16x32xf32>
    %1 = vector.shape_cast %0 : vector<1x16x32xf32> to vector<16x32xf32>
    %2 = arith.truncf %1 : vector<16x32xf32> to vector<16x32xbf16>
    %c0_2 = arith.constant 0 : index
    %c0_3 = arith.constant 0 : index
    %c0_4 = arith.constant 0 : index
    %3 = vector.load %arg3[%c0_2, %c0_3, %c0_4] : memref<8x32x8xbf16, #tpu.memory_space<vmem>>, vector<1x32x8xbf16>
    %4 = vector.shape_cast %3 : vector<1x32x8xbf16> to vector<32x8xbf16>
    %cst = arith.constant dense<0.000000e+00> : vector<16x8xf32>
    %5 = tpu.matmul %2, %4, %cst {dimension_numbers = #tpu.dot_dimension_numbers<[1], [0], [0], [1], [0, 0, 1, 1], [], []>} : vector<16x32xbf16>, vector<32x8xbf16>, vector<16x8xf32> -> vector<16x8xf32>
    %c0_5 = arith.constant 0 : index
    %c0_6 = arith.constant 0 : index
    %c0_7 = arith.constant 0 : index
    %6 = vector.load %arg4[%c0_5, %c0_6, %c0_7] : memref<8x1x8xf32, #tpu.memory_space<vmem>>, vector<1x1x8xf32>
    %7 = vector.shape_cast %6 : vector<1x1x8xf32> to vector<1x8xf32>
    %8 = vector.broadcast %7 : vector<1x8xf32> to vector<16x8xf32>
    %9 = arith.addf %5, %8 : vector<16x8xf32>
    %10 = arith.truncf %9 : vector<16x8xf32> to vector<16x8xbf16>
    %c0_8 = arith.constant 0 : index
    %c0_9 = arith.constant 0 : index
    %c0_10 = arith.constant 0 : index
    %c0_11 = arith.constant 0 : index
    %11 = vector.load %arg5[%c0_8, %c0_9, %c0_10, %c0_11] : memref<1x4x16x8xbf16, #tpu.memory_space<vmem>>, vector<1x1x16x8xbf16>
    %12 = vector.shape_cast %11 : vector<1x1x16x8xbf16> to vector<16x8xbf16>
    %13 = vector.shape_cast %10 : vector<16x8xbf16> to vector<1x1x16x8xbf16>
    tpu.vector_store %arg5[%c0_8, %c0_9, %c0_10, %c0_11], %13 {strides = array<i32>} : memref<1x4x16x8xbf16, #tpu.memory_space<vmem>>, vector<1x1x16x8xbf16>,
    %c4 = arith.constant 4 : index
    %c0_12 = arith.constant 0 : index
    %c0_13 = arith.constant 0 : index
    %14 = vector.load %arg3[%c4, %c0_12, %c0_13] : memref<8x32x8xbf16, #tpu.memory_space<vmem>>, vector<1x32x8xbf16>
    %15 = vector.shape_cast %14 : vector<1x32x8xbf16> to vector<32x8xbf16>
    %cst_14 = arith.constant dense<0.000000e+00> : vector<16x8xf32>
    %16 = tpu.matmul %2, %15, %cst_14 {dimension_numbers = #tpu.dot_dimension_numbers<[1], [0], [0], [1], [0, 0, 1, 1], [], []>} : vector<16x32xbf16>, vector<32x8xbf16>, vector<16x8xf32> -> vector<16x8xf32>
    %c4_15 = arith.constant 4 : index
    %c0_16 = arith.constant 0 : index
    %c0_17 = arith.constant 0 : index
    %17 = vector.load %arg4[%c4_15, %c0_16, %c0_17] : memref<8x1x8xf32, #tpu.memory_space<vmem>>, vector<1x1x8xf32>
    %18 = vector.shape_cast %17 : vector<1x1x8xf32> to vector<1x8xf32>
    %19 = vector.broadcast %18 : vector<1x8xf32> to vector<16x8xf32>
    %20 = arith.addf %16, %19 : vector<16x8xf32>
    %21 = arith.truncf %20 : vector<16x8xf32> to vector<16x8xbf16>
    %c0_18 = arith.constant 0 : index
    %c0_19 = arith.constant 0 : index
    %c0_20 = arith.constant 0 : index
    %c0_21 = arith.constant 0 : index
    %22 = vector.load %arg6[%c0_18, %c0_19, %c0_20, %c0_21] : memref<1x4x16x8xbf16, #tpu.memory_space<vmem>>, vector<1x1x16x8xbf16>
    %23 = vector.shape_cast %22 : vector<1x1x16x8xbf16> to vector<16x8xbf16>
    %24 = vector.shape_cast %21 : vector<16x8xbf16> to vector<1x1x16x8xbf16>
    tpu.vector_store %arg6[%c0_18, %c0_19, %c0_20, %c0_21], %24 {strides = array<i32>} : memref<1x4x16x8xbf16, #tpu.memory_space<vmem>>, vector<1x1x16x8xbf16>,
    %c1 = arith.constant 1 : index
    %c0_22 = arith.constant 0 : index
    %c0_23 = arith.constant 0 : index
    %25 = vector.load %arg3[%c1, %c0_22, %c0_23] : memref<8x32x8xbf16, #tpu.memory_space<vmem>>, vector<1x32x8xbf16>
    %26 = vector.shape_cast %25 : vector<1x32x8xbf16> to vector<32x8xbf16>
    %cst_24 = arith.constant dense<0.000000e+00> : vector<16x8xf32>
    %27 = tpu.matmul %2, %26, %cst_24 {dimension_numbers = #tpu.dot_dimension_numbers<[1], [0], [0], [1], [0, 0, 1, 1], [], []>} : vector<16x32xbf16>, vector<32x8xbf16>, vector<16x8xf32> -> vector<16x8xf32>
    %c1_25 = arith.constant 1 : index
    %c0_26 = arith.constant 0 : index
    %c0_27 = arith.constant 0 : index
    %28 = vector.load %arg4[%c1_25, %c0_26, %c0_27] : memref<8x1x8xf32, #tpu.memory_space<vmem>>, vector<1x1x8xf32>
    %29 = vector.shape_cast %28 : vector<1x1x8xf32> to vector<1x8xf32>
    %30 = vector.broadcast %29 : vector<1x8xf32> to vector<16x8xf32>
    %31 = arith.addf %27, %30 : vector<16x8xf32>
    %32 = arith.truncf %31 : vector<16x8xf32> to vector<16x8xbf16>
    %c0_28 = arith.constant 0 : index
    %c1_29 = arith.constant 1 : index
    %c0_30 = arith.constant 0 : index
    %c0_31 = arith.constant 0 : index
    %33 = vector.load %arg5[%c0_28, %c1_29, %c0_30, %c0_31] : memref<1x4x16x8xbf16, #tpu.memory_space<vmem>>, vector<1x1x16x8xbf16>
    %34 = vector.shape_cast %33 : vector<1x1x16x8xbf16> to vector<16x8xbf16>
    %35 = vector.shape_cast %32 : vector<16x8xbf16> to vector<1x1x16x8xbf16>
    tpu.vector_store %arg5[%c0_28, %c1_29, %c0_30, %c0_31], %35 {strides = array<i32>} : memref<1x4x16x8xbf16, #tpu.memory_space<vmem>>, vector<1x1x16x8xbf16>,
    %c5 = arith.constant 5 : index
    %c0_32 = arith.constant 0 : index
    %c0_33 = arith.constant 0 : index
    %36 = vector.load %arg3[%c5, %c0_32, %c0_33] : memref<8x32x8xbf16, #tpu.memory_space<vmem>>, vector<1x32x8xbf16>
    %37 = vector.shape_cast %36 : vector<1x32x8xbf16> to vector<32x8xbf16>
    %cst_34 = arith.constant dense<0.000000e+00> : vector<16x8xf32>
    %38 = tpu.matmul %2, %37, %cst_34 {dimension_numbers = #tpu.dot_dimension_numbers<[1], [0], [0], [1], [0, 0, 1, 1], [], []>} : vector<16x32xbf16>, vector<32x8xbf16>, vector<16x8xf32> -> vector<16x8xf32>
    %c5_35 = arith.constant 5 : index
    %c0_36 = arith.constant 0 : index
    %c0_37 = arith.constant 0 : index
    %39 = vector.load %arg4[%c5_35, %c0_36, %c0_37] : memref<8x1x8xf32, #tpu.memory_space<vmem>>, vector<1x1x8xf32>
    %40 = vector.shape_cast %39 : vector<1x1x8xf32> to vector<1x8xf32>
    %41 = vector.broadcast %40 : vector<1x8xf32> to vector<16x8xf32>
    %42 = arith.addf %38, %41 : vector<16x8xf32>
    %43 = arith.truncf %42 : vector<16x8xf32> to vector<16x8xbf16>
    %c0_38 = arith.constant 0 : index
    %c1_39 = arith.constant 1 : index
    %c0_40 = arith.constant 0 : index
    %c0_41 = arith.constant 0 : index
    %44 = vector.load %arg6[%c0_38, %c1_39, %c0_40, %c0_41] : memref<1x4x16x8xbf16, #tpu.memory_space<vmem>>, vector<1x1x16x8xbf16>
    %45 = vector.shape_cast %44 : vector<1x1x16x8xbf16> to vector<16x8xbf16>
    %46 = vector.shape_cast %43 : vector<16x8xbf16> to vector<1x1x16x8xbf16>
    tpu.vector_store %arg6[%c0_38, %c1_39, %c0_40, %c0_41], %46 {strides = array<i32>} : memref<1x4x16x8xbf16, #tpu.memory_space<vmem>>, vector<1x1x16x8xbf16>,
    %c2 = arith.constant 2 : index
    %c0_42 = arith.constant 0 : index
    %c0_43 = arith.constant 0 : index
    %47 = vector.load %arg3[%c2, %c0_42, %c0_43] : memref<8x32x8xbf16, #tpu.memory_space<vmem>>, vector<1x32x8xbf16>
    %48 = vector.shape_cast %47 : vector<1x32x8xbf16> to vector<32x8xbf16>
    %cst_44 = arith.constant dense<0.000000e+00> : vector<16x8xf32>
    %49 = tpu.matmul %2, %48, %cst_44 {dimension_numbers = #tpu.dot_dimension_numbers<[1], [0], [0], [1], [0, 0, 1, 1], [], []>} : vector<16x32xbf16>, vector<32x8xbf16>, vector<16x8xf32> -> vector<16x8xf32>
    %c2_45 = arith.constant 2 : index
    %c0_46 = arith.constant 0 : index
    %c0_47 = arith.constant 0 : index
    %50 = vector.load %arg4[%c2_45, %c0_46, %c0_47] : memref<8x1x8xf32, #tpu.memory_space<vmem>>, vector<1x1x8xf32>
    %51 = vector.shape_cast %50 : vector<1x1x8xf32> to vector<1x8xf32>
    %52 = vector.broadcast %51 : vector<1x8xf32> to vector<16x8xf32>
    %53 = arith.addf %49, %52 : vector<16x8xf32>
    %54 = arith.truncf %53 : vector<16x8xf32> to vector<16x8xbf16>
    %c0_48 = arith.constant 0 : index
    %c2_49 = arith.constant 2 : index
    %c0_50 = arith.constant 0 : index
    %c0_51 = arith.constant 0 : index
    %55 = vector.load %arg5[%c0_48, %c2_49, %c0_50, %c0_51] : memref<1x4x16x8xbf16, #tpu.memory_space<vmem>>, vector<1x1x16x8xbf16>
    %56 = vector.shape_cast %55 : vector<1x1x16x8xbf16> to vector<16x8xbf16>
    %57 = vector.shape_cast %54 : vector<16x8xbf16> to vector<1x1x16x8xbf16>
    tpu.vector_store %arg5[%c0_48, %c2_49, %c0_50, %c0_51], %57 {strides = array<i32>} : memref<1x4x16x8xbf16, #tpu.memory_space<vmem>>, vector<1x1x16x8xbf16>,
    %c6 = arith.constant 6 : index
    %c0_52 = arith.constant 0 : index
    %c0_53 = arith.constant 0 : index
    %58 = vector.load %arg3[%c6, %c0_52, %c0_53] : memref<8x32x8xbf16, #tpu.memory_space<vmem>>, vector<1x32x8xbf16>
    %59 = vector.shape_cast %58 : vector<1x32x8xbf16> to vector<32x8xbf16>
    %cst_54 = arith.constant dense<0.000000e+00> : vector<16x8xf32>
    %60 = tpu.matmul %2, %59, %cst_54 {dimension_numbers = #tpu.dot_dimension_numbers<[1], [0], [0], [1], [0, 0, 1, 1], [], []>} : vector<16x32xbf16>, vector<32x8xbf16>, vector<16x8xf32> -> vector<16x8xf32>
    %c6_55 = arith.constant 6 : index
    %c0_56 = arith.constant 0 : index
    %c0_57 = arith.constant 0 : index
    %61 = vector.load %arg4[%c6_55, %c0_56, %c0_57] : memref<8x1x8xf32, #tpu.memory_space<vmem>>, vector<1x1x8xf32>
    %62 = vector.shape_cast %61 : vector<1x1x8xf32> to vector<1x8xf32>
    %63 = vector.broadcast %62 : vector<1x8xf32> to vector<16x8xf32>
    %64 = arith.addf %60, %63 : vector<16x8xf32>
    %65 = arith.truncf %64 : vector<16x8xf32> to vector<16x8xbf16>
    %c0_58 = arith.constant 0 : index
    %c2_59 = arith.constant 2 : index
    %c0_60 = arith.constant 0 : index
    %c0_61 = arith.constant 0 : index
    %66 = vector.load %arg6[%c0_58, %c2_59, %c0_60, %c0_61] : memref<1x4x16x8xbf16, #tpu.memory_space<vmem>>, vector<1x1x16x8xbf16>
    %67 = vector.shape_cast %66 : vector<1x1x16x8xbf16> to vector<16x8xbf16>
    %68 = vector.shape_cast %65 : vector<16x8xbf16> to vector<1x1x16x8xbf16>
    tpu.vector_store %arg6[%c0_58, %c2_59, %c0_60, %c0_61], %68 {strides = array<i32>} : memref<1x4x16x8xbf16, #tpu.memory_space<vmem>>, vector<1x1x16x8xbf16>,
    %c3 = arith.constant 3 : index
    %c0_62 = arith.constant 0 : index
    %c0_63 = arith.constant 0 : index
    %69 = vector.load %arg3[%c3, %c0_62, %c0_63] : memref<8x32x8xbf16, #tpu.memory_space<vmem>>, vector<1x32x8xbf16>
    %70 = vector.shape_cast %69 : vector<1x32x8xbf16> to vector<32x8xbf16>
    %cst_64 = arith.constant dense<0.000000e+00> : vector<16x8xf32>
    %71 = tpu.matmul %2, %70, %cst_64 {dimension_numbers = #tpu.dot_dimension_numbers<[1], [0], [0], [1], [0, 0, 1, 1], [], []>} : vector<16x32xbf16>, vector<32x8xbf16>, vector<16x8xf32> -> vector<16x8xf32>
    %c3_65 = arith.constant 3 : index
    %c0_66 = arith.constant 0 : index
    %c0_67 = arith.constant 0 : index
    %72 = vector.load %arg4[%c3_65, %c0_66, %c0_67] : memref<8x1x8xf32, #tpu.memory_space<vmem>>, vector<1x1x8xf32>
    %73 = vector.shape_cast %72 : vector<1x1x8xf32> to vector<1x8xf32>
    %74 = vector.broadcast %73 : vector<1x8xf32> to vector<16x8xf32>
    %75 = arith.addf %71, %74 : vector<16x8xf32>
    %76 = arith.truncf %75 : vector<16x8xf32> to vector<16x8xbf16>
    %c0_68 = arith.constant 0 : index
    %c3_69 = arith.constant 3 : index
    %c0_70 = arith.constant 0 : index
    %c0_71 = arith.constant 0 : index
    %77 = vector.load %arg5[%c0_68, %c3_69, %c0_70, %c0_71] : memref<1x4x16x8xbf16, #tpu.memory_space<vmem>>, vector<1x1x16x8xbf16>
    %78 = vector.shape_cast %77 : vector<1x1x16x8xbf16> to vector<16x8xbf16>
    %79 = vector.shape_cast %76 : vector<16x8xbf16> to vector<1x1x16x8xbf16>
    tpu.vector_store %arg5[%c0_68, %c3_69, %c0_70, %c0_71], %79 {strides = array<i32>} : memref<1x4x16x8xbf16, #tpu.memory_space<vmem>>, vector<1x1x16x8xbf16>,
    %c7 = arith.constant 7 : index
    %c0_72 = arith.constant 0 : index
    %c0_73 = arith.constant 0 : index
    %80 = vector.load %arg3[%c7, %c0_72, %c0_73] : memref<8x32x8xbf16, #tpu.memory_space<vmem>>, vector<1x32x8xbf16>
    %81 = vector.shape_cast %80 : vector<1x32x8xbf16> to vector<32x8xbf16>
    %cst_74 = arith.constant dense<0.000000e+00> : vector<16x8xf32>
    %82 = tpu.matmul %2, %81, %cst_74 {dimension_numbers = #tpu.dot_dimension_numbers<[1], [0], [0], [1], [0, 0, 1, 1], [], []>} : vector<16x32xbf16>, vector<32x8xbf16>, vector<16x8xf32> -> vector<16x8xf32>
    %c7_75 = arith.constant 7 : index
    %c0_76 = arith.constant 0 : index
    %c0_77 = arith.constant 0 : index
    %83 = vector.load %arg4[%c7_75, %c0_76, %c0_77] : memref<8x1x8xf32, #tpu.memory_space<vmem>>, vector<1x1x8xf32>
    %84 = vector.shape_cast %83 : vector<1x1x8xf32> to vector<1x8xf32>
    %85 = vector.broadcast %84 : vector<1x8xf32> to vector<16x8xf32>
    %86 = arith.addf %82, %85 : vector<16x8xf32>
    %87 = arith.truncf %86 : vector<16x8xf32> to vector<16x8xbf16>
    %c0_78 = arith.constant 0 : index
    %c3_79 = arith.constant 3 : index
    %c0_80 = arith.constant 0 : index
    %c0_81 = arith.constant 0 : index
    %88 = vector.load %arg6[%c0_78, %c3_79, %c0_80, %c0_81] : memref<1x4x16x8xbf16, #tpu.memory_space<vmem>>, vector<1x1x16x8xbf16>
    %89 = vector.shape_cast %88 : vector<1x1x16x8xbf16> to vector<16x8xbf16>
    %90 = vector.shape_cast %87 : vector<16x8xbf16> to vector<1x1x16x8xbf16>
    tpu.vector_store %arg6[%c0_78, %c3_79, %c0_80, %c0_81], %90 {strides = array<i32>} : memref<1x4x16x8xbf16, #tpu.memory_space<vmem>>, vector<1x1x16x8xbf16>,
    return
  }
  func.func @transform_0(%arg0: i32, %arg1: i32) -> (i32, i32, i32) {
    %c0_i32 = arith.constant 0 : i32
    %c0_i32_0 = arith.constant 0 : i32
    return %arg0, %arg1, %c0_i32 : i32, i32, i32
  }
  func.func @transform_1(%arg0: i32, %arg1: i32) -> (i32, i32, i32) {
    %c0_i32 = arith.constant 0 : i32
    %c0_i32_0 = arith.constant 0 : i32
    %c0_i32_1 = arith.constant 0 : i32
    %c0_i32_2 = arith.constant 0 : i32
    return %c0_i32, %c0_i32_0, %c0_i32_1 : i32, i32, i32
  }
  func.func @transform_2(%arg0: i32, %arg1: i32) -> (i32, i32, i32) {
    %c0_i32 = arith.constant 0 : i32
    %c0_i32_0 = arith.constant 0 : i32
    %c0_i32_1 = arith.constant 0 : i32
    %c0_i32_2 = arith.constant 0 : i32
    return %c0_i32, %c0_i32_0, %c0_i32_1 : i32, i32, i32
  }
  func.func @transform_3(%arg0: i32, %arg1: i32) -> (i32, i32, i32, i32) {
    %c0_i32 = arith.constant 0 : i32
    %c0_i32_0 = arith.constant 0 : i32
    %c0_i32_1 = arith.constant 0 : i32
    return %arg0, %c0_i32, %arg1, %c0_i32_0 : i32, i32, i32, i32
  }
  func.func @transform_4(%arg0: i32, %arg1: i32) -> (i32, i32, i32, i32) {
    %c0_i32 = arith.constant 0 : i32
    %c0_i32_0 = arith.constant 0 : i32
    %c0_i32_1 = arith.constant 0 : i32
    return %arg0, %c0_i32, %arg1, %c0_i32_0 : i32, i32, i32, i32
  }
}

module attributes {stable_mosaic.version = 11 : i64} {
  func.func @_flash_attn_kernel(%arg0: i32, %arg1: i32, %arg2: i32, %arg3: memref<1x8x32xf32, #tpu.memory_space<vmem>>, %arg4: memref<4x32x8xbf16, #tpu.memory_space<vmem>>, %arg5: memref<4x1x8xf32, #tpu.memory_space<vmem>>, %arg6: memref<1x4x16x8xbf16, #tpu.memory_space<vmem>>, %arg7: memref<1x4x16x8xbf16, #tpu.memory_space<vmem>>, %arg8: memref<32x32xbf16, #tpu.memory_space<vmem>>, %arg9: memref<1x32xf32, #tpu.memory_space<vmem>>, %arg10: memref<1x32xf32, #tpu.memory_space<vmem>>, %arg11: memref<1x32xf32, #tpu.memory_space<vmem>>, %arg12: memref<1x8x32xf32, #tpu.memory_space<vmem>>, %arg13: memref<4x8x8xbf16, #tpu.memory_space<vmem>>, %arg14: memref<4x8x1xf32, #tpu.memory_space<vmem>>, %arg15: memref<4x8x1xf32, #tpu.memory_space<vmem>>, %arg16: memref<4x8x8xf32, #tpu.memory_space<vmem>>, %arg17: memref<8x32xf32, #tpu.memory_space<vmem>>) attributes {dimension_semantics = [#tpu.dimension_semantics<parallel>, #tpu.dimension_semantics<parallel>, #tpu.dimension_semantics<arbitrary>], iteration_bounds = array<i64: 2, 1, 1>, scalar_prefetch = 0 : i64, scratch_operands = 5 : i64, tpu.core_type = #tpu.core_type<tc>, window_params = [{transform_indices = @transform_0, window_bounds = array<i64: 1, 8, 32>}, {pipeline_mode = #tpu.pipeline_mode<synchronous>, transform_indices = @transform_1, window_bounds = array<i64: 4, 32, 8>}, {pipeline_mode = #tpu.pipeline_mode<synchronous>, transform_indices = @transform_2, window_bounds = array<i64: 4, 1, 8>}, {transform_indices = @transform_3, window_bounds = array<i64: 1, 4, 16, 8>}, {transform_indices = @transform_4, window_bounds = array<i64: 1, 4, 16, 8>}, {pipeline_mode = #tpu.pipeline_mode<synchronous>, transform_indices = @transform_5, window_bounds = array<i64: 32, 32>}, {pipeline_mode = #tpu.pipeline_mode<synchronous>, transform_indices = @transform_6, window_bounds = array<i64: 1, 32>}, {pipeline_mode = #tpu.pipeline_mode<synchronous>, transform_indices = @transform_7, window_bounds = array<i64: 1, 32>}, {pipeline_mode = #tpu.pipeline_mode<synchronous>, transform_indices = @transform_8, window_bounds = array<i64: 1, 32>}, {transform_indices = @transform_9, window_bounds = array<i64: 1, 8, 32>}]} {
    %c0_i32 = arith.constant 0 : i32
    %0 = arith.cmpi eq, %arg2, %c0_i32 : i32
    %1 = arith.extui %0 : i1 to i32
    %c0_i32_0 = arith.constant 0 : i32
    %2 = arith.cmpi ne, %1, %c0_i32_0 : i32
    scf.if %2 {
      %cst_34 = arith.constant -1.000000e+30 : f32
      %35 = vector.broadcast %cst_34 : f32 to vector<4x8x1xf32>
      %c0_35 = arith.constant 0 : index
      %c0_36 = arith.constant 0 : index
      %c0_37 = arith.constant 0 : index
      %36 = vector.load %arg14[%c0_35, %c0_36, %c0_37] : memref<4x8x1xf32, #tpu.memory_space<vmem>>, vector<4x8x1xf32>
      tpu.vector_store %arg14[%c0_35, %c0_36, %c0_37], %35 {strides = array<i32>} : memref<4x8x1xf32, #tpu.memory_space<vmem>>, vector<4x8x1xf32>,
      %cst_38 = arith.constant 0.000000e+00 : f32
      %37 = vector.broadcast %cst_38 : f32 to vector<4x8x1xf32>
      %c0_39 = arith.constant 0 : index
      %c0_40 = arith.constant 0 : index
      %c0_41 = arith.constant 0 : index
      %38 = vector.load %arg15[%c0_39, %c0_40, %c0_41] : memref<4x8x1xf32, #tpu.memory_space<vmem>>, vector<4x8x1xf32>
      tpu.vector_store %arg15[%c0_39, %c0_40, %c0_41], %37 {strides = array<i32>} : memref<4x8x1xf32, #tpu.memory_space<vmem>>, vector<4x8x1xf32>,
      %cst_42 = arith.constant 0.000000e+00 : f32
      %39 = vector.broadcast %cst_42 : f32 to vector<4x8x8xf32>
      %c0_43 = arith.constant 0 : index
      %c0_44 = arith.constant 0 : index
      %c0_45 = arith.constant 0 : index
      %40 = vector.load %arg16[%c0_43, %c0_44, %c0_45] : memref<4x8x8xf32, #tpu.memory_space<vmem>>, vector<4x8x8xf32>
      tpu.vector_store %arg16[%c0_43, %c0_44, %c0_45], %39 {strides = array<i32>} : memref<4x8x8xf32, #tpu.memory_space<vmem>>, vector<4x8x8xf32>,
      %c0_46 = arith.constant 0 : index
      %c0_47 = arith.constant 0 : index
      %c0_48 = arith.constant 0 : index
      %41 = vector.load %arg3[%c0_46, %c0_47, %c0_48] : memref<1x8x32xf32, #tpu.memory_space<vmem>>, vector<1x8x32xf32>
      %42 = vector.shape_cast %41 : vector<1x8x32xf32> to vector<8x32xf32>
      %43 = arith.truncf %42 : vector<8x32xf32> to vector<8x32xbf16>
      %c0_49 = arith.constant 0 : index
      %c0_50 = arith.constant 0 : index
      %c0_51 = arith.constant 0 : index
      %44 = vector.load %arg4[%c0_49, %c0_50, %c0_51] : memref<4x32x8xbf16, #tpu.memory_space<vmem>>, vector<1x32x8xbf16>
      %45 = vector.shape_cast %44 : vector<1x32x8xbf16> to vector<32x8xbf16>
      %cst_52 = arith.constant dense<0.000000e+00> : vector<8x8xf32>
      %46 = tpu.matmul %43, %45, %cst_52 {dimension_numbers = #tpu.dot_dimension_numbers<[1], [0], [0], [1], [0, 0, 1, 1], [], []>} : vector<8x32xbf16>, vector<32x8xbf16>, vector<8x8xf32> -> vector<8x8xf32>
      %c0_53 = arith.constant 0 : index
      %c0_54 = arith.constant 0 : index
      %c0_55 = arith.constant 0 : index
      %47 = vector.load %arg5[%c0_53, %c0_54, %c0_55] : memref<4x1x8xf32, #tpu.memory_space<vmem>>, vector<1x1x8xf32>
      %48 = vector.shape_cast %47 : vector<1x1x8xf32> to vector<1x8xf32>
      %49 = vector.broadcast %48 : vector<1x8xf32> to vector<8x8xf32>
      %50 = arith.addf %46, %49 : vector<8x8xf32>
      %51 = arith.truncf %50 : vector<8x8xf32> to vector<8x8xbf16>
      %c0_56 = arith.constant 0 : index
      %c0_57 = arith.constant 0 : index
      %c0_58 = arith.constant 0 : index
      %52 = vector.load %arg13[%c0_56, %c0_57, %c0_58] : memref<4x8x8xbf16, #tpu.memory_space<vmem>>, vector<1x8x8xbf16>
      %53 = vector.shape_cast %52 : vector<1x8x8xbf16> to vector<8x8xbf16>
      %54 = vector.shape_cast %51 : vector<8x8xbf16> to vector<1x8x8xbf16>
      tpu.vector_store %arg13[%c0_56, %c0_57, %c0_58], %54 {strides = array<i32>} : memref<4x8x8xbf16, #tpu.memory_space<vmem>>, vector<1x8x8xbf16>,
      %c1 = arith.constant 1 : index
      %c0_59 = arith.constant 0 : index
      %c0_60 = arith.constant 0 : index
      %55 = vector.load %arg4[%c1, %c0_59, %c0_60] : memref<4x32x8xbf16, #tpu.memory_space<vmem>>, vector<1x32x8xbf16>
      %56 = vector.shape_cast %55 : vector<1x32x8xbf16> to vector<32x8xbf16>
      %cst_61 = arith.constant dense<0.000000e+00> : vector<8x8xf32>
      %57 = tpu.matmul %43, %56, %cst_61 {dimension_numbers = #tpu.dot_dimension_numbers<[1], [0], [0], [1], [0, 0, 1, 1], [], []>} : vector<8x32xbf16>, vector<32x8xbf16>, vector<8x8xf32> -> vector<8x8xf32>
      %c1_62 = arith.constant 1 : index
      %c0_63 = arith.constant 0 : index
      %c0_64 = arith.constant 0 : index
      %58 = vector.load %arg5[%c1_62, %c0_63, %c0_64] : memref<4x1x8xf32, #tpu.memory_space<vmem>>, vector<1x1x8xf32>
      %59 = vector.shape_cast %58 : vector<1x1x8xf32> to vector<1x8xf32>
      %60 = vector.broadcast %59 : vector<1x8xf32> to vector<8x8xf32>
      %61 = arith.addf %57, %60 : vector<8x8xf32>
      %62 = arith.truncf %61 : vector<8x8xf32> to vector<8x8xbf16>
      %c1_65 = arith.constant 1 : index
      %c0_66 = arith.constant 0 : index
      %c0_67 = arith.constant 0 : index
      %63 = vector.load %arg13[%c1_65, %c0_66, %c0_67] : memref<4x8x8xbf16, #tpu.memory_space<vmem>>, vector<1x8x8xbf16>
      %64 = vector.shape_cast %63 : vector<1x8x8xbf16> to vector<8x8xbf16>
      %65 = vector.shape_cast %62 : vector<8x8xbf16> to vector<1x8x8xbf16>
      tpu.vector_store %arg13[%c1_65, %c0_66, %c0_67], %65 {strides = array<i32>} : memref<4x8x8xbf16, #tpu.memory_space<vmem>>, vector<1x8x8xbf16>,
      %c2 = arith.constant 2 : index
      %c0_68 = arith.constant 0 : index
      %c0_69 = arith.constant 0 : index
      %66 = vector.load %arg4[%c2, %c0_68, %c0_69] : memref<4x32x8xbf16, #tpu.memory_space<vmem>>, vector<1x32x8xbf16>
      %67 = vector.shape_cast %66 : vector<1x32x8xbf16> to vector<32x8xbf16>
      %cst_70 = arith.constant dense<0.000000e+00> : vector<8x8xf32>
      %68 = tpu.matmul %43, %67, %cst_70 {dimension_numbers = #tpu.dot_dimension_numbers<[1], [0], [0], [1], [0, 0, 1, 1], [], []>} : vector<8x32xbf16>, vector<32x8xbf16>, vector<8x8xf32> -> vector<8x8xf32>
      %c2_71 = arith.constant 2 : index
      %c0_72 = arith.constant 0 : index
      %c0_73 = arith.constant 0 : index
      %69 = vector.load %arg5[%c2_71, %c0_72, %c0_73] : memref<4x1x8xf32, #tpu.memory_space<vmem>>, vector<1x1x8xf32>
      %70 = vector.shape_cast %69 : vector<1x1x8xf32> to vector<1x8xf32>
      %71 = vector.broadcast %70 : vector<1x8xf32> to vector<8x8xf32>
      %72 = arith.addf %68, %71 : vector<8x8xf32>
      %73 = arith.truncf %72 : vector<8x8xf32> to vector<8x8xbf16>
      %c2_74 = arith.constant 2 : index
      %c0_75 = arith.constant 0 : index
      %c0_76 = arith.constant 0 : index
      %74 = vector.load %arg13[%c2_74, %c0_75, %c0_76] : memref<4x8x8xbf16, #tpu.memory_space<vmem>>, vector<1x8x8xbf16>
      %75 = vector.shape_cast %74 : vector<1x8x8xbf16> to vector<8x8xbf16>
      %76 = vector.shape_cast %73 : vector<8x8xbf16> to vector<1x8x8xbf16>
      tpu.vector_store %arg13[%c2_74, %c0_75, %c0_76], %76 {strides = array<i32>} : memref<4x8x8xbf16, #tpu.memory_space<vmem>>, vector<1x8x8xbf16>,
      %c3 = arith.constant 3 : index
      %c0_77 = arith.constant 0 : index
      %c0_78 = arith.constant 0 : index
      %77 = vector.load %arg4[%c3, %c0_77, %c0_78] : memref<4x32x8xbf16, #tpu.memory_space<vmem>>, vector<1x32x8xbf16>
      %78 = vector.shape_cast %77 : vector<1x32x8xbf16> to vector<32x8xbf16>
      %cst_79 = arith.constant dense<0.000000e+00> : vector<8x8xf32>
      %79 = tpu.matmul %43, %78, %cst_79 {dimension_numbers = #tpu.dot_dimension_numbers<[1], [0], [0], [1], [0, 0, 1, 1], [], []>} : vector<8x32xbf16>, vector<32x8xbf16>, vector<8x8xf32> -> vector<8x8xf32>
      %c3_80 = arith.constant 3 : index
      %c0_81 = arith.constant 0 : index
      %c0_82 = arith.constant 0 : index
      %80 = vector.load %arg5[%c3_80, %c0_81, %c0_82] : memref<4x1x8xf32, #tpu.memory_space<vmem>>, vector<1x1x8xf32>
      %81 = vector.shape_cast %80 : vector<1x1x8xf32> to vector<1x8xf32>
      %82 = vector.broadcast %81 : vector<1x8xf32> to vector<8x8xf32>
      %83 = arith.addf %79, %82 : vector<8x8xf32>
      %84 = arith.truncf %83 : vector<8x8xf32> to vector<8x8xbf16>
      %c3_83 = arith.constant 3 : index
      %c0_84 = arith.constant 0 : index
      %c0_85 = arith.constant 0 : index
      %85 = vector.load %arg13[%c3_83, %c0_84, %c0_85] : memref<4x8x8xbf16, #tpu.memory_space<vmem>>, vector<1x8x8xbf16>
      %86 = vector.shape_cast %85 : vector<1x8x8xbf16> to vector<8x8xbf16>
      %87 = vector.shape_cast %84 : vector<8x8xbf16> to vector<1x8x8xbf16>
      tpu.vector_store %arg13[%c3_83, %c0_84, %c0_85], %87 {strides = array<i32>} : memref<4x8x8xbf16, #tpu.memory_space<vmem>>, vector<1x8x8xbf16>,
    } else {
    }
    %c0 = arith.constant 0 : index
    %c0_1 = arith.constant 0 : index
    %c0_2 = arith.constant 0 : index
    %3 = vector.load %arg13[%c0, %c0_1, %c0_2] : memref<4x8x8xbf16, #tpu.memory_space<vmem>>, vector<4x8x8xbf16>
    %c0_3 = arith.constant 0 : index
    %c0_4 = arith.constant 0 : index
    %c0_5 = arith.constant 0 : index
    %c0_6 = arith.constant 0 : index
    %4 = vector.load %arg6[%c0_3, %c0_4, %c0_5, %c0_6] : memref<1x4x16x8xbf16, #tpu.memory_space<vmem>>, vector<1x4x16x8xbf16>
    %5 = vector.shape_cast %4 : vector<1x4x16x8xbf16> to vector<4x16x8xbf16>
    "tpu.trace_start"() <{level = 10 : i32, message = "hqd,hkd->hqk"}> : () -> ()
    %cst = arith.constant dense<0.000000e+00> : vector<4x8x16xf32>
    %6 = tpu.matmul %3, %5, %cst {dimension_numbers = #tpu.dot_dimension_numbers<[2], [2], [1], [1], [0, 0, 0, 1, 1, 1], [0], [0]>} : vector<4x8x8xbf16>, vector<4x16x8xbf16>, vector<4x8x16xf32> -> vector<4x8x16xf32>
    "tpu.trace_stop"() : () -> ()
    %c0_7 = arith.constant 0 : index
    %c0_8 = arith.constant 0 : index
    %c0_9 = arith.constant 0 : index
    %7 = vector.load %arg14[%c0_7, %c0_8, %c0_9] : memref<4x8x1xf32, #tpu.memory_space<vmem>>, vector<4x8x1xf32>
    %cst_10 = arith.constant dense<0xFF800000> : vector<4x8xf32>
    %8 = vector.multi_reduction <maximumf>, %6, %cst_10 [2] : vector<4x8x16xf32> to vector<4x8xf32>
    %9 = vector.shape_cast %8 : vector<4x8xf32> to vector<4x8x1xf32>
    %10 = arith.maximumf %7, %9 : vector<4x8x1xf32>
    %11 = arith.subf %7, %10 : vector<4x8x1xf32>
    %12 = math.exp %11 : vector<4x8x1xf32>
    %13 = vector.broadcast %10 : vector<4x8x1xf32> to vector<4x8x16xf32>
    %14 = arith.subf %6, %13 : vector<4x8x16xf32>
    %15 = math.exp %14 : vector<4x8x16xf32>
    %c0_11 = arith.constant 0 : index
    %c0_12 = arith.constant 0 : index
    %c0_13 = arith.constant 0 : index
    %16 = vector.load %arg15[%c0_11, %c0_12, %c0_13] : memref<4x8x1xf32, #tpu.memory_space<vmem>>, vector<4x8x1xf32>
    %17 = arith.mulf %12, %16 : vector<4x8x1xf32>
    %cst_14 = arith.constant dense<0.000000e+00> : vector<4x8xf32>
    %18 = vector.multi_reduction <add>, %15, %cst_14 [2] : vector<4x8x16xf32> to vector<4x8xf32>
    %19 = vector.shape_cast %18 : vector<4x8xf32> to vector<4x8x1xf32>
    %20 = arith.addf %17, %19 : vector<4x8x1xf32>
    %c0_15 = arith.constant 0 : index
    %c0_16 = arith.constant 0 : index
    %c0_17 = arith.constant 0 : index
    %21 = vector.load %arg15[%c0_15, %c0_16, %c0_17] : memref<4x8x1xf32, #tpu.memory_space<vmem>>, vector<4x8x1xf32>
    tpu.vector_store %arg15[%c0_15, %c0_16, %c0_17], %20 {strides = array<i32>} : memref<4x8x1xf32, #tpu.memory_space<vmem>>, vector<4x8x1xf32>,
    %c0_18 = arith.constant 0 : index
    %c0_19 = arith.constant 0 : index
    %c0_20 = arith.constant 0 : index
    %22 = vector.load %arg16[%c0_18, %c0_19, %c0_20] : memref<4x8x8xf32, #tpu.memory_space<vmem>>, vector<4x8x8xf32>
    %23 = vector.broadcast %12 : vector<4x8x1xf32> to vector<4x8x8xf32>
    %24 = arith.mulf %23, %22 : vector<4x8x8xf32>
    %25 = arith.truncf %15 : vector<4x8x16xf32> to vector<4x8x16xbf16>
    %c0_21 = arith.constant 0 : index
    %c0_22 = arith.constant 0 : index
    %c0_23 = arith.constant 0 : index
    %c0_24 = arith.constant 0 : index
    %26 = vector.load %arg7[%c0_21, %c0_22, %c0_23, %c0_24] : memref<1x4x16x8xbf16, #tpu.memory_space<vmem>>, vector<1x4x16x8xbf16>
    %27 = vector.shape_cast %26 : vector<1x4x16x8xbf16> to vector<4x16x8xbf16>
    "tpu.trace_start"() <{level = 10 : i32, message = "hqk,hkd->hqd"}> : () -> ()
    %cst_25 = arith.constant dense<0.000000e+00> : vector<4x8x8xf32>
    %28 = tpu.matmul %25, %27, %cst_25 {dimension_numbers = #tpu.dot_dimension_numbers<[2], [1], [1], [2], [0, 0, 0, 1, 1, 2], [0], [0]>} : vector<4x8x16xbf16>, vector<4x16x8xbf16>, vector<4x8x8xf32> -> vector<4x8x8xf32>
    "tpu.trace_stop"() : () -> ()
    %29 = arith.addf %24, %28 : vector<4x8x8xf32>
    %c0_26 = arith.constant 0 : index
    %c0_27 = arith.constant 0 : index
    %c0_28 = arith.constant 0 : index
    %30 = vector.load %arg16[%c0_26, %c0_27, %c0_28] : memref<4x8x8xf32, #tpu.memory_space<vmem>>, vector<4x8x8xf32>
    tpu.vector_store %arg16[%c0_26, %c0_27, %c0_28], %29 {strides = array<i32>} : memref<4x8x8xf32, #tpu.memory_space<vmem>>, vector<4x8x8xf32>,
    %c0_29 = arith.constant 0 : index
    %c0_30 = arith.constant 0 : index
    %c0_31 = arith.constant 0 : index
    %31 = vector.load %arg14[%c0_29, %c0_30, %c0_31] : memref<4x8x1xf32, #tpu.memory_space<vmem>>, vector<4x8x1xf32>
    tpu.vector_store %arg14[%c0_29, %c0_30, %c0_31], %10 {strides = array<i32>} : memref<4x8x1xf32, #tpu.memory_space<vmem>>, vector<4x8x1xf32>,
    %c0_i32_32 = arith.constant 0 : i32
    %32 = arith.cmpi eq, %arg2, %c0_i32_32 : i32
    %33 = arith.extui %32 : i1 to i32
    %c0_i32_33 = arith.constant 0 : i32
    %34 = arith.cmpi ne, %33, %c0_i32_33 : i32
    scf.if %34 {
      %c0_34 = arith.constant 0 : index
      %c0_35 = arith.constant 0 : index
      %c0_36 = arith.constant 0 : index
      %35 = vector.load %arg15[%c0_34, %c0_35, %c0_36] : memref<4x8x1xf32, #tpu.memory_space<vmem>>, vector<4x8x1xf32>
      %36 = tpu.reciprocal %35 {approx = true} : vector<4x8x1xf32> -> vector<4x8x1xf32>
      %c0_37 = arith.constant 0 : index
      %c0_38 = arith.constant 0 : index
      %c0_39 = arith.constant 0 : index
      %37 = vector.load %arg16[%c0_37, %c0_38, %c0_39] : memref<4x8x8xf32, #tpu.memory_space<vmem>>, vector<1x8x8xf32>
      %38 = vector.shape_cast %37 : vector<1x8x8xf32> to vector<8x8xf32>
      %39 = vector.extract_strided_slice %36 {offsets = [0, 0, 0], sizes = [1, 8, 1], strides = [1, 1, 1]} : vector<4x8x1xf32> to vector<1x8x1xf32>
      %40 = vector.shape_cast %39 : vector<1x8x1xf32> to vector<8x1xf32>
      %41 = vector.broadcast %40 : vector<8x1xf32> to vector<8x8xf32>
      %42 = arith.mulf %38, %41 : vector<8x8xf32>
      %c0_40 = arith.constant 0 : index
      %c0_41 = arith.constant 0 : index
      %43 = vector.load %arg17[%c0_40, %c0_41] : memref<8x32xf32, #tpu.memory_space<vmem>>, vector<8x8xf32>
      tpu.vector_store %arg17[%c0_40, %c0_41], %42 {strides = array<i32>} : memref<8x32xf32, #tpu.memory_space<vmem>>, vector<8x8xf32>,
      %c1 = arith.constant 1 : index
      %c0_42 = arith.constant 0 : index
      %c0_43 = arith.constant 0 : index
      %44 = vector.load %arg16[%c1, %c0_42, %c0_43] : memref<4x8x8xf32, #tpu.memory_space<vmem>>, vector<1x8x8xf32>
      %45 = vector.shape_cast %44 : vector<1x8x8xf32> to vector<8x8xf32>
      %46 = vector.extract_strided_slice %36 {offsets = [1, 0, 0], sizes = [1, 8, 1], strides = [1, 1, 1]} : vector<4x8x1xf32> to vector<1x8x1xf32>
      %47 = vector.shape_cast %46 : vector<1x8x1xf32> to vector<8x1xf32>
      %48 = vector.broadcast %47 : vector<8x1xf32> to vector<8x8xf32>
      %49 = arith.mulf %45, %48 : vector<8x8xf32>
      %c0_44 = arith.constant 0 : index
      %c8 = arith.constant 8 : index
      %50 = vector.load %arg17[%c0_44, %c8] : memref<8x32xf32, #tpu.memory_space<vmem>>, vector<8x8xf32>
      tpu.vector_store %arg17[%c0_44, %c8], %49 {strides = array<i32>} : memref<8x32xf32, #tpu.memory_space<vmem>>, vector<8x8xf32>,
      %c2 = arith.constant 2 : index
      %c0_45 = arith.constant 0 : index
      %c0_46 = arith.constant 0 : index
      %51 = vector.load %arg16[%c2, %c0_45, %c0_46] : memref<4x8x8xf32, #tpu.memory_space<vmem>>, vector<1x8x8xf32>
      %52 = vector.shape_cast %51 : vector<1x8x8xf32> to vector<8x8xf32>
      %53 = vector.extract_strided_slice %36 {offsets = [2, 0, 0], sizes = [1, 8, 1], strides = [1, 1, 1]} : vector<4x8x1xf32> to vector<1x8x1xf32>
      %54 = vector.shape_cast %53 : vector<1x8x1xf32> to vector<8x1xf32>
      %55 = vector.broadcast %54 : vector<8x1xf32> to vector<8x8xf32>
      %56 = arith.mulf %52, %55 : vector<8x8xf32>
      %c0_47 = arith.constant 0 : index
      %c16 = arith.constant 16 : index
      %57 = vector.load %arg17[%c0_47, %c16] : memref<8x32xf32, #tpu.memory_space<vmem>>, vector<8x8xf32>
      tpu.vector_store %arg17[%c0_47, %c16], %56 {strides = array<i32>} : memref<8x32xf32, #tpu.memory_space<vmem>>, vector<8x8xf32>,
      %c3 = arith.constant 3 : index
      %c0_48 = arith.constant 0 : index
      %c0_49 = arith.constant 0 : index
      %58 = vector.load %arg16[%c3, %c0_48, %c0_49] : memref<4x8x8xf32, #tpu.memory_space<vmem>>, vector<1x8x8xf32>
      %59 = vector.shape_cast %58 : vector<1x8x8xf32> to vector<8x8xf32>
      %60 = vector.extract_strided_slice %36 {offsets = [3, 0, 0], sizes = [1, 8, 1], strides = [1, 1, 1]} : vector<4x8x1xf32> to vector<1x8x1xf32>
      %61 = vector.shape_cast %60 : vector<1x8x1xf32> to vector<8x1xf32>
      %62 = vector.broadcast %61 : vector<8x1xf32> to vector<8x8xf32>
      %63 = arith.mulf %59, %62 : vector<8x8xf32>
      %c0_50 = arith.constant 0 : index
      %c24 = arith.constant 24 : index
      %64 = vector.load %arg17[%c0_50, %c24] : memref<8x32xf32, #tpu.memory_space<vmem>>, vector<8x8xf32>
      tpu.vector_store %arg17[%c0_50, %c24], %63 {strides = array<i32>} : memref<8x32xf32, #tpu.memory_space<vmem>>, vector<8x8xf32>,
      %c0_51 = arith.constant 0 : index
      %c0_52 = arith.constant 0 : index
      %65 = vector.load %arg17[%c0_51, %c0_52] : memref<8x32xf32, #tpu.memory_space<vmem>>, vector<8x32xf32>
      %66 = arith.truncf %65 : vector<8x32xf32> to vector<8x32xbf16>
      %c0_53 = arith.constant 0 : index
      %c0_54 = arith.constant 0 : index
      %67 = vector.load %arg8[%c0_53, %c0_54] : memref<32x32xbf16, #tpu.memory_space<vmem>>, vector<32x32xbf16>
      %cst_55 = arith.constant dense<0.000000e+00> : vector<8x32xf32>
      %68 = tpu.matmul %66, %67, %cst_55 {dimension_numbers = #tpu.dot_dimension_numbers<[1], [0], [0], [1], [0, 0, 1, 1], [], []>} : vector<8x32xbf16>, vector<32x32xbf16>, vector<8x32xf32> -> vector<8x32xf32>
      %c0_56 = arith.constant 0 : index
      %c0_57 = arith.constant 0 : index
      %69 = vector.load %arg9[%c0_56, %c0_57] : memref<1x32xf32, #tpu.memory_space<vmem>>, vector<1x32xf32>
      %70 = vector.broadcast %69 : vector<1x32xf32> to vector<8x32xf32>
      %71 = arith.addf %68, %70 : vector<8x32xf32>
      %c0_58 = arith.constant 0 : index
      %c0_59 = arith.constant 0 : index
      %c0_60 = arith.constant 0 : index
      %72 = vector.load %arg3[%c0_58, %c0_59, %c0_60] : memref<1x8x32xf32, #tpu.memory_space<vmem>>, vector<1x8x32xf32>
      %73 = vector.shape_cast %72 : vector<1x8x32xf32> to vector<8x32xf32>
      %74 = arith.addf %73, %71 : vector<8x32xf32>
      %cst_61 = arith.constant dense<0.000000e+00> : vector<8xf32>
      %75 = vector.multi_reduction <add>, %74, %cst_61 [1] : vector<8x32xf32> to vector<8xf32>
      %76 = vector.shape_cast %75 : vector<8xf32> to vector<8x1xf32>
      %cst_62 = arith.constant 3.200000e+01 : f32
      %77 = vector.broadcast %cst_62 : f32 to vector<8x1xf32>
      %78 = arith.divf %76, %77 : vector<8x1xf32>
      %79 = vector.broadcast %78 : vector<8x1xf32> to vector<8x32xf32>
      %80 = arith.subf %74, %79 : vector<8x32xf32>
      %81 = arith.mulf %80, %80 : vector<8x32xf32>
      %cst_63 = arith.constant dense<0.000000e+00> : vector<8xf32>
      %82 = vector.multi_reduction <add>, %81, %cst_63 [1] : vector<8x32xf32> to vector<8xf32>
      %83 = vector.shape_cast %82 : vector<8xf32> to vector<8x1xf32>
      %cst_64 = arith.constant 3.200000e+01 : f32
      %84 = vector.broadcast %cst_64 : f32 to vector<8x1xf32>
      %85 = arith.divf %83, %84 : vector<8x1xf32>
      %86 = vector.broadcast %78 : vector<8x1xf32> to vector<8x32xf32>
      %87 = arith.subf %74, %86 : vector<8x32xf32>
      %cst_65 = arith.constant 9.99999974E-6 : f32
      %88 = vector.broadcast %cst_65 : f32 to vector<8x1xf32>
      %89 = arith.addf %85, %88 : vector<8x1xf32>
      %90 = math.rsqrt %89 : vector<8x1xf32>
      %91 = vector.broadcast %90 : vector<8x1xf32> to vector<8x32xf32>
      %92 = arith.mulf %87, %91 : vector<8x32xf32>
      %c0_66 = arith.constant 0 : index
      %c0_67 = arith.constant 0 : index
      %93 = vector.load %arg10[%c0_66, %c0_67] : memref<1x32xf32, #tpu.memory_space<vmem>>, vector<1x32xf32>
      %94 = vector.broadcast %93 : vector<1x32xf32> to vector<8x32xf32>
      %95 = arith.mulf %92, %94 : vector<8x32xf32>
      %c0_68 = arith.constant 0 : index
      %c0_69 = arith.constant 0 : index
      %96 = vector.load %arg11[%c0_68, %c0_69] : memref<1x32xf32, #tpu.memory_space<vmem>>, vector<1x32xf32>
      %97 = vector.broadcast %96 : vector<1x32xf32> to vector<8x32xf32>
      %98 = arith.addf %95, %97 : vector<8x32xf32>
      %c0_70 = arith.constant 0 : index
      %c0_71 = arith.constant 0 : index
      %c0_72 = arith.constant 0 : index
      %99 = vector.load %arg12[%c0_70, %c0_71, %c0_72] : memref<1x8x32xf32, #tpu.memory_space<vmem>>, vector<1x8x32xf32>
      %100 = vector.shape_cast %99 : vector<1x8x32xf32> to vector<8x32xf32>
      %101 = vector.shape_cast %98 : vector<8x32xf32> to vector<1x8x32xf32>
      tpu.vector_store %arg12[%c0_70, %c0_71, %c0_72], %101 {strides = array<i32>} : memref<1x8x32xf32, #tpu.memory_space<vmem>>, vector<1x8x32xf32>,
    } else {
    }
    return
  }
  func.func @transform_0(%arg0: i32, %arg1: i32, %arg2: i32) -> (i32, i32, i32) {
    %c0_i32 = arith.constant 0 : i32
    %c0_i32_0 = arith.constant 0 : i32
    return %arg0, %arg1, %c0_i32 : i32, i32, i32
  }
  func.func @transform_1(%arg0: i32, %arg1: i32, %arg2: i32) -> (i32, i32, i32) {
    %c0_i32 = arith.constant 0 : i32
    %c0_i32_0 = arith.constant 0 : i32
    %c0_i32_1 = arith.constant 0 : i32
    %c0_i32_2 = arith.constant 0 : i32
    return %c0_i32, %c0_i32_0, %c0_i32_1 : i32, i32, i32
  }
  func.func @transform_2(%arg0: i32, %arg1: i32, %arg2: i32) -> (i32, i32, i32) {
    %c0_i32 = arith.constant 0 : i32
    %c0_i32_0 = arith.constant 0 : i32
    %c0_i32_1 = arith.constant 0 : i32
    %c0_i32_2 = arith.constant 0 : i32
    return %c0_i32, %c0_i32_0, %c0_i32_1 : i32, i32, i32
  }
  func.func @transform_3(%arg0: i32, %arg1: i32, %arg2: i32) -> (i32, i32, i32, i32) {
    %c0_i32 = arith.constant 0 : i32
    %c0_i32_0 = arith.constant 0 : i32
    %c0_i32_1 = arith.constant 0 : i32
    return %arg0, %c0_i32, %arg2, %c0_i32_0 : i32, i32, i32, i32
  }
  func.func @transform_4(%arg0: i32, %arg1: i32, %arg2: i32) -> (i32, i32, i32, i32) {
    %c0_i32 = arith.constant 0 : i32
    %c0_i32_0 = arith.constant 0 : i32
    %c0_i32_1 = arith.constant 0 : i32
    return %arg0, %c0_i32, %arg2, %c0_i32_0 : i32, i32, i32, i32
  }
  func.func @transform_5(%arg0: i32, %arg1: i32, %arg2: i32) -> (i32, i32) {
    %c0_i32 = arith.constant 0 : i32
    %c0_i32_0 = arith.constant 0 : i32
    %c0_i32_1 = arith.constant 0 : i32
    return %c0_i32, %c0_i32_0 : i32, i32
  }
  func.func @transform_6(%arg0: i32, %arg1: i32, %arg2: i32) -> (i32, i32) {
    %c0_i32 = arith.constant 0 : i32
    %c0_i32_0 = arith.constant 0 : i32
    %c0_i32_1 = arith.constant 0 : i32
    return %c0_i32, %c0_i32_0 : i32, i32
  }
  func.func @transform_7(%arg0: i32, %arg1: i32, %arg2: i32) -> (i32, i32) {
    %c0_i32 = arith.constant 0 : i32
    %c0_i32_0 = arith.constant 0 : i32
    %c0_i32_1 = arith.constant 0 : i32
    return %c0_i32, %c0_i32_0 : i32, i32
  }
  func.func @transform_8(%arg0: i32, %arg1: i32, %arg2: i32) -> (i32, i32) {
    %c0_i32 = arith.constant 0 : i32
    %c0_i32_0 = arith.constant 0 : i32
    %c0_i32_1 = arith.constant 0 : i32
    return %c0_i32, %c0_i32_0 : i32, i32
  }
  func.func @transform_9(%arg0: i32, %arg1: i32, %arg2: i32) -> (i32, i32, i32) {
    %c0_i32 = arith.constant 0 : i32
    %c0_i32_0 = arith.constant 0 : i32
    return %arg0, %arg1, %c0_i32 : i32, i32, i32
  }
}

module attributes {stable_mosaic.version = 11 : i64} {
  func.func @_ffn_block_kernel(%arg0: i32, %arg1: i32, %arg2: memref<16x32xf32, #tpu.memory_space<vmem>>, %arg3: memref<32x64xbf16, #tpu.memory_space<vmem>>, %arg4: memref<1x64xf32, #tpu.memory_space<vmem>>, %arg5: memref<64x32xbf16, #tpu.memory_space<vmem>>, %arg6: memref<1x32xf32, #tpu.memory_space<vmem>>, %arg7: memref<1x32xf32, #tpu.memory_space<vmem>>, %arg8: memref<1x32xf32, #tpu.memory_space<vmem>>, %arg9: memref<16x32xf32, #tpu.memory_space<vmem>>, %arg10: memref<16x32xf32, #tpu.memory_space<vmem>>) attributes {dimension_semantics = [#tpu.dimension_semantics<parallel>, #tpu.dimension_semantics<arbitrary>], iteration_bounds = array<i64: 1, 1>, scalar_prefetch = 0 : i64, scratch_operands = 1 : i64, tpu.core_type = #tpu.core_type<tc>, window_params = [{transform_indices = @transform_0, window_bounds = array<i64: 16, 32>}, {pipeline_mode = #tpu.pipeline_mode<synchronous>, transform_indices = @transform_1, window_bounds = array<i64: 32, 64>}, {pipeline_mode = #tpu.pipeline_mode<synchronous>, transform_indices = @transform_2, window_bounds = array<i64: 1, 64>}, {pipeline_mode = #tpu.pipeline_mode<synchronous>, transform_indices = @transform_3, window_bounds = array<i64: 64, 32>}, {pipeline_mode = #tpu.pipeline_mode<synchronous>, transform_indices = @transform_4, window_bounds = array<i64: 1, 32>}, {pipeline_mode = #tpu.pipeline_mode<synchronous>, transform_indices = @transform_5, window_bounds = array<i64: 1, 32>}, {pipeline_mode = #tpu.pipeline_mode<synchronous>, transform_indices = @transform_6, window_bounds = array<i64: 1, 32>}, {transform_indices = @transform_7, window_bounds = array<i64: 16, 32>}]} {
    %c0_i32 = arith.constant 0 : i32
    %0 = arith.cmpi eq, %arg1, %c0_i32 : i32
    %1 = arith.extui %0 : i1 to i32
    %c0_i32_0 = arith.constant 0 : i32
    %2 = arith.cmpi ne, %1, %c0_i32_0 : i32
    scf.if %2 {
      %cst_16 = arith.constant 0.000000e+00 : f32
      %21 = vector.broadcast %cst_16 : f32 to vector<16x32xf32>
      %c0_17 = arith.constant 0 : index
      %c0_18 = arith.constant 0 : index
      %22 = vector.load %arg10[%c0_17, %c0_18] : memref<16x32xf32, #tpu.memory_space<vmem>>, vector<16x32xf32>
      tpu.vector_store %arg10[%c0_17, %c0_18], %21 {strides = array<i32>} : memref<16x32xf32, #tpu.memory_space<vmem>>, vector<16x32xf32>,
    } else {
    }
    %c0 = arith.constant 0 : index
    %c0_1 = arith.constant 0 : index
    %3 = vector.load %arg2[%c0, %c0_1] : memref<16x32xf32, #tpu.memory_space<vmem>>, vector<16x32xf32>
    %4 = arith.truncf %3 : vector<16x32xf32> to vector<16x32xbf16>
    %c0_2 = arith.constant 0 : index
    %c0_3 = arith.constant 0 : index
    %5 = vector.load %arg3[%c0_2, %c0_3] : memref<32x64xbf16, #tpu.memory_space<vmem>>, vector<32x64xbf16>
    %cst = arith.constant dense<0.000000e+00> : vector<16x64xf32>
    %6 = tpu.matmul %4, %5, %cst {dimension_numbers = #tpu.dot_dimension_numbers<[1], [0], [0], [1], [0, 0, 1, 1], [], []>} : vector<16x32xbf16>, vector<32x64xbf16>, vector<16x64xf32> -> vector<16x64xf32>
    %c0_4 = arith.constant 0 : index
    %c0_5 = arith.constant 0 : index
    %7 = vector.load %arg4[%c0_4, %c0_5] : memref<1x64xf32, #tpu.memory_space<vmem>>, vector<1x64xf32>
    %8 = vector.broadcast %7 : vector<1x64xf32> to vector<16x64xf32>
    %9 = arith.addf %6, %8 : vector<16x64xf32>
    %cst_6 = arith.constant 0.000000e+00 : f32
    %10 = vector.broadcast %cst_6 : f32 to vector<16x64xf32>
    %11 = arith.maximumf %9, %10 : vector<16x64xf32>
    %c0_7 = arith.constant 0 : index
    %c0_8 = arith.constant 0 : index
    %12 = vector.load %arg10[%c0_7, %c0_8] : memref<16x32xf32, #tpu.memory_space<vmem>>, vector<16x32xf32>
    %13 = arith.truncf %11 : vector<16x64xf32> to vector<16x64xbf16>
    %c0_9 = arith.constant 0 : index
    %c0_10 = arith.constant 0 : index
    %14 = vector.load %arg5[%c0_9, %c0_10] : memref<64x32xbf16, #tpu.memory_space<vmem>>, vector<64x32xbf16>
    %cst_11 = arith.constant dense<0.000000e+00> : vector<16x32xf32>
    %15 = tpu.matmul %13, %14, %cst_11 {dimension_numbers = #tpu.dot_dimension_numbers<[1], [0], [0], [1], [0, 0, 1, 1], [], []>} : vector<16x64xbf16>, vector<64x32xbf16>, vector<16x32xf32> -> vector<16x32xf32>
    %16 = arith.addf %12, %15 : vector<16x32xf32>
    %c0_12 = arith.constant 0 : index
    %c0_13 = arith.constant 0 : index
    %17 = vector.load %arg10[%c0_12, %c0_13] : memref<16x32xf32, #tpu.memory_space<vmem>>, vector<16x32xf32>
    tpu.vector_store %arg10[%c0_12, %c0_13], %16 {strides = array<i32>} : memref<16x32xf32, #tpu.memory_space<vmem>>, vector<16x32xf32>,
    %c0_i32_14 = arith.constant 0 : i32
    %18 = arith.cmpi eq, %arg1, %c0_i32_14 : i32
    %19 = arith.extui %18 : i1 to i32
    %c0_i32_15 = arith.constant 0 : i32
    %20 = arith.cmpi ne, %19, %c0_i32_15 : i32
    scf.if %20 {
      %c0_16 = arith.constant 0 : index
      %c0_17 = arith.constant 0 : index
      %21 = vector.load %arg2[%c0_16, %c0_17] : memref<16x32xf32, #tpu.memory_space<vmem>>, vector<16x32xf32>
      %c0_18 = arith.constant 0 : index
      %c0_19 = arith.constant 0 : index
      %22 = vector.load %arg10[%c0_18, %c0_19] : memref<16x32xf32, #tpu.memory_space<vmem>>, vector<16x32xf32>
      %23 = arith.addf %21, %22 : vector<16x32xf32>
      %c0_20 = arith.constant 0 : index
      %c0_21 = arith.constant 0 : index
      %24 = vector.load %arg6[%c0_20, %c0_21] : memref<1x32xf32, #tpu.memory_space<vmem>>, vector<1x32xf32>
      %25 = vector.broadcast %24 : vector<1x32xf32> to vector<16x32xf32>
      %26 = arith.addf %23, %25 : vector<16x32xf32>
      %cst_22 = arith.constant dense<0.000000e+00> : vector<16xf32>
      %27 = vector.multi_reduction <add>, %26, %cst_22 [1] : vector<16x32xf32> to vector<16xf32>
      %28 = vector.shape_cast %27 : vector<16xf32> to vector<16x1xf32>
      %cst_23 = arith.constant 3.200000e+01 : f32
      %29 = vector.broadcast %cst_23 : f32 to vector<16x1xf32>
      %30 = arith.divf %28, %29 : vector<16x1xf32>
      %31 = vector.broadcast %30 : vector<16x1xf32> to vector<16x32xf32>
      %32 = arith.subf %26, %31 : vector<16x32xf32>
      %33 = arith.mulf %32, %32 : vector<16x32xf32>
      %cst_24 = arith.constant dense<0.000000e+00> : vector<16xf32>
      %34 = vector.multi_reduction <add>, %33, %cst_24 [1] : vector<16x32xf32> to vector<16xf32>
      %35 = vector.shape_cast %34 : vector<16xf32> to vector<16x1xf32>
      %cst_25 = arith.constant 3.200000e+01 : f32
      %36 = vector.broadcast %cst_25 : f32 to vector<16x1xf32>
      %37 = arith.divf %35, %36 : vector<16x1xf32>
      %38 = vector.broadcast %30 : vector<16x1xf32> to vector<16x32xf32>
      %39 = arith.subf %26, %38 : vector<16x32xf32>
      %cst_26 = arith.constant 9.99999974E-6 : f32
      %40 = vector.broadcast %cst_26 : f32 to vector<16x1xf32>
      %41 = arith.addf %37, %40 : vector<16x1xf32>
      %42 = math.rsqrt %41 : vector<16x1xf32>
      %43 = vector.broadcast %42 : vector<16x1xf32> to vector<16x32xf32>
      %44 = arith.mulf %39, %43 : vector<16x32xf32>
      %c0_27 = arith.constant 0 : index
      %c0_28 = arith.constant 0 : index
      %45 = vector.load %arg7[%c0_27, %c0_28] : memref<1x32xf32, #tpu.memory_space<vmem>>, vector<1x32xf32>
      %46 = vector.broadcast %45 : vector<1x32xf32> to vector<16x32xf32>
      %47 = arith.mulf %44, %46 : vector<16x32xf32>
      %c0_29 = arith.constant 0 : index
      %c0_30 = arith.constant 0 : index
      %48 = vector.load %arg8[%c0_29, %c0_30] : memref<1x32xf32, #tpu.memory_space<vmem>>, vector<1x32xf32>
      %49 = vector.broadcast %48 : vector<1x32xf32> to vector<16x32xf32>
      %50 = arith.addf %47, %49 : vector<16x32xf32>
      %c0_31 = arith.constant 0 : index
      %c0_32 = arith.constant 0 : index
      %51 = vector.load %arg9[%c0_31, %c0_32] : memref<16x32xf32, #tpu.memory_space<vmem>>, vector<16x32xf32>
      tpu.vector_store %arg9[%c0_31, %c0_32], %50 {strides = array<i32>} : memref<16x32xf32, #tpu.memory_space<vmem>>, vector<16x32xf32>,
    } else {
    }
    return
  }
  func.func @transform_0(%arg0: i32, %arg1: i32) -> (i32, i32) {
    %c0_i32 = arith.constant 0 : i32
    %c0_i32_0 = arith.constant 0 : i32
    return %arg0, %c0_i32 : i32, i32
  }
  func.func @transform_1(%arg0: i32, %arg1: i32) -> (i32, i32) {
    %c0_i32 = arith.constant 0 : i32
    %c0_i32_0 = arith.constant 0 : i32
    return %c0_i32, %arg1 : i32, i32
  }
  func.func @transform_2(%arg0: i32, %arg1: i32) -> (i32, i32) {
    %c0_i32 = arith.constant 0 : i32
    %c0_i32_0 = arith.constant 0 : i32
    return %c0_i32, %arg1 : i32, i32
  }
  func.func @transform_3(%arg0: i32, %arg1: i32) -> (i32, i32) {
    %c0_i32 = arith.constant 0 : i32
    %c0_i32_0 = arith.constant 0 : i32
    return %arg1, %c0_i32 : i32, i32
  }
  func.func @transform_4(%arg0: i32, %arg1: i32) -> (i32, i32) {
    %c0_i32 = arith.constant 0 : i32
    %c0_i32_0 = arith.constant 0 : i32
    %c0_i32_1 = arith.constant 0 : i32
    return %c0_i32, %c0_i32_0 : i32, i32
  }
  func.func @transform_5(%arg0: i32, %arg1: i32) -> (i32, i32) {
    %c0_i32 = arith.constant 0 : i32
    %c0_i32_0 = arith.constant 0 : i32
    %c0_i32_1 = arith.constant 0 : i32
    return %c0_i32, %c0_i32_0 : i32, i32
  }
  func.func @transform_6(%arg0: i32, %arg1: i32) -> (i32, i32) {
    %c0_i32 = arith.constant 0 : i32
    %c0_i32_0 = arith.constant 0 : i32
    %c0_i32_1 = arith.constant 0 : i32
    return %c0_i32, %c0_i32_0 : i32, i32
  }
  func.func @transform_7(%arg0: i32, %arg1: i32) -> (i32, i32) {
    %c0_i32 = arith.constant 0 : i32
    %c0_i32_0 = arith.constant 0 : i32
    return %arg0, %c0_i32 : i32, i32
  }
}

</mosaic_0001>

<bundles_post_ra>
// kernel: decoder_layer.5
= control target key start
LH: loop header
LB: loop body
LE: loop exit
PB: predicated region body
PF: predicated region fallthrough
CT: control target
= control target key end

     0   :  { %s906_s15 = smov 0   ;;  %s908_s16 = smov 0   ;;  %s1046_s0 = inlined_call_operand.vmem [shape: f32[2,8,32], index: 0, kind: input, shape index: {}]   ;;  %s1047_s1 = inlined_call_operand.vmem [shape: bf16[8,32,8], index: 1, kind: input, shape index: {}]   ;;  %s1048_s2 = inlined_call_operand.vmem [shape: f32[8,1,8], index: 2, kind: input, shape index: {}]   ;;  %s1049_s3 = inlined_call_operand.vmem [shape: bf16[2,4,8,8], index: 3, kind: output, shape index: {0}]   ;;  %s1050_s4 = inlined_call_operand.vmem [shape: bf16[2,4,8,8], index: 4, kind: output, shape index: {1}]  }
   0x1   :  { %s910_s17 = smov 0  }
   0x2 LB: > { %s27_s18 = sadd.s32 1, %s875_s16  ;;  %p686_p0 = scmp.ge.s32.totalorder %s879_s17, 1  ;;  %s879_s17 = sphi %s910_s17, %s15_s17   ;;  %s875_s16 = sphi %s908_s16, %s1052_s16   ;;  %s871_s15 = sphi %s906_s15, %s1051_s15  }
   0x3   : > { %p29_p1 = scmp.ge.s32.totalorder %s27_s18, 2  ;;  %p185_p2 = scmp.lt.s32.totalorder %s879_s17, 3 }
   0x5   : > { %s1054_s18 = smov (%p29_p1, %s27_s18), 0  ;;  %p186_p3 = pnand %p686_p0, %p185_p2 }
   0x6   : > { %p224_p4 = scmp.lt.s32.totalorder (!%p186_p3), %s871_s15, 1 }
   0x7   : > { %189 = sbr.rel (%p186_p3) target bundleno = 179 (0xb3), region = 32 }
   0xc   : > { %v810_v0 = vld [vmem:[%s1047_s1 + $0x8] sm:$0xff]  ;;  %v814_v2 = vld [vmem:[%s1047_s1 + $0x18] sm:$0xff]  ;;  %v809_v4 = vld [vmem:[%s1047_s1] sm:$0xff]  ;;  %s1056_s15 = smov (!%p224_p4, %s871_s15), 1  ;;  %vm270_vm0 = vcmask 261120   ;;  %vm288_vm1 = vcmask 60416  }
   0xd   : > { %v812_v1 = vld [vmem:[%s1047_s1 + $0x48] sm:$0xff]  ;;  %v816_v3 = vld [vmem:[%s1047_s1 + $0x58] sm:$0xff]  ;;  %280 = vmatpush.bf16.msra.mxu0 %v810_v0  ;;  %v811_v5 = vld [vmem:[%s1047_s1 + $0x40] sm:$0xff]  ;;  %355 = vmatpush.bf16.msra.mxu2 %v814_v2  ;;  %s687_s9 = sshll.u32 %s1056_s15, 3  ;;  %s807_s11 = sshll.u32 %s1056_s15, 4 }
   0xe   : > { %318 = vmatpush.bf16.msra.mxu1 %v812_v1  ;;  %393 = vmatpush.bf16.msra.mxu3 %v816_v3  ;;  %v813_v6 = vld [vmem:[%s1047_s1 + $0x10] sm:$0xff]  ;;  %v822_v8 = vld [vmem:[%s1047_s1 + $0x38] sm:$0xff]  ;;  %s230_s20 = scalar_lea.vmem %s1046_s0, %s687_s9  ;;  %v818_v10 = vld [vmem:[%s1047_s1 + $0x28] sm:$0xff]  ;;  %s996_s14 = scalar_lea.vmem %s1049_s3, %s807_s11 }
   0xf   : > { %v815_v7 = vld [vmem:[%s1047_s1 + $0x50] sm:$0xff]  ;;  %v824_v9 = vld [vmem:[%s1047_s1 + $0x78] sm:$0xff]  ;;  %v820_v11 = vld [vmem:[%s1047_s1 + $0x68] sm:$0xff]  ;;  %s1001_s21 = scalar_lea.vmem %s1050_s4, %s807_s11 }
  0x10   : > { %v248_v12 = vld [vmem:[%s230_s20] sm:$0xff]  ;;  %v821_v13 = vld [vmem:[%s1047_s1 + $0x30] sm:$0xff] }
  0x11   : > { %281 = vmatpush.bf16.msra.mxu0 %v809_v4  ;;  %356 = vmatpush.bf16.msra.mxu2 %v813_v6  ;;  %v249_v14 = vpack.c.bf16 %v248_v12, %v248_v12  ;;  %v823_v15 = vld [vmem:[%s1047_s1 + $0x70] sm:$0xff]  ;;  %v817_v16 = vld [vmem:[%s1047_s1 + $0x20] sm:$0xff] }
  0x12   : > { %319 = vmatpush.bf16.msra.mxu1 %v811_v5  ;;  %394 = vmatpush.bf16.msra.mxu3 %v815_v7  ;;  %v819_v17 = vld [vmem:[%s1047_s1 + $0x60] sm:$0xff] }
  0x13   : > { %v849_v18 = vld [vmem:[%s1048_s2] ss:$0 sm:$0xff]  ;;  %v850_v19 = vld [vmem:[%s1048_s2 + $0x4] ss:$0 sm:$0xff]  ;;  %v851_v26 = vld [vmem:[%s1048_s2 + $0x1] ss:$0 sm:$0xff] }
  0x14   : > { %700 = vmatmul.msk.bf16.vlgmr.msra.gmra.mxu0 %vm270_vm0, %v249_v14  ;;  %728 = vmatmul.msk.bf16.vlgmr.msra.gmra.mxu2 %vm270_vm0, %v249_v14  ;;  %v852_v27 = vld [vmem:[%s1048_s2 + $0x5] ss:$0 sm:$0xff]  ;;  %v853_v36 = vld [vmem:[%s1048_s2 + $0x2] ss:$0 sm:$0xff]  ;;  %v854_v37 = vld [vmem:[%s1048_s2 + $0x6] ss:$0 sm:$0xff] }
  0x15   : > { %507 = vmatpush.bf16.msrb.mxu2 %v822_v8  ;;  %714 = vmatmul.msk.bf16.vlgmr.msra.gmra.mxu1 %vm270_vm0, %v249_v14  ;;  %v855_v46 = vld [vmem:[%s1048_s2 + $0x3] ss:$0 sm:$0xff]  ;;  %v856_v47 = vld [vmem:[%s1048_s2 + $0x7] ss:$0 sm:$0xff] }
  0x16   : > { %545 = vmatpush.bf16.msrb.mxu3 %v824_v9  ;;  %431 = vmatpush.bf16.msrb.mxu0 %v818_v10 }
  0x17   : > { %743 = vmatmul.msk.bf16.vlgmr.msra.gmra.mxu3 %vm270_vm0, %v249_v14  ;;  %469 = vmatpush.bf16.msrb.mxu1 %v820_v11 }
  0x19   : > { %508 = vmatpush.bf16.msrb.mxu2 %v821_v13 }
  0x1a   : > { %546 = vmatpush.bf16.msrb.mxu3 %v823_v15  ;;  %432 = vmatpush.bf16.msrb.mxu0 %v817_v16 }
  0x1b   : > { %470 = vmatpush.bf16.msrb.mxu1 %v819_v17 }
  0x24   : > { %758 = vmatmul.msk.bf16.vlgmr.msrb.gmra.mxu0 %vm270_vm0, %v249_v14  ;;  %788 = vmatmul.msk.bf16.vlgmr.msrb.gmra.mxu2 %vm270_vm0, %v249_v14 }
  0x25   : > { %773 = vmatmul.msk.bf16.vlgmr.msrb.gmra.mxu1 %vm270_vm0, %v249_v14 }
  0x27   : > { %803 = vmatmul.msk.bf16.vlgmr.msrb.gmra.mxu3 %vm270_vm0, %v249_v14 }
  0x91   : > { %v283_v20 = vpop.f32.mrf.mxu0 }
  0x92   : > { %v321_v21 = vpop.f32.mrf.mxu1  ;;  %v284_v22 = vadd.f32 %v849_v18, %v283_v20 }
  0x93   : > { %v322_v23 = vadd.f32 %v850_v19, %v321_v21 }
  0x94   : > { %v287_v24 = vpack.c.bf16 %v284_v22, %v284_v22 }
  0x95   : > { %v325_v25 = vpack.c.bf16 %v322_v23, %v322_v23 }
  0x96   : > { %289 = vst.msk [vmem:[%s996_s14] sm:$0xf] %vm288_vm1, %v287_v24 }
  0x97   : > { %326 = vst.msk [vmem:[%s1001_s21] sm:$0xf] %vm288_vm1, %v325_v25  ;;  %v358_v28 = vpop.f32.mrf.mxu2 }
  0x98   : > { %v359_v30 = vadd.f32 %v851_v26, %v358_v28 }
  0x99   : > { %v285_v32 = vpop.f32.mrf.mxu0 }
  0x9a   : > { %v396_v29 = vpop.f32.mrf.mxu3  ;;  %v323_v33 = vpop.f32.mrf.mxu1  ;;  %v362_v34 = vpack.c.bf16 %v359_v30, %v359_v30 }
  0x9b   : > { %v397_v31 = vadd.f32 %v852_v27, %v396_v29 }
  0x9c   : > { %729 = vst.msk [vmem:[%s996_s14 + $0x4] sm:$0xf] %vm288_vm1, %v362_v34 }
  0x9d   : > { %v400_v35 = vpack.c.bf16 %v397_v31, %v397_v31 }
  0x9f   : > { %744 = vst.msk [vmem:[%s1001_s21 + $0x4] sm:$0xf] %vm288_vm1, %v400_v35  ;;  %v360_v38 = vpop.f32.mrf.mxu2 }
  0xa1   : > { %v434_v40 = vpop.f32.mrf.mxu0 }
  0xa2   : > { %v398_v39 = vpop.f32.mrf.mxu3  ;;  %v472_v41 = vpop.f32.mrf.mxu1  ;;  %v435_v42 = vadd.f32 %v853_v36, %v434_v40 }
  0xa3   : > { %v473_v43 = vadd.f32 %v854_v37, %v472_v41 }
  0xa4   : > { %v438_v44 = vpack.c.bf16 %v435_v42, %v435_v42 }
  0xa5   : > { %v476_v45 = vpack.c.bf16 %v473_v43, %v473_v43 }
  0xa6   : > { %759 = vst.msk [vmem:[%s996_s14 + $0x8] sm:$0xf] %vm288_vm1, %v438_v44 }
  0xa7   : > { %774 = vst.msk [vmem:[%s1001_s21 + $0x8] sm:$0xf] %vm288_vm1, %v476_v45  ;;  %v510_v48 = vpop.f32.mrf.mxu2 }
  0xa8   : > { %v511_v50 = vadd.f32 %v855_v46, %v510_v48 }
  0xa9   : > { %v436_v52 = vpop.f32.mrf.mxu0 }
  0xaa   : > { %v548_v49 = vpop.f32.mrf.mxu3  ;;  %v474_v53 = vpop.f32.mrf.mxu1  ;;  %v514_v54 = vpack.c.bf16 %v511_v50, %v511_v50 }
  0xab   : > { %v549_v51 = vadd.f32 %v856_v47, %v548_v49 }
  0xac   : > { %789 = vst.msk [vmem:[%s996_s14 + $0xc] sm:$0xf] %vm288_vm1, %v514_v54 }
  0xad   : > { %v552_v55 = vpack.c.bf16 %v549_v51, %v549_v51 }
  0xaf   : > { %804 = vst.msk [vmem:[%s1001_s21 + $0xc] sm:$0xf] %vm288_vm1, %v552_v55  ;;  %v512_v56 = vpop.f32.mrf.mxu2 }
  0xb2   : > { %v550_v57 = vpop.f32.mrf.mxu3 }
  0xb3 PF: > { %s15_s17 = sadd.s32 1, %s879_s17   ;;  %s1051_s15 = smov %s875_s16 }
  0xb4   : > { %p12_p5 = scmp.ge.s32.totalorder %s15_s17, 4   ;;  %s1052_s16 = smov %s1054_s18 }
  0xb6   :  { %14 = sbr.rel (!%p12_p5) target bundleno = 2 (0x2), region = 94 }

// kernel: decoder_layer.7
= control target key start
LH: loop header
LB: loop body
LE: loop exit
PB: predicated region body
PF: predicated region fallthrough
CT: control target
= control target key end

     0   :  { %s963_s15 = smov 0   ;;  %s965_s16 = smov 0   ;;  %s1119_s0 = inlined_call_operand.vmem [shape: f32[2,16,32], index: 0, kind: input, shape index: {}]   ;;  %s1120_s1 = inlined_call_operand.vmem [shape: bf16[8,32,8], index: 1, kind: input, shape index: {}]   ;;  %s1121_s2 = inlined_call_operand.vmem [shape: f32[8,1,8], index: 2, kind: input, shape index: {}]   ;;  %s1122_s3 = inlined_call_operand.vmem [shape: bf16[2,4,16,8], index: 3, kind: output, shape index: {0}]   ;;  %s1123_s4 = inlined_call_operand.vmem [shape: bf16[2,4,16,8], index: 4, kind: output, shape index: {1}]  }
   0x1   :  { %s967_s17 = smov 0  }
   0x2 LB: > { %s27_s18 = sadd.s32 1, %s932_s16  ;;  %p735_p0 = scmp.ge.s32.totalorder %s936_s17, 1  ;;  %s936_s17 = sphi %s967_s17, %s15_s17   ;;  %s932_s16 = sphi %s965_s16, %s1125_s16   ;;  %s928_s15 = sphi %s963_s15, %s1124_s15  }
   0x3   : > { %p29_p1 = scmp.ge.s32.totalorder %s27_s18, 2  ;;  %p188_p2 = scmp.lt.s32.totalorder %s936_s17, 3 }
   0x5   : > { %s1127_s18 = smov (%p29_p1, %s27_s18), 0  ;;  %p189_p3 = pnand %p735_p0, %p188_p2 }
   0x6   : > { %p232_p4 = scmp.lt.s32.totalorder (!%p189_p3), %s928_s15, 1 }
   0x7   : > { %192 = sbr.rel (%p189_p3) target bundleno = 184 (0xb8), region = 32 }
   0xc   : > { %v867_v0 = vld [vmem:[%s1120_s1 + $0x8] sm:$0xff]  ;;  %v871_v2 = vld [vmem:[%s1120_s1 + $0x18] sm:$0xff]  ;;  %v866_v4 = vld [vmem:[%s1120_s1] sm:$0xff]  ;;  %s1129_s15 = smov (!%p232_p4, %s928_s15), 1  ;;  %vm285_vm0 = vcmask 261120   ;;  %vm305_vm1 = vcmask 60416  }
   0xd   : > { %v869_v1 = vld [vmem:[%s1120_s1 + $0x48] sm:$0xff]  ;;  %v873_v3 = vld [vmem:[%s1120_s1 + $0x58] sm:$0xff]  ;;  %295 = vmatpush.bf16.msra.mxu0 %v867_v0  ;;  %v868_v5 = vld [vmem:[%s1120_s1 + $0x40] sm:$0xff]  ;;  %376 = vmatpush.bf16.msra.mxu2 %v871_v2  ;;  %s863_s9 = sshll.u32 %s1129_s15, 4  ;;  %s864_s11 = sshll.u32 %s1129_s15, 5 }
   0xe   : > { %336 = vmatpush.bf16.msra.mxu1 %v869_v1  ;;  %417 = vmatpush.bf16.msra.mxu3 %v873_v3  ;;  %v870_v6 = vld [vmem:[%s1120_s1 + $0x10] sm:$0xff]  ;;  %v879_v8 = vld [vmem:[%s1120_s1 + $0x38] sm:$0xff]  ;;  %s239_s20 = scalar_lea.vmem %s1119_s0, %s863_s9  ;;  %v875_v10 = vld [vmem:[%s1120_s1 + $0x28] sm:$0xff]  ;;  %s1053_s14 = scalar_lea.vmem %s1122_s3, %s864_s11 }
   0xf   : > { %v872_v7 = vld [vmem:[%s1120_s1 + $0x50] sm:$0xff]  ;;  %v881_v9 = vld [vmem:[%s1120_s1 + $0x78] sm:$0xff]  ;;  %v877_v11 = vld [vmem:[%s1120_s1 + $0x68] sm:$0xff]  ;;  %s1058_s21 = scalar_lea.vmem %s1123_s4, %s864_s11 }
  0x10   : > { %v262_v12 = vld [vmem:[%s239_s20] sm:$0xff]  ;;  %v263_v13 = vld [vmem:[%s239_s20 + $0x8] sm:$0xff]  ;;  %v878_v14 = vld [vmem:[%s1120_s1 + $0x30] sm:$0xff] }
  0x11   : > { %296 = vmatpush.bf16.msra.mxu0 %v866_v4  ;;  %v880_v15 = vld [vmem:[%s1120_s1 + $0x70] sm:$0xff]  ;;  %377 = vmatpush.bf16.msra.mxu2 %v870_v6  ;;  %v264_v16 = vpack.c.bf16 %v263_v13, %v262_v12  ;;  %v874_v17 = vld [vmem:[%s1120_s1 + $0x20] sm:$0xff] }
  0x12   : > { %337 = vmatpush.bf16.msra.mxu1 %v868_v5  ;;  %418 = vmatpush.bf16.msra.mxu3 %v872_v7  ;;  %v876_v18 = vld [vmem:[%s1120_s1 + $0x60] sm:$0xff] }
  0x13   : > { %v906_v19 = vld [vmem:[%s1121_s2] ss:$0 sm:$0xff]  ;;  %v907_v20 = vld [vmem:[%s1121_s2 + $0x4] ss:$0 sm:$0xff]  ;;  %v908_v27 = vld [vmem:[%s1121_s2 + $0x1] ss:$0 sm:$0xff] }
  0x14   : > { %750 = vmatmul.msk.bf16.vlgmr.msra.gmra.mxu0 %vm285_vm0, %v264_v16  ;;  %778 = vmatmul.msk.bf16.vlgmr.msra.gmra.mxu2 %vm285_vm0, %v264_v16  ;;  %v909_v28 = vld [vmem:[%s1121_s2 + $0x5] ss:$0 sm:$0xff]  ;;  %v910_v41 = vld [vmem:[%s1121_s2 + $0x2] ss:$0 sm:$0xff]  ;;  %v911_v42 = vld [vmem:[%s1121_s2 + $0x6] ss:$0 sm:$0xff] }
  0x15   : > { %540 = vmatpush.bf16.msrb.mxu2 %v879_v8  ;;  %764 = vmatmul.msk.bf16.vlgmr.msra.gmra.mxu1 %vm285_vm0, %v264_v16  ;;  %v912_v55 = vld [vmem:[%s1121_s2 + $0x3] ss:$0 sm:$0xff]  ;;  %v913_v56 = vld [vmem:[%s1121_s2 + $0x7] ss:$0 sm:$0xff] }
  0x16   : > { %581 = vmatpush.bf16.msrb.mxu3 %v881_v9  ;;  %458 = vmatpush.bf16.msrb.mxu0 %v875_v10 }
  0x17   : > { %794 = vmatmul.msk.bf16.vlgmr.msra.gmra.mxu3 %vm285_vm0, %v264_v16  ;;  %499 = vmatpush.bf16.msrb.mxu1 %v877_v11 }
  0x19   : > { %541 = vmatpush.bf16.msrb.mxu2 %v878_v14 }
  0x1a   : > { %582 = vmatpush.bf16.msrb.mxu3 %v880_v15  ;;  %459 = vmatpush.bf16.msrb.mxu0 %v874_v17 }
  0x1b   : > { %500 = vmatpush.bf16.msrb.mxu1 %v876_v18 }
  0x24   : > { %810 = vmatmul.msk.bf16.vlgmr.msrb.gmra.mxu0 %vm285_vm0, %v264_v16  ;;  %842 = vmatmul.msk.bf16.vlgmr.msrb.gmra.mxu2 %vm285_vm0, %v264_v16 }
  0x25   : > { %826 = vmatmul.msk.bf16.vlgmr.msrb.gmra.mxu1 %vm285_vm0, %v264_v16 }
  0x27   : > { %858 = vmatmul.msk.bf16.vlgmr.msrb.gmra.mxu3 %vm285_vm0, %v264_v16 }
  0x91   : > { %v298_v21 = vpop.f32.mrf.mxu0 }
  0x92   : > { %v339_v22 = vpop.f32.mrf.mxu1  ;;  %v299_v23 = vadd.f32 %v906_v19, %v298_v21 }
  0x93   : > { %v340_v24 = vadd.f32 %v907_v20, %v339_v22 }
  0x94   : > { %v303_v25 = vpack.c.bf16 %v299_v23, %v299_v23 }
  0x95   : > { %v344_v26 = vpack.c.bf16 %v340_v24, %v340_v24 }
  0x96   : > { %306 = vst.msk [vmem:[%s1053_s14] sm:$0xf] %vm305_vm1, %v303_v25 }
  0x97   : > { %346 = vst.msk [vmem:[%s1058_s21] sm:$0xf] %vm305_vm1, %v344_v26  ;;  %v379_v29 = vpop.f32.mrf.mxu2 }
  0x98   : > { %v380_v31 = vadd.f32 %v908_v27, %v379_v29 }
  0x99   : > { %v300_v33 = vpop.f32.mrf.mxu0 }
  0x9a   : > { %v420_v30 = vpop.f32.mrf.mxu3  ;;  %v341_v34 = vpop.f32.mrf.mxu1  ;;  %v301_v35 = vadd.f32 %v906_v19, %v300_v33  ;;  %v384_v37 = vpack.c.bf16 %v380_v31, %v380_v31 }
  0x9b   : > { %v421_v32 = vadd.f32 %v909_v28, %v420_v30  ;;  %v342_v36 = vadd.f32 %v907_v20, %v341_v34 }
  0x9c   : > { %v304_v39 = vpack.c.bf16 %v301_v35, %v301_v35  ;;  %779 = vst.msk [vmem:[%s1053_s14 + $0x8] sm:$0xf] %vm305_vm1, %v384_v37 }
  0x9d   : > { %v425_v38 = vpack.c.bf16 %v421_v32, %v421_v32  ;;  %v345_v40 = vpack.c.bf16 %v342_v36, %v342_v36 }
  0x9e   : > { %307 = vst.msk [vmem:[%s1053_s14 + $0x4] sm:$0xf] %vm305_vm1, %v304_v39 }
  0x9f   : > { %795 = vst.msk [vmem:[%s1058_s21 + $0x8] sm:$0xf] %vm305_vm1, %v425_v38  ;;  %v381_v43 = vpop.f32.mrf.mxu2 }
  0xa0   : > { %347 = vst.msk [vmem:[%s1058_s21 + $0x4] sm:$0xf] %vm305_vm1, %v345_v40  ;;  %v382_v45 = vadd.f32 %v908_v27, %v381_v43 }
  0xa1   : > { %v461_v47 = vpop.f32.mrf.mxu0 }
  0xa2   : > { %v422_v44 = vpop.f32.mrf.mxu3  ;;  %v502_v48 = vpop.f32.mrf.mxu1  ;;  %v462_v49 = vadd.f32 %v910_v41, %v461_v47  ;;  %v385_v51 = vpack.c.bf16 %v382_v45, %v382_v45 }
  0xa3   : > { %v423_v46 = vadd.f32 %v909_v28, %v422_v44  ;;  %v503_v50 = vadd.f32 %v911_v42, %v502_v48 }
  0xa4   : > { %v466_v53 = vpack.c.bf16 %v462_v49, %v462_v49  ;;  %780 = vst.msk [vmem:[%s1053_s14 + $0xc] sm:$0xf] %vm305_vm1, %v385_v51 }
  0xa5   : > { %v426_v52 = vpack.c.bf16 %v423_v46, %v423_v46  ;;  %v507_v54 = vpack.c.bf16 %v503_v50, %v503_v50 }
  0xa6   : > { %811 = vst.msk [vmem:[%s1053_s14 + $0x10] sm:$0xf] %vm305_vm1, %v466_v53 }
  0xa7   : > { %796 = vst.msk [vmem:[%s1058_s21 + $0xc] sm:$0xf] %vm305_vm1, %v426_v52  ;;  %v543_v57 = vpop.f32.mrf.mxu2 }
  0xa8   : > { %827 = vst.msk [vmem:[%s1058_s21 + $0x10] sm:$0xf] %vm305_vm1, %v507_v54  ;;  %v544_v59 = vadd.f32 %v912_v55, %v543_v57 }
  0xa9   : > { %v463_v61 = vpop.f32.mrf.mxu0 }
  0xaa   : > { %v584_v58 = vpop.f32.mrf.mxu3  ;;  %v504_v62 = vpop.f32.mrf.mxu1  ;;  %v464_v63 = vadd.f32 %v910_v41, %v463_v61  ;;  %v548_v1 = vpack.c.bf16 %v544_v59, %v544_v59 }
  0xab   : > { %v585_v60 = vadd.f32 %v913_v56, %v584_v58  ;;  %v505_v0 = vadd.f32 %v911_v42, %v504_v62 }
  0xac   : > { %v467_v3 = vpack.c.bf16 %v464_v63, %v464_v63  ;;  %843 = vst.msk [vmem:[%s1053_s14 + $0x18] sm:$0xf] %vm305_vm1, %v548_v1 }
  0xad   : > { %v589_v2 = vpack.c.bf16 %v585_v60, %v585_v60  ;;  %v508_v4 = vpack.c.bf16 %v505_v0, %v505_v0 }
  0xae   : > { %812 = vst.msk [vmem:[%s1053_s14 + $0x14] sm:$0xf] %vm305_vm1, %v467_v3 }
  0xaf   : > { %859 = vst.msk [vmem:[%s1058_s21 + $0x18] sm:$0xf] %vm305_vm1, %v589_v2  ;;  %v545_v5 = vpop.f32.mrf.mxu2 }
  0xb0   : > { %828 = vst.msk [vmem:[%s1058_s21 + $0x14] sm:$0xf] %vm305_vm1, %v508_v4  ;;  %v546_v7 = vadd.f32 %v912_v55, %v545_v5 }
  0xb2   : > { %v586_v6 = vpop.f32.mrf.mxu3  ;;  %v549_v9 = vpack.c.bf16 %v546_v7, %v546_v7 }
  0xb3   : > { %v587_v8 = vadd.f32 %v913_v56, %v586_v6 }
  0xb4   : > { %844 = vst.msk [vmem:[%s1053_s14 + $0x1c] sm:$0xf] %vm305_vm1, %v549_v9 }
  0xb5   : > { %v590_v10 = vpack.c.bf16 %v587_v8, %v587_v8 }
  0xb7   : > { %860 = vst.msk [vmem:[%s1058_s21 + $0x1c] sm:$0xf] %vm305_vm1, %v590_v10 }
  0xb8 PF: > { %s15_s17 = sadd.s32 1, %s936_s17   ;;  %s1124_s15 = smov %s932_s16 }
  0xb9   : > { %p12_p5 = scmp.ge.s32.totalorder %s15_s17, 4   ;;  %s1125_s16 = smov %s1127_s18 }
  0xbb   :  { %14 = sbr.rel (!%p12_p5) target bundleno = 2 (0x2), region = 94 }

// kernel: decoder_layer.6
= control target key start
LH: loop header
LB: loop body
LE: loop exit
PB: predicated region body
PF: predicated region fallthrough
CT: control target
= control target key end

     0   :  { %s1427_s30 = smov 0   ;;  %s1429_s10 = smov 0   ;;  %s1643_s0 = inlined_call_operand.vmem [shape: f32[2,8,32], index: 0, kind: input, shape index: {}]   ;;  %s1644_s1 = inlined_call_operand.vmem [shape: bf16[4,32,8], index: 1, kind: input, shape index: {}]   ;;  %s1645_s2 = inlined_call_operand.vmem [shape: f32[4,1,8], index: 2, kind: input, shape index: {}]   ;;  %s1646_s3 = inlined_call_operand.vmem [shape: bf16[2,4,8,8], index: 3, kind: input, shape index: {}]   ;;  %s1647_s4 = inlined_call_operand.vmem [shape: bf16[2,4,8,8], index: 4, kind: input, shape index: {}]   ;;  %s1648_s5 = inlined_call_operand.vmem [shape: bf16[32,32], index: 5, kind: input, shape index: {}]   ;;  %s1649_s6 = inlined_call_operand.vmem [shape: f32[1,32], index: 6, kind: input, shape index: {}]   ;;  %s1650_s7 = inlined_call_operand.vmem [shape: f32[1,32], index: 7, kind: input, shape index: {}]   ;;  %s1651_s8 = inlined_call_operand.vmem [shape: f32[1,32], index: 8, kind: input, shape index: {}]   ;;  %s1652_s9 = inlined_call_operand.vmem [shape: f32[2,8,32], index: 9, kind: output, shape index: {}]  }
   0x1   :  { %s1431_s11 = smov 0  }
   0x2 LB: > { %s38_s12 = sadd.s32 1, %s1364_s10  ;;  %p1188_p0 = scmp.ge.s32.totalorder %s1368_s11, 1  ;;  %s1368_s11 = sphi %s1431_s11, %s19_s11   ;;  %s1364_s10 = sphi %s1429_s10, %s1654_s10   ;;  %s1360_s30 = sphi %s1427_s30, %s1653_s30  }
   0x3   : > { %p40_p1 = scmp.ge.s32.totalorder %s38_s12, 2  ;;  %p342_p2 = scmp.lt.s32.totalorder %s1368_s11, 3 }
   0x5   : > { %s1656_s12 = smov (%p40_p1, %s38_s12), 0  ;;  %p343_p3 = pnand %p1188_p0, %p342_p2 }
   0x6   : > { %p398_p4 = scmp.lt.s32.totalorder (!%p343_p3), %s1360_s30, 1  ;;  %s1375_s17 = smov (!%p343_p3), 16  }
   0x7   : > { %346 = sbr.rel (%p343_p3) target bundleno = 1318 (0x526), region = 56 }
   0xc   : > { %v1270_v0 = vld [vmem:[%s1644_s1 + $0x18] sm:$0xff]  ;;  %v1272_v1 = vld [vmem:[%s1644_s1 + $0x28] sm:$0xff]  ;;  %v1269_v2 = vld [vmem:[%s1644_s1 + $0x10] sm:$0xff]  ;;  %s1658_s30 = smov (!%p398_p4, %s1360_s30), 1  ;;  %vm469_vm0 = vcmask 261120   ;;  %vm442_vm1 = vcmask 64512   ;;  %v695_v42 = vlaneseq }
   0xd   : > { %v1274_v3 = vld [vmem:[%s1644_s1 + $0x38] sm:$0xff]  ;;  %517 = vmatpush.bf16.msra.mxu1 %v1270_v0  ;;  %555 = vmatpush.bf16.msra.mxu2 %v1272_v1  ;;  %v1271_v4 = vld [vmem:[%s1644_s1 + $0x20] sm:$0xff]  ;;  %v1268_v5 = vld [vmem:[%s1644_s1 + $0x8] sm:$0xff]  ;;  %s1189_s27 = sshll.u32 %s1658_s30, 3  ;;  %s1265_s16 = sshll.u32 %s1658_s30, 4  ;;  %vm487_vm2 = vcmask 60416  }
   0xe   : > { %593 = vmatpush.bf16.msra.mxu3 %v1274_v3  ;;  %v1273_v6 = vld [vmem:[%s1644_s1 + $0x30] sm:$0xff]  ;;  %479 = vmatpush.bf16.msra.mxu0 %v1268_v5  ;;  %v1267_v7 = vld [vmem:[%s1644_s1] sm:$0xff]  ;;  %s404_s15 = scalar_lea.vmem %s1643_s0, %s1189_s27  ;;  %s412_s19 = scalar_lea.vmem %s1646_s3, %s1265_s16  ;;  %vm433_vm3 = vcmask 7168   ;;  %v1370_v43 = vmov -1e+30   ;;  %v696_v44 = vshrl.u32 %v695_v42, 7 }
   0xf   : > { %v1477_v8 = vld [vmem:[%s404_s15] sm:$0xff]  ;;  %v616_v11 = vld [vmem:[%s412_s19 + $0x8] sm:$0xf]  ;;  %v617_v14 = vld [vmem:[%s412_s19 + $0xc] sm:$0xf]  ;;  %435 = vst.msk [vmem:[#allocation3 + $0x8] sm:$0xff] %vm433_vm3, %v1370_v43  ;;  %s420_s14 = scalar_lea.vmem %s1647_s4, %s1265_s16 }
  0x10   : > { %v448_v9 = vpack.c.bf16 %v1477_v8, %v1477_v8  ;;  %v615_v10 = vld [vmem:[%s412_s19 + $0x4] sm:$0xf]  ;;  %v661_v13 = vsel %vm442_vm1, %v616_v11, 0  ;;  %v680_v15 = vsel %vm442_vm1, %v617_v14, 0  ;;  %v614_v16 = vld [vmem:[%s412_s19] sm:$0xf] }
  0x11   : > { %518 = vmatpush.bf16.msra.mxu1 %v1269_v2  ;;  %556 = vmatpush.bf16.msra.mxu2 %v1271_v4  ;;  %v642_v12 = vsel %vm442_vm1, %v615_v10, 0  ;;  %v623_v17 = vsel %vm442_vm1, %v614_v16, 0  ;;  %v1311_v18 = vld [vmem:[%s1645_s2 + $0x1] ss:$0 sm:$0xff]  ;;  %v1314_v19 = vld [vmem:[%s1645_s2] ss:$0 sm:$0xff] }
  0x12   : > { %594 = vmatpush.bf16.msra.mxu3 %v1273_v6  ;;  %480 = vmatpush.bf16.msra.mxu0 %v1267_v7  ;;  %v1312_v24 = vld [vmem:[%s1645_s2 + $0x2] ss:$0 sm:$0xff]  ;;  %v1313_v26 = vld [vmem:[%s1645_s2 + $0x3] ss:$0 sm:$0xff]  ;;  %434 = vst.msk [vmem:[#allocation3] sm:$0xff] %vm433_vm3, %v1370_v43  ;;  %v700_v45 = vand.u32 127, %v695_v42 }
  0x13   : > { %436 = vst.msk [vmem:[#allocation3 + $0x10] sm:$0xff] %vm433_vm3, %v1370_v43  ;;  %v1371_v62 = vmov 0   ;;  %v1372_v63 = vmov 0.0   ;;  %vm842_vm5 = vcmask 1043456   ;;  %s1373_s15 = smov 8   ;;  %s1374_s16 = smov 24  }
  0x14   : > { %1217 = vmatmul.msk.bf16.vlgmr.msra.gmra.mxu1 %vm469_vm0, %v448_v9  ;;  %1231 = vmatmul.msk.bf16.vlgmr.msra.gmra.mxu2 %vm469_vm0, %v448_v9  ;;  %437 = vst.msk [vmem:[#allocation3 + $0x18] sm:$0xff] %vm433_vm3, %v1370_v43  ;;  %vm703_vm4 = vcmp.le.s32.totalorder %v700_v45, %v696_v44  ;;  %vm960_vm6 = vcmask 130112   ;;  %vm974_vm7 = vcmask 195712   ;;  %vm988_vm8 = vcmask 261312  }
  0x15   : > { %1245 = vmatmul.msk.bf16.vlgmr.msra.gmra.mxu3 %vm469_vm0, %v448_v9  ;;  %1203 = vmatmul.msk.bf16.vlgmr.msra.gmra.mxu0 %vm469_vm0, %v448_v9  ;;  %441 = vst.msk [vmem:[#allocation4 + $0x18] sm:$0xff] %vm433_vm3, %v1372_v63 }
  0x16   : > { %651 = vmatpush.bf16.xpose.msrb.mxu1 %v642_v12  ;;  %670 = vmatpush.bf16.xpose.msrb.mxu2 %v661_v13  ;;  %438 = vst.msk [vmem:[#allocation4] sm:$0xff] %vm433_vm3, %v1372_v63  ;;  %v1544_v0 = vld [vmem:[#allocation3 + $0x8] sm:$0xff] }
  0x17   : > { %689 = vmatpush.bf16.xpose.msrb.mxu3 %v680_v15  ;;  %632 = vmatpush.bf16.xpose.msrb.mxu0 %v623_v17  ;;  %439 = vst.msk [vmem:[#allocation4 + $0x8] sm:$0xff] %vm433_vm3, %v1372_v63  ;;  %v838_v17 = vld [vmem:[%s420_s14 + $0xc] sm:$0xf] }
  0x18   : > { %1310 = vset.pattern.permute.xlu0 %v1371_v62  ;;  %1308 = vset.pattern.permute.xlu1 %v1371_v62  ;;  %440 = vst.msk [vmem:[#allocation4 + $0x10] sm:$0xff] %vm433_vm3, %v1372_v63 }
  0x19   : > { %1309 = vset.pattern.permute.xlu2 %v1371_v62  ;;  %443 = vst.msk [vmem:[#allocation5] sm:$0xff] %vm442_vm1, %v1372_v63  ;;  %v1546_v2 = vld [vmem:[#allocation3] sm:$0xff] }
  0x1a   : > { %444 = vst.msk [vmem:[#allocation5 + $0x8] sm:$0xff] %vm442_vm1, %v1372_v63  ;;  %v1563_v9 = vld [vmem:[#allocation3 + $0x10] sm:$0xff] }
  0x1b   : > { %445 = vst.msk [vmem:[#allocation5 + $0x10] sm:$0xff] %vm442_vm1, %v1372_v63  ;;  %v713_v13 = vld [vmem:[#allocation3 + $0x18] sm:$0xff] }
  0x1c   : > { %446 = vst.msk [vmem:[#allocation5 + $0x18] sm:$0xff] %vm442_vm1, %v1372_v63 }
  0x91   : > { %v520_v20 = vpop.f32.mrf.mxu1 }
  0x92   : > { %v521_v21 = vadd.f32 %v1311_v18, %v520_v20  ;;  %v482_v22 = vpop.f32.mrf.mxu0  ;;  %v901_v18 = vsel %vm842_vm5, %v838_v17, 0 }
  0x93   : > { %v483_v25 = vadd.f32 %v1314_v19, %v482_v22  ;;  %910 = vmatpush.bf16.msra.mxu3 %v901_v18  ;;  %v836_v19 = vld [vmem:[%s420_s14 + $0x4] sm:$0xf] }
  0x94   : > { %v524_v23 = vpack.c.bf16 %v521_v21, %v521_v21  ;;  %v863_v20 = vsel %vm842_vm5, %v836_v19, 0  ;;  %v835_v21 = vld [vmem:[%s420_s14] sm:$0xf] }
  0x95   : > { %v486_v27 = vpack.c.bf16 %v483_v25, %v483_v25  ;;  %872 = vmatpush.bf16.msra.mxu1 %v863_v20  ;;  %v844_v22 = vsel %vm842_vm5, %v835_v21, 0  ;;  %v804_v20 = vld [vmem:[#allocation5 + $0x8] sm:$0xff] }
  0x96   : > { %526 = vst.msk [vmem:[#allocation2 + $0x4] sm:$0xf] %vm487_vm2, %v524_v23  ;;  %853 = vmatpush.bf16.msra.mxu0 %v844_v22  ;;  %v837_v23 = vld [vmem:[%s420_s14 + $0x8] sm:$0xf]  ;;  %s427_s14 = scalar_lea.vmem %s1652_s9, %s1189_s27 }
  0x97   : > { %v558_v28 = vpop.f32.mrf.mxu2  ;;  %488 = vst.msk [vmem:[#allocation2] sm:$0xf] %vm487_vm2, %v486_v27 }
  0x98   : > { %v559_v29 = vadd.f32 %v1312_v24, %v558_v28  ;;  %v596_v30 = vpop.f32.mrf.mxu3  ;;  %v882_v24 = vsel %vm842_vm5, %v837_v23, 0 }
  0x99   : > { %v597_v31 = vadd.f32 %v1313_v26, %v596_v30  ;;  %v522_v32 = vpop.f32.mrf.mxu1  ;;  %891 = vmatpush.bf16.msra.mxu2 %v882_v24 }
  0x9a   : > { %v562_v33 = vpack.c.bf16 %v559_v29, %v559_v29  ;;  %v484_v35 = vpop.f32.mrf.mxu0 }
  0x9b   : > { %v600_v34 = vpack.c.bf16 %v597_v31, %v597_v31 }
  0x9c   : > { %564 = vst.msk [vmem:[#allocation2 + $0x8] sm:$0xf] %vm487_vm2, %v562_v33 }
  0x9d   : > { %v611_v36 = vld [vmem:[#allocation2 + $0x4] sm:$0xf]  ;;  %602 = vst.msk [vmem:[#allocation2 + $0xc] sm:$0xf] %vm487_vm2, %v600_v34 }
  0x9e   : > { %1247 = vmatmul.msk.bf16.vlgmr.msrb.gmra.mxu1 %vm442_vm1, %v611_v36  ;;  %v610_v38 = vld [vmem:[#allocation2] sm:$0xf] }
  0x9f   : > { %v560_v37 = vpop.f32.mrf.mxu2  ;;  %1246 = vmatmul.msk.bf16.vlgmr.msrb.gmra.mxu0 %vm442_vm1, %v610_v38 }
  0xa0   : > { %v598_v39 = vpop.f32.mrf.mxu3 }
  0xa3   : > { %v612_v40 = vld [vmem:[#allocation2 + $0x8] sm:$0xf] }
  0xa4   : > { %1248 = vmatmul.msk.bf16.vlgmr.msrb.gmra.mxu2 %vm442_vm1, %v612_v40  ;;  %v613_v41 = vld [vmem:[#allocation2 + $0xc] sm:$0xf] }
  0xa5   : > { %1249 = vmatmul.msk.bf16.vlgmr.msrb.gmra.mxu3 %vm442_vm1, %v613_v41 }
 0x11b   : > { %v653_v46 = vpop.f32.mrf.mxu1 }
 0x11c   : > { %v1520_v47 = vsel %vm703_vm4, %v653_v46, -1e+30  ;;  %v634_v49 = vpop.f32.mrf.mxu0 }
 0x11d   : > { %v717_v48 = vsel %vm442_vm1, %v1520_v47, -inf  ;;  %v1525_v50 = vsel %vm703_vm4, %v634_v49, -1e+30 }
 0x11e   : > { %718 = vmax.xlane.f32.xlu1 %v717_v48  ;;  %v714_v51 = vsel %vm442_vm1, %v1525_v50, -inf }
 0x11f   : > { %715 = vmax.xlane.f32.xlu2 %v714_v51 }
 0x123   : > { %v655_v52 = vpop.f32.mrf.mxu1 }
 0x124   : > { %v636_v53 = vpop.f32.mrf.mxu0 }
 0x127   : > { %v672_v54 = vpop.f32.mrf.mxu2 }
 0x128   : > { %v1530_v55 = vsel %vm703_vm4, %v672_v54, -1e+30  ;;  %v691_v56 = vpop.f32.mrf.mxu3 }
 0x129   : > { %v720_v57 = vsel %vm442_vm1, %v1530_v55, -inf  ;;  %v709_v58 = vsel %vm703_vm4, %v691_v56, -1e+30 }
 0x12a   : > { %721 = vmax.xlane.f32.xlu0 %v720_v57  ;;  %v723_v60 = vsel %vm442_vm1, %v709_v58, -inf }
 0x12f   : > { %v674_v59 = vpop.f32.mrf.mxu2 }
 0x130   : > { %v693_v61 = vpop.f32.mrf.mxu3  ;;  %v775_v59 = vld [vmem:[#allocation4 + $0x8] sm:$0xff] }
 0x132   : > { %724 = vmax.xlane.f32.xlu0 %v723_v60 }
 0x191   : > { %v719_v1 = vpop.xlane.xlu1 %718 }
 0x192   : > { %v1549_v3 = vmax.f32 %v1544_v0, %v719_v1  ;;  %v716_v4 = vpop.xlane.xlu2 %715  ;;  %v774_v1 = vld [vmem:[#allocation4] sm:$0xff] }
 0x193   : > { %v1557_v6 = vmax.f32 %v1546_v2, %v716_v4 }
 0x194   : > { %v731_v5 = vsub.f32 %v1544_v0, %v1549_v3  ;;  %925 = vst.msk [vmem:[#allocation3 + $0x8] sm:$0xff] %vm433_vm3, %v1549_v3  ;;  %749 = vperm.xlu0 %1310, %v1549_v3  }
 0x195   : > { %v730_v7 = vsub.f32 %v1546_v2, %v1557_v6  ;;  %924 = vst.msk [vmem:[#allocation3] sm:$0xff] %vm433_vm3, %v1557_v6 }
 0x196   : > { %v736_v52 = vmul.f32 1.442695, %v731_v5  ;;  %v776_v5 = vld [vmem:[#allocation4 + $0x10] sm:$0xff] }
 0x197   : > { %v734_v56 = vmul.f32 1.442695, %v730_v7 }
 0x19d   : > { %v722_v10 = vpop.xlane.xlu0 %721 }
 0x19e   : > { %v1566_v11 = vmax.f32 %v1563_v9, %v722_v10 }
 0x1a0   : > { %v732_v12 = vsub.f32 %v1563_v9, %v1566_v11  ;;  %926 = vst.msk [vmem:[#allocation3 + $0x10] sm:$0xff] %vm433_vm3, %v1566_v11  ;;  %754 = vperm.xlu1 %1308, %v1566_v11  }
 0x1a2   : > { %v738_v51 = vmul.f32 1.442695, %v732_v12 }
 0x1a5   : > { %v725_v14 = vpop.xlane.xlu0 %724 }
 0x1a6   : > { %v729_v15 = vmax.f32 %v713_v13, %v725_v14 }
 0x1a8   : > { %v733_v16 = vsub.f32 %v713_v13, %v729_v15  ;;  %927 = vst.msk [vmem:[#allocation3 + $0x18] sm:$0xff] %vm433_vm3, %v729_v15  ;;  %759 = vperm.xlu2 %1309, %v729_v15   ;;  %v806_v13 = vld [vmem:[#allocation5 + $0x18] sm:$0xff] }
 0x1aa   : > { %v740_v45 = vmul.f32 1.442695, %v733_v16 }
 0x1b0   : > { %744 = vperm.xlu2 %1309, %v1557_v6  }
 0x202   : > { %v760_v25 = vpop.permute.xlu2 %759 }
 0x203   : > { %v765_v26 = vsub.f32 %v709_v58, %v760_v25 }
 0x205   : > { %v772_v27 = vmul.f32 1.442695, %v765_v26 }
 0x206   : > { %v750_v28 = vpop.permute.xlu0 %749 }
 0x207   : > { %1318 = vpow2.f32 %v772_v27  ;;  %v763_v29 = vsub.f32 %v1520_v47, %v750_v28 }
 0x209   : > { %v768_v30 = vmul.f32 1.442695, %v763_v29 }
 0x20a   : > { %v745_v31 = vpop.permute.xlu2 %744 }
 0x20b   : > { %1320 = vpow2.f32 %v768_v30  ;;  %v762_v32 = vsub.f32 %v1525_v50, %v745_v31 }
 0x20d   : > { %v1319_v33 = vpop.eup %1318  ;;  %v766_v34 = vmul.f32 1.442695, %v762_v32 }
 0x20e   : > { %v834_v35 = vpack.c.bf16 %v1319_v33, %v1319_v33  ;;  %v791_v36 = vsel %vm442_vm1, %v1319_v33, 0.0  ;;  %v805_v33 = vld [vmem:[#allocation5 + $0x10] sm:$0xff] }
 0x20f   : > { %1322 = vpow2.f32 %v766_v34  ;;  %792 = vadd.xlane.f32.xlu0 %v791_v36 }
 0x210   : > { %1253 = vmatmul.msk.bf16.vlgmr.msra.gmra.mxu3 %vm442_vm1, %v834_v35 }
 0x211   : > { %v1321_v37 = vpop.eup %1320 }
 0x212   : > { %v832_v38 = vpack.c.bf16 %v1321_v37, %v1321_v37  ;;  %v755_v39 = vpop.permute.xlu1 %754  ;;  %v785_v40 = vsel %vm442_vm1, %v1321_v37, 0.0 }
 0x213   : > { %v764_v41 = vsub.f32 %v1530_v55, %v755_v39  ;;  %786 = vadd.xlane.f32.xlu1 %v785_v40  ;;  %v777_v55 = vld [vmem:[#allocation4 + $0x18] sm:$0xff] }
 0x214   : > { %1251 = vmatmul.msk.bf16.vlgmr.msra.gmra.mxu1 %vm442_vm1, %v832_v38 }
 0x215   : > { %v1323_v42 = vpop.eup %1322  ;;  %v770_v43 = vmul.f32 1.442695, %v764_v41 }
 0x216   : > { %v831_v44 = vpack.c.bf16 %v1323_v42, %v1323_v42  ;;  %v782_v46 = vsel %vm442_vm1, %v1323_v42, 0.0 }
 0x217   : > { %1324 = vpow2.f32 %v770_v43 }
 0x218   : > { %1250 = vmatmul.msk.bf16.vlgmr.msra.gmra.mxu0 %vm442_vm1, %v831_v44  ;;  %1326 = vpow2.f32 %v740_v45 }
 0x219   : > { %1328 = vpow2.f32 %v738_v51 }
 0x21a   : > { %1330 = vpow2.f32 %v736_v52 }
 0x21b   : > { %783 = vadd.xlane.f32.xlu1 %v782_v46  ;;  %1332 = vpow2.f32 %v734_v56  ;;  %v1275_v56 = vld [vmem:[%s1648_s5] sm:$0xff] }
 0x21d   : > { %v1325_v47 = vpop.eup %1324 }
 0x21e   : > { %v833_v48 = vpack.c.bf16 %v1325_v47, %v1325_v47  ;;  %v788_v49 = vsel %vm442_vm1, %v1325_v47, 0.0  ;;  %v1327_v50 = vpop.eup %1326  ;;  %v803_v47 = vld [vmem:[#allocation5] sm:$0xff] }
 0x21f   : > { %789 = vadd.xlane.f32.xlu2 %v788_v49  ;;  %v1329_v53 = vpop.eup %1328  ;;  %v781_v57 = vmul.f32 %v1327_v50, %v777_v55  ;;  %v1276_v55 = vld [vmem:[%s1648_s5 + $0x8] sm:$0xff] }
 0x220   : > { %1252 = vmatmul.msk.bf16.vlgmr.msra.gmra.mxu2 %vm442_vm1, %v833_v48  ;;  %v1331_v54 = vpop.eup %1330  ;;  %v780_v7 = vmul.f32 %v1329_v53, %v776_v5  ;;  %1022 = vmatpush.bf16.msrb.mxu0 %v1276_v55 }
 0x221   : > { %v779_v61 = vmul.f32 %v1331_v54, %v775_v59  ;;  %v1333_v0 = vpop.eup %1332 }
 0x222   : > { %v778_v3 = vmul.f32 %v1333_v0, %v774_v1 }
 0x223   : > { %824 = vperm.xlu0 %1310, %v1327_v50  }
 0x224   : > { %1023 = vmatpush.bf16.msrb.mxu0 %v1275_v56 }
 0x234   : > { %819 = vperm.xlu1 %1308, %v1329_v53  }
 0x237   : > { %814 = vperm.xlu2 %1309, %v1331_v54  }
 0x282   : > { %v793_v58 = vpop.xlane.xlu0 %792 }
 0x283   : > { %v797_v60 = vadd.f32 %v793_v58, %v781_v57 }
 0x285   : > { %802 = vst.msk [vmem:[#allocation4 + $0x18] sm:$0xff] %vm433_vm3, %v797_v60 }
 0x286   : > { %v787_v62 = vpop.xlane.xlu1 %786 }
 0x287   : > { %v795_v63 = vadd.f32 %v787_v62, %v779_v61  ;;  %v1315_v61 = vld [vmem:[%s1649_s6] ss:$0 sm:$0xff] }
 0x289   : > { %800 = vst.msk [vmem:[#allocation4 + $0x8] sm:$0xff] %vm433_vm3, %v795_v63 }
 0x28c   : > { %v934_v16 = vld [vmem:[#allocation4 + $0x18] sm:$0xff] }
 0x28e   : > { %v784_v4 = vpop.xlane.xlu1 %783 }
 0x28f   : > { %v794_v9 = vadd.f32 %v784_v4, %v778_v3  ;;  %v1376_v4 = vmov 32.0  }
 0x290   : > { %v932_v2 = vld [vmem:[#allocation4 + $0x8] sm:$0xff] }
 0x291   : > { %799 = vst.msk [vmem:[#allocation4] sm:$0xff] %vm433_vm3, %v794_v9  ;;  %v874_v6 = vpop.f32.mrf.mxu1  ;;  %1334 = vrcp.f32 %v932_v2 }
 0x292   : > { %v790_v10 = vpop.xlane.xlu2 %789  ;;  %1336 = vrcp.f32 %v934_v16 }
 0x293   : > { %v796_v11 = vadd.f32 %v790_v10, %v780_v7  ;;  %v912_v12 = vpop.f32.mrf.mxu3 }
 0x295   : > { %801 = vst.msk [vmem:[#allocation4 + $0x10] sm:$0xff] %vm433_vm3, %v796_v11  ;;  %v825_v14 = vpop.permute.xlu0 %824  ;;  %v855_v15 = vpop.f32.mrf.mxu0 }
 0x296   : > { %v830_v17 = vmul.f32 %v825_v14, %v806_v13 }
 0x297   : > { %v1335_v18 = vpop.eup %1334 }
 0x298   : > { %v919_v19 = vadd.f32 %v912_v12, %v830_v17  ;;  %952 = vperm.xlu2 %1309, %v1335_v18   ;;  %v931_v21 = vld [vmem:[#allocation4] sm:$0xff]  ;;  %v1337_v29 = vpop.eup %1336 }
 0x299   : > { %v876_v22 = vpop.f32.mrf.mxu1  ;;  %1338 = vrcp.f32 %v931_v21 }
 0x29a   : > { %923 = vst.msk [vmem:[#allocation5 + $0x18] sm:$0xff] %vm442_vm1, %v919_v19  ;;  %v815_v23 = vpop.permute.xlu2 %814 }
 0x29b   : > { %v828_v24 = vmul.f32 %v815_v23, %v804_v20  ;;  %v914_v25 = vpop.f32.mrf.mxu3 }
 0x29c   : > { %v933_v26 = vld [vmem:[#allocation4 + $0x10] sm:$0xff] }
 0x29d   : > { %v917_v27 = vadd.f32 %v874_v6, %v828_v24  ;;  %v857_v28 = vpop.f32.mrf.mxu0  ;;  %1340 = vrcp.f32 %v933_v26  ;;  %v1316_v24 = vld [vmem:[%s1650_s7] ss:$0 sm:$0xff] }
 0x29e   : > { %1342 = vrcp.f32 %v1376_v4  ;;  %v1317_v26 = vld [vmem:[%s1651_s8] ss:$0 sm:$0xff] }
 0x29f   : > { %v1339_v30 = vpop.eup %1338  ;;  %921 = vst.msk [vmem:[#allocation5 + $0x8] sm:$0xff] %vm442_vm1, %v917_v27 }
 0x2a0   : > { %980 = vperm.xlu2 %1309, %v1337_v29   ;;  %942 = vperm.xlu0 %1310, %v1339_v30  }
 0x2a1   : > { %v977_v41 = vld [vmem:[#allocation5 + $0x18] sm:$0xff] }
 0x2a3   : > { %v1341_v31 = vpop.eup %1340  ;;  %v893_v32 = vpop.f32.mrf.mxu2 }
 0x2a4   : > { %966 = vperm.xlu1 %1308, %v1341_v31   ;;  %v1343_v5 = vpop.eup %1342 }
 0x2a5   : > { %v1035_v9 = vmul.f32 32.0, %v1343_v5  ;;  %vm1039_vm9 = vweird.f32 %v1343_v5 }
 0x2a6   : > { %v820_v34 = vpop.permute.xlu1 %819  ;;  %v949_v38 = vld [vmem:[#allocation5 + $0x8] sm:$0xff] }
 0x2a7   : > { %v829_v35 = vmul.f32 %v820_v34, %v805_v33  ;;  %v1036_v2 = vsub.f32 1.0, %v1035_v9 }
 0x2a9   : > { %v918_v36 = vadd.f32 %v893_v32, %v829_v35  ;;  %v1037_v6 = vmul.f32 %v1343_v5, %v1036_v2 }
 0x2ab   : > { %922 = vst.msk [vmem:[#allocation5 + $0x10] sm:$0xff] %vm442_vm1, %v918_v36  ;;  %v895_v37 = vpop.f32.mrf.mxu2  ;;  %v1038_v7 = vadd.f32 %v1343_v5, %v1037_v6 }
 0x2ac   : > { %809 = vperm.xlu1 %1308, %v1333_v0  }
 0x2ad   : > { %v1040_v10 = vsel %vm1039_vm9, %v1343_v5, %v1038_v7 }
 0x2b2   : > { %v963_v44 = vld [vmem:[#allocation5 + $0x10] sm:$0xff] }
 0x2f2   : > { %v953_v39 = vpop.permute.xlu2 %952 }
 0x2f3   : > { %v955_v40 = vmul.f32 %v953_v39, %v949_v38 }
 0x2f5   : > { %957 = vrot.lane.b32.xlu2 %v955_v40, %s1373_s15 }
 0x2fa   : > { %v981_v42 = vpop.permute.xlu2 %980 }
 0x2fb   : > { %v983_v43 = vmul.f32 %v981_v42, %v977_v41 }
 0x2fd   : > { %985 = vrot.lane.b32.xlu0 %v983_v43, %s1374_s16 }
 0x312   : > { %v943_v51 = vpop.permute.xlu0 %942 }
 0x316   : > { %v967_v45 = vpop.permute.xlu1 %966 }
 0x317   : > { %v969_v46 = vmul.f32 %v967_v45, %v963_v44 }
 0x319   : > { %971 = vrot.lane.b32.xlu1 %v969_v46, %s1375_s17 }
 0x31e   : > { %v810_v48 = vpop.permute.xlu1 %809 }
 0x31f   : > { %v827_v49 = vmul.f32 %v810_v48, %v803_v47 }
 0x321   : > { %v916_v50 = vadd.f32 %v855_v15, %v827_v49 }
 0x323   : > { %920 = vst.msk [vmem:[#allocation5] sm:$0xff] %vm442_vm1, %v916_v50 }
 0x32a   : > { %v939_v52 = vld [vmem:[#allocation5] sm:$0xff] }
 0x32b   : > { %v945_v53 = vmul.f32 %v943_v51, %v939_v52 }
 0x32d   : > { %947 = vst.msk [vmem:[#allocation6] sm:$0xff] %vm442_vm1, %v945_v53 }
 0x34f   : > { %v958_v54 = vpop.permute.xlu2 %957 }
 0x350   : > { %961 = vst.msk [vmem:[#allocation6] sm:$0xff] %vm960_vm6, %v958_v54 }
 0x36f   : > { %v986_v58 = vpop.permute.xlu0 %985 }
 0x38b   : > { %v972_v57 = vpop.permute.xlu1 %971 }
 0x38c   : > { %975 = vst.msk [vmem:[#allocation6] sm:$0xff] %vm974_vm7, %v972_v57 }
 0x38d   : > { %989 = vst.msk [vmem:[#allocation6] sm:$0xff] %vm988_vm8, %v986_v58 }
 0x394   : > { %v990_v59 = vld [vmem:[#allocation6] sm:$0xff] }
 0x395   : > { %v991_v60 = vpack.c.bf16 %v990_v59, %v990_v59 }
 0x397   : > { %1262 = vmatmul.msk.bf16.vlgmr.msrb.gmra.mxu0 %vm469_vm0, %v991_v60 }
 0x414   : > { %v1025_v62 = vpop.f32.mrf.mxu0 }
 0x415   : > { %v1026_v63 = vadd.f32 %v1315_v61, %v1025_v62 }
 0x417   : > { %v1030_v0 = vadd.f32 %v1026_v63, %v1477_v8 }
 0x419   : > { %v1031_v1 = vsel %vm469_vm0, %v1030_v0, 0.0 }
 0x41a   : > { %1032 = vadd.xlane.f32.xlu2 %v1031_v1 }
 0x41c   : > { %v1027_v3 = vpop.f32.mrf.mxu0 }
 0x48d   : > { %v1033_v11 = vpop.xlane.xlu2 %1032 }
 0x48e   : > { %v1041_v12 = vmul.f32 %v1040_v10, %v1033_v11 }
 0x490   : > { %v1042_v13 = vsub.f32 %v1030_v0, %v1041_v12 }
 0x492   : > { %v1043_v14 = vmul.f32 %v1042_v13, %v1042_v13 }
 0x494   : > { %v1044_v15 = vsel %vm469_vm0, %v1043_v14, 0.0 }
 0x495   : > { %1045 = vadd.xlane.f32.xlu1 %v1044_v15 }
 0x508   : > { %v1046_v8 = vpop.xlane.xlu1 %1045 }
 0x509   : > { %v1047_v16 = vmul.f32 %v1046_v8, %v1040_v10 }
 0x50b   : > { %v1048_v17 = vadd.f32 1e-05, %v1047_v16 }
 0x50d   : > { %1344 = vrsqrt.f32 %v1048_v17  ;;  %vm1055_vm11 = vweird.f32 %v1048_v17 }
 0x513   : > { %v1345_v18 = vpop.eup %1344 }
 0x514   : > { %v1050_v19 = vmul.f32 %v1345_v18, %v1048_v17  ;;  %vm1056_vm10 = vweird.f32 %v1345_v18 }
 0x515   : > { %vm1057_vm12 = vmor %vm1055_vm11, %vm1056_vm10 }
 0x516   : > { %v1051_v20 = vmul.f32 %v1345_v18, %v1050_v19 }
 0x518   : > { %v1052_v21 = vmul.f32 0.5, %v1051_v20 }
 0x51a   : > { %v1053_v22 = vsub.f32 1.5, %v1052_v21 }
 0x51c   : > { %v1054_v23 = vmul.f32 %v1345_v18, %v1053_v22 }
 0x51e   : > { %v1058_v25 = vsel %vm1057_vm12, %v1345_v18, %v1054_v23 }
 0x51f   : > { %v1059_v27 = vmul.f32 %v1058_v25, %v1042_v13 }
 0x521   : > { %v1064_v28 = vmul.f32 %v1316_v24, %v1059_v27 }
 0x523   : > { %v1069_v29 = vadd.f32 %v1317_v26, %v1064_v28 }
 0x525   : > { %1070 = vst.msk [vmem:[%s427_s14] sm:$0xff] %vm469_vm0, %v1069_v29 }
 0x526 PF: > { %s19_s11 = sadd.s32 1, %s1368_s11   ;;  %s1653_s30 = smov %s1364_s10 }
 0x527   : > { %p16_p5 = scmp.ge.s32.totalorder %s19_s11, 4   ;;  %s1654_s10 = smov %s1656_s12 }
 0x529   :  { %18 = sbr.rel (!%p16_p5) target bundleno = 2 (0x2), region = 116 }

// kernel: decoder_layer.8
= control target key start
LH: loop header
LB: loop body
LE: loop exit
PB: predicated region body
PF: predicated region fallthrough
CT: control target
= control target key end

     0   :  { %s1494_s30 = smov 0   ;;  %s1496_s10 = smov 0   ;;  %s1694_s0 = inlined_call_operand.vmem [shape: f32[2,8,32], index: 0, kind: input, shape index: {}]   ;;  %s1695_s1 = inlined_call_operand.vmem [shape: bf16[4,32,8], index: 1, kind: input, shape index: {}]   ;;  %s1696_s2 = inlined_call_operand.vmem [shape: f32[4,1,8], index: 2, kind: input, shape index: {}]   ;;  %s1697_s3 = inlined_call_operand.vmem [shape: bf16[2,4,16,8], index: 3, kind: input, shape index: {}]   ;;  %s1698_s4 = inlined_call_operand.vmem [shape: bf16[2,4,16,8], index: 4, kind: input, shape index: {}]   ;;  %s1699_s5 = inlined_call_operand.vmem [shape: bf16[32,32], index: 5, kind: input, shape index: {}]   ;;  %s1700_s6 = inlined_call_operand.vmem [shape: f32[1,32], index: 6, kind: input, shape index: {}]   ;;  %s1701_s7 = inlined_call_operand.vmem [shape: f32[1,32], index: 7, kind: input, shape index: {}]   ;;  %s1702_s8 = inlined_call_operand.vmem [shape: f32[1,32], index: 8, kind: input, shape index: {}]   ;;  %s1703_s9 = inlined_call_operand.vmem [shape: f32[2,8,32], index: 9, kind: output, shape index: {}]  }
   0x1   :  { %s1498_s11 = smov 0  }
   0x2 LB: > { %s38_s12 = sadd.s32 1, %s1431_s10  ;;  %p1215_p0 = scmp.ge.s32.totalorder %s1435_s11, 1  ;;  %s1435_s11 = sphi %s1498_s11, %s19_s11   ;;  %s1431_s10 = sphi %s1496_s10, %s1705_s10   ;;  %s1427_s30 = sphi %s1494_s30, %s1704_s30  }
   0x3   : > { %p40_p1 = scmp.ge.s32.totalorder %s38_s12, 2  ;;  %p346_p2 = scmp.lt.s32.totalorder %s1435_s11, 3 }
   0x5   : > { %s1707_s12 = smov (%p40_p1, %s38_s12), 0  ;;  %p347_p3 = pnand %p1215_p0, %p346_p2 }
   0x6   : > { %p404_p4 = scmp.lt.s32.totalorder (!%p347_p3), %s1427_s30, 1  ;;  %s1442_s17 = smov (!%p347_p3), 16  }
   0x7   : > { %350 = sbr.rel (%p347_p3) target bundleno = 1317 (0x525), region = 56 }
   0xc   : > { %v1329_v0 = vld [vmem:[%s1695_s1 + $0x18] sm:$0xff]  ;;  %v1331_v1 = vld [vmem:[%s1695_s1 + $0x28] sm:$0xff]  ;;  %v1328_v2 = vld [vmem:[%s1695_s1 + $0x10] sm:$0xff]  ;;  %s1709_s30 = smov (!%p404_p4, %s1427_s30), 1  ;;  %vm479_vm0 = vcmask 261120   ;;  %vm452_vm1 = vcmask 64512  }
   0xd   : > { %v1333_v3 = vld [vmem:[%s1695_s1 + $0x38] sm:$0xff]  ;;  %527 = vmatpush.bf16.msra.mxu1 %v1329_v0  ;;  %565 = vmatpush.bf16.msra.mxu2 %v1331_v1  ;;  %v1330_v4 = vld [vmem:[%s1695_s1 + $0x20] sm:$0xff]  ;;  %v1327_v5 = vld [vmem:[%s1695_s1 + $0x8] sm:$0xff]  ;;  %s1216_s27 = sshll.u32 %s1709_s30, 3  ;;  %s1324_s16 = sshll.u32 %s1709_s30, 5  ;;  %vm497_vm2 = vcmask 60416  }
   0xe   : > { %603 = vmatpush.bf16.msra.mxu3 %v1333_v3  ;;  %v1332_v6 = vld [vmem:[%s1695_s1 + $0x30] sm:$0xff]  ;;  %489 = vmatpush.bf16.msra.mxu0 %v1327_v5  ;;  %v1326_v7 = vld [vmem:[%s1695_s1] sm:$0xff]  ;;  %s410_s15 = scalar_lea.vmem %s1694_s0, %s1216_s27  ;;  %s419_s19 = scalar_lea.vmem %s1697_s3, %s1324_s16  ;;  %vm443_vm3 = vcmask 7168   ;;  %v1437_v42 = vmov -1e+30   ;;  %vm726_vm4 = vcmask 130048  }
   0xf   : > { %v1544_v8 = vld [vmem:[%s410_s15] sm:$0xff]  ;;  %v1335_v10 = vld [vmem:[%s419_s19 + $0x8] sm:$0xff]  ;;  %v1336_v11 = vld [vmem:[%s419_s19 + $0x10] sm:$0xff]  ;;  %445 = vst.msk [vmem:[#allocation3 + $0x8] sm:$0xff] %vm443_vm3, %v1437_v42  ;;  %v1438_v55 = vmov 0   ;;  %v1439_v56 = vmov 0.0   ;;  %s429_s14 = scalar_lea.vmem %s1698_s4, %s1324_s16 }
  0x10   : > { %v458_v9 = vpack.c.bf16 %v1544_v8, %v1544_v8  ;;  %v659_v12 = vsel %vm452_vm1, %v1335_v10, 0  ;;  %v683_v13 = vsel %vm452_vm1, %v1336_v11, 0  ;;  %v1337_v14 = vld [vmem:[%s419_s19 + $0x18] sm:$0xff]  ;;  %v1334_v16 = vld [vmem:[%s419_s19] sm:$0xff]  ;;  %444 = vst.msk [vmem:[#allocation3] sm:$0xff] %vm443_vm3, %v1437_v42  ;;  %1377 = vset.pattern.permute.xlu0 %v1438_v55  ;;  %1375 = vset.pattern.permute.xlu1 %v1438_v55  ;;  %v1339_v11 = vld [vmem:[%s429_s14 + $0x8] sm:$0xff] }
  0x11   : > { %528 = vmatpush.bf16.msra.mxu1 %v1328_v2  ;;  %566 = vmatpush.bf16.msra.mxu2 %v1330_v4  ;;  %v707_v15 = vsel %vm452_vm1, %v1337_v14, 0  ;;  %v635_v17 = vsel %vm452_vm1, %v1334_v16, 0  ;;  %v1378_v18 = vld [vmem:[%s1696_s2 + $0x1] ss:$0 sm:$0xff]  ;;  %v1381_v19 = vld [vmem:[%s1696_s2] ss:$0 sm:$0xff] }
  0x12   : > { %604 = vmatpush.bf16.msra.mxu3 %v1332_v6  ;;  %490 = vmatpush.bf16.msra.mxu0 %v1326_v7  ;;  %v1379_v24 = vld [vmem:[%s1696_s2 + $0x2] ss:$0 sm:$0xff]  ;;  %v1380_v26 = vld [vmem:[%s1696_s2 + $0x3] ss:$0 sm:$0xff]  ;;  %446 = vst.msk [vmem:[#allocation3 + $0x10] sm:$0xff] %vm443_vm3, %v1437_v42  ;;  %v1341_v10 = vld [vmem:[%s429_s14 + $0x18] sm:$0xff] }
  0x13   : > { %447 = vst.msk [vmem:[#allocation3 + $0x18] sm:$0xff] %vm443_vm3, %v1437_v42  ;;  %1376 = vset.pattern.permute.xlu2 %v1438_v55  ;;  %s1440_s15 = smov 8   ;;  %s1441_s16 = smov 24   ;;  %vm987_vm5 = vcmask 130112   ;;  %vm1001_vm6 = vcmask 195712   ;;  %vm1015_vm7 = vcmask 261312  }
  0x14   : > { %1244 = vmatmul.msk.bf16.vlgmr.msra.gmra.mxu1 %vm479_vm0, %v458_v9  ;;  %1258 = vmatmul.msk.bf16.vlgmr.msra.gmra.mxu2 %vm479_vm0, %v458_v9  ;;  %451 = vst.msk [vmem:[#allocation4 + $0x18] sm:$0xff] %vm443_vm3, %v1439_v56 }
  0x15   : > { %1272 = vmatmul.msk.bf16.vlgmr.msra.gmra.mxu3 %vm479_vm0, %v458_v9  ;;  %1230 = vmatmul.msk.bf16.vlgmr.msra.gmra.mxu0 %vm479_vm0, %v458_v9  ;;  %448 = vst.msk [vmem:[#allocation4] sm:$0xff] %vm443_vm3, %v1439_v56 }
  0x16   : > { %668 = vmatpush.bf16.xpose.msrb.mxu1 %v659_v12  ;;  %692 = vmatpush.bf16.xpose.msrb.mxu2 %v683_v13  ;;  %449 = vst.msk [vmem:[#allocation4 + $0x8] sm:$0xff] %vm443_vm3, %v1439_v56  ;;  %v1607_v57 = vld [vmem:[#allocation3 + $0x8] sm:$0xff]  ;;  %v1338_v12 = vld [vmem:[%s429_s14] sm:$0xff]  ;;  %v1340_v13 = vld [vmem:[%s429_s14 + $0x10] sm:$0xff]  ;;  %s437_s14 = scalar_lea.vmem %s1703_s9, %s1216_s27 }
  0x17   : > { %716 = vmatpush.bf16.xpose.msrb.mxu3 %v707_v15  ;;  %644 = vmatpush.bf16.xpose.msrb.mxu0 %v635_v17  ;;  %450 = vst.msk [vmem:[#allocation4 + $0x10] sm:$0xff] %vm443_vm3, %v1439_v56  ;;  %v1609_v59 = vld [vmem:[#allocation3] sm:$0xff] }
  0x18   : > { %453 = vst.msk [vmem:[#allocation5] sm:$0xff] %vm452_vm1, %v1439_v56 }
  0x19   : > { %454 = vst.msk [vmem:[#allocation5 + $0x8] sm:$0xff] %vm452_vm1, %v1439_v56  ;;  %v724_v1 = vld [vmem:[#allocation3 + $0x10] sm:$0xff] }
  0x1a   : > { %455 = vst.msk [vmem:[#allocation5 + $0x10] sm:$0xff] %vm452_vm1, %v1439_v56  ;;  %v725_v5 = vld [vmem:[#allocation3 + $0x18] sm:$0xff] }
  0x1b   : > { %456 = vst.msk [vmem:[#allocation5 + $0x18] sm:$0xff] %vm452_vm1, %v1439_v56 }
  0x1e   : > { %894 = vmatpush.bf16.msra.mxu1 %v1339_v11  ;;  %916 = vmatpush.bf16.msra.mxu2 %v1340_v13 }
  0x1f   : > { %938 = vmatpush.bf16.msra.mxu3 %v1341_v10  ;;  %872 = vmatpush.bf16.msra.mxu0 %v1338_v12 }
  0x91   : > { %v530_v20 = vpop.f32.mrf.mxu1 }
  0x92   : > { %v531_v21 = vadd.f32 %v1378_v18, %v530_v20  ;;  %v492_v22 = vpop.f32.mrf.mxu0 }
  0x93   : > { %v493_v25 = vadd.f32 %v1381_v19, %v492_v22 }
  0x94   : > { %v534_v23 = vpack.c.bf16 %v531_v21, %v531_v21 }
  0x95   : > { %v496_v27 = vpack.c.bf16 %v493_v25, %v493_v25 }
  0x96   : > { %536 = vst.msk [vmem:[#allocation2 + $0x4] sm:$0xf] %vm497_vm2, %v534_v23 }
  0x97   : > { %v568_v28 = vpop.f32.mrf.mxu2  ;;  %498 = vst.msk [vmem:[#allocation2] sm:$0xf] %vm497_vm2, %v496_v27 }
  0x98   : > { %v569_v29 = vadd.f32 %v1379_v24, %v568_v28  ;;  %v606_v30 = vpop.f32.mrf.mxu3 }
  0x99   : > { %v607_v31 = vadd.f32 %v1380_v26, %v606_v30  ;;  %v532_v32 = vpop.f32.mrf.mxu1 }
  0x9a   : > { %v572_v33 = vpack.c.bf16 %v569_v29, %v569_v29  ;;  %v494_v35 = vpop.f32.mrf.mxu0 }
  0x9b   : > { %v610_v34 = vpack.c.bf16 %v607_v31, %v607_v31 }
  0x9c   : > { %574 = vst.msk [vmem:[#allocation2 + $0x8] sm:$0xf] %vm497_vm2, %v572_v33 }
  0x9d   : > { %v614_v36 = vld [vmem:[#allocation2 + $0x4] sm:$0xf]  ;;  %612 = vst.msk [vmem:[#allocation2 + $0xc] sm:$0xf] %vm497_vm2, %v610_v34 }
  0x9e   : > { %1282 = vmatmul.msk.bf16.vlgmr.msrb.gmra.mxu1 %vm452_vm1, %v614_v36  ;;  %v613_v38 = vld [vmem:[#allocation2] sm:$0xf] }
  0x9f   : > { %v570_v37 = vpop.f32.mrf.mxu2  ;;  %1277 = vmatmul.msk.bf16.vlgmr.msrb.gmra.mxu0 %vm452_vm1, %v613_v38 }
  0xa0   : > { %v608_v39 = vpop.f32.mrf.mxu3 }
  0xa3   : > { %v615_v40 = vld [vmem:[#allocation2 + $0x8] sm:$0xf] }
  0xa4   : > { %1287 = vmatmul.msk.bf16.vlgmr.msrb.gmra.mxu2 %vm452_vm1, %v615_v40  ;;  %v616_v41 = vld [vmem:[#allocation2 + $0xc] sm:$0xf] }
  0xa5   : > { %1292 = vmatmul.msk.bf16.vlgmr.msrb.gmra.mxu3 %vm452_vm1, %v616_v41 }
 0x11b   : > { %v1586_v43 = vpop.f32.mrf.mxu1 }
 0x11c   : > { %v730_v44 = vsel %vm726_vm4, %v1586_v43, -inf  ;;  %v1590_v45 = vpop.f32.mrf.mxu0 }
 0x11d   : > { %731 = vmax.xlane.f32.xlu1 %v730_v44  ;;  %v727_v46 = vsel %vm726_vm4, %v1590_v45, -inf  ;;  %v790_v44 = vld [vmem:[#allocation4 + $0x18] sm:$0xff] }
 0x11e   : > { %728 = vmax.xlane.f32.xlu2 %v727_v46 }
 0x123   : > { %v672_v47 = vpop.f32.mrf.mxu1 }
 0x124   : > { %v648_v48 = vpop.f32.mrf.mxu0 }
 0x125   : > { %v788_v48 = vld [vmem:[#allocation4 + $0x8] sm:$0xff] }
 0x127   : > { %v1594_v49 = vpop.f32.mrf.mxu2 }
 0x128   : > { %v733_v50 = vsel %vm726_vm4, %v1594_v49, -inf  ;;  %v718_v51 = vpop.f32.mrf.mxu3 }
 0x129   : > { %734 = vmax.xlane.f32.xlu0 %v733_v50  ;;  %v736_v52 = vsel %vm726_vm4, %v718_v51, -inf }
 0x12f   : > { %v696_v53 = vpop.f32.mrf.mxu2 }
 0x130   : > { %v720_v54 = vpop.f32.mrf.mxu3 }
 0x131   : > { %737 = vmax.xlane.f32.xlu0 %v736_v52  ;;  %v787_v54 = vld [vmem:[#allocation4] sm:$0xff] }
 0x190   : > { %v732_v58 = vpop.xlane.xlu1 %731 }
 0x191   : > { %v1612_v60 = vmax.f32 %v1607_v57, %v732_v58  ;;  %v729_v61 = vpop.xlane.xlu2 %728 }
 0x192   : > { %v1620_v63 = vmax.f32 %v1609_v59, %v729_v61 }
 0x193   : > { %v744_v62 = vsub.f32 %v1607_v57, %v1612_v60  ;;  %953 = vst.msk [vmem:[#allocation3 + $0x8] sm:$0xff] %vm443_vm3, %v1612_v60  ;;  %762 = vperm.xlu0 %1377, %v1612_v60   ;;  %v789_v57 = vld [vmem:[#allocation4 + $0x10] sm:$0xff] }
 0x194   : > { %v743_v0 = vsub.f32 %v1609_v59, %v1620_v63  ;;  %952 = vst.msk [vmem:[#allocation3] sm:$0xff] %vm443_vm3, %v1620_v63 }
 0x195   : > { %v749_v41 = vmul.f32 1.442695, %v744_v62 }
 0x19c   : > { %v735_v2 = vpop.xlane.xlu0 %734 }
 0x19d   : > { %v741_v3 = vmax.f32 %v724_v1, %v735_v2 }
 0x19f   : > { %v745_v4 = vsub.f32 %v724_v1, %v741_v3  ;;  %954 = vst.msk [vmem:[#allocation3 + $0x10] sm:$0xff] %vm443_vm3, %v741_v3  ;;  %767 = vperm.xlu1 %1375, %v741_v3   ;;  %v819_v1 = vld [vmem:[#allocation5 + $0x18] sm:$0xff] }
 0x1a1   : > { %v751_v40 = vmul.f32 1.442695, %v745_v4 }
 0x1a4   : > { %v738_v6 = vpop.xlane.xlu0 %737 }
 0x1a5   : > { %v742_v7 = vmax.f32 %v725_v5, %v738_v6 }
 0x1a7   : > { %v746_v9 = vsub.f32 %v725_v5, %v742_v7  ;;  %955 = vst.msk [vmem:[#allocation3 + $0x18] sm:$0xff] %vm443_vm3, %v742_v7  ;;  %772 = vperm.xlu2 %1376, %v742_v7  }
 0x1a9   : > { %v753_v34 = vmul.f32 1.442695, %v746_v9  ;;  %v817_v9 = vld [vmem:[#allocation5 + $0x8] sm:$0xff] }
 0x1af   : > { %757 = vperm.xlu2 %1376, %v1620_v63  }
 0x201   : > { %v773_v14 = vpop.permute.xlu2 %772 }
 0x202   : > { %v778_v15 = vsub.f32 %v718_v51, %v773_v14 }
 0x204   : > { %v785_v16 = vmul.f32 1.442695, %v778_v15 }
 0x205   : > { %v763_v17 = vpop.permute.xlu0 %762 }
 0x206   : > { %1385 = vpow2.f32 %v785_v16  ;;  %v776_v18 = vsub.f32 %v1586_v43, %v763_v17 }
 0x208   : > { %v781_v19 = vmul.f32 1.442695, %v776_v18 }
 0x209   : > { %v758_v20 = vpop.permute.xlu2 %757 }
 0x20a   : > { %1387 = vpow2.f32 %v781_v19  ;;  %v775_v21 = vsub.f32 %v1590_v45, %v758_v20  ;;  %v747_v45 = vmul.f32 1.442695, %v743_v0 }
 0x20c   : > { %v1386_v22 = vpop.eup %1385  ;;  %v779_v23 = vmul.f32 1.442695, %v775_v21 }
 0x20d   : > { %v847_v24 = vpack.c.bf16 %v1386_v22, %v1386_v22  ;;  %v804_v25 = vsel %vm726_vm4, %v1386_v22, 0.0  ;;  %v818_v22 = vld [vmem:[#allocation5 + $0x10] sm:$0xff] }
 0x20e   : > { %1389 = vpow2.f32 %v779_v23  ;;  %805 = vadd.xlane.f32.xlu0 %v804_v25 }
 0x20f   : > { %1312 = vmatmul.msk.bf16.vlgmr.msra.gmra.mxu3 %vm726_vm4, %v847_v24 }
 0x210   : > { %v1388_v26 = vpop.eup %1387 }
 0x211   : > { %v845_v27 = vpack.c.bf16 %v1388_v26, %v1388_v26  ;;  %v768_v28 = vpop.permute.xlu1 %767  ;;  %v798_v29 = vsel %vm726_vm4, %v1388_v26, 0.0 }
 0x212   : > { %v777_v30 = vsub.f32 %v1594_v49, %v768_v28  ;;  %799 = vadd.xlane.f32.xlu1 %v798_v29 }
 0x213   : > { %1302 = vmatmul.msk.bf16.vlgmr.msra.gmra.mxu1 %vm726_vm4, %v845_v27 }
 0x214   : > { %v1390_v31 = vpop.eup %1389  ;;  %v783_v32 = vmul.f32 1.442695, %v777_v30 }
 0x215   : > { %v844_v33 = vpack.c.bf16 %v1390_v31, %v1390_v31  ;;  %v795_v35 = vsel %vm726_vm4, %v1390_v31, 0.0 }
 0x216   : > { %1391 = vpow2.f32 %v783_v32 }
 0x217   : > { %1297 = vmatmul.msk.bf16.vlgmr.msra.gmra.mxu0 %vm726_vm4, %v844_v33  ;;  %1393 = vpow2.f32 %v753_v34 }
 0x218   : > { %1395 = vpow2.f32 %v751_v40 }
 0x219   : > { %1397 = vpow2.f32 %v749_v41 }
 0x21a   : > { %796 = vadd.xlane.f32.xlu1 %v795_v35  ;;  %1399 = vpow2.f32 %v747_v45  ;;  %v1342_v45 = vld [vmem:[%s1699_s5] sm:$0xff] }
 0x21c   : > { %v1392_v36 = vpop.eup %1391 }
 0x21d   : > { %v846_v37 = vpack.c.bf16 %v1392_v36, %v1392_v36  ;;  %v801_v38 = vsel %vm726_vm4, %v1392_v36, 0.0  ;;  %v1394_v39 = vpop.eup %1393  ;;  %v816_v36 = vld [vmem:[#allocation5] sm:$0xff] }
 0x21e   : > { %802 = vadd.xlane.f32.xlu2 %v801_v38  ;;  %v1396_v42 = vpop.eup %1395  ;;  %v794_v46 = vmul.f32 %v1394_v39, %v790_v44  ;;  %v1343_v44 = vld [vmem:[%s1699_s5 + $0x8] sm:$0xff] }
 0x21f   : > { %1307 = vmatmul.msk.bf16.vlgmr.msra.gmra.mxu2 %vm726_vm4, %v846_v37  ;;  %v1398_v43 = vpop.eup %1397  ;;  %v793_v61 = vmul.f32 %v1396_v42, %v789_v57  ;;  %1049 = vmatpush.bf16.msrb.mxu0 %v1343_v44 }
 0x220   : > { %v792_v50 = vmul.f32 %v1398_v43, %v788_v48  ;;  %v1400_v53 = vpop.eup %1399 }
 0x221   : > { %v791_v55 = vmul.f32 %v1400_v53, %v787_v54 }
 0x222   : > { %837 = vperm.xlu0 %1377, %v1394_v39  }
 0x223   : > { %1050 = vmatpush.bf16.msrb.mxu0 %v1342_v45 }
 0x233   : > { %832 = vperm.xlu1 %1375, %v1396_v42  }
 0x236   : > { %827 = vperm.xlu2 %1376, %v1398_v43  }
 0x281   : > { %v806_v47 = vpop.xlane.xlu0 %805 }
 0x282   : > { %v810_v49 = vadd.f32 %v806_v47, %v794_v46 }
 0x284   : > { %815 = vst.msk [vmem:[#allocation4 + $0x18] sm:$0xff] %vm443_vm3, %v810_v49 }
 0x285   : > { %v800_v51 = vpop.xlane.xlu1 %799 }
 0x286   : > { %v808_v52 = vadd.f32 %v800_v51, %v792_v50  ;;  %v1382_v50 = vld [vmem:[%s1700_s6] ss:$0 sm:$0xff] }
 0x288   : > { %813 = vst.msk [vmem:[#allocation4 + $0x8] sm:$0xff] %vm443_vm3, %v808_v52 }
 0x28b   : > { %v962_v4 = vld [vmem:[#allocation4 + $0x18] sm:$0xff] }
 0x28d   : > { %v797_v56 = vpop.xlane.xlu1 %796 }
 0x28e   : > { %v807_v58 = vadd.f32 %v797_v56, %v791_v55  ;;  %v1443_v56 = vmov 32.0  }
 0x28f   : > { %v960_v59 = vld [vmem:[#allocation4 + $0x8] sm:$0xff] }
 0x290   : > { %812 = vst.msk [vmem:[#allocation4] sm:$0xff] %vm443_vm3, %v807_v58  ;;  %v896_v60 = vpop.f32.mrf.mxu1  ;;  %1401 = vrcp.f32 %v960_v59 }
 0x291   : > { %v803_v62 = vpop.xlane.xlu2 %802  ;;  %1403 = vrcp.f32 %v962_v4 }
 0x292   : > { %v809_v63 = vadd.f32 %v803_v62, %v793_v61  ;;  %v940_v0 = vpop.f32.mrf.mxu3 }
 0x294   : > { %814 = vst.msk [vmem:[#allocation4 + $0x10] sm:$0xff] %vm443_vm3, %v809_v63  ;;  %v838_v2 = vpop.permute.xlu0 %837  ;;  %v874_v3 = vpop.f32.mrf.mxu0 }
 0x295   : > { %v843_v5 = vmul.f32 %v838_v2, %v819_v1 }
 0x296   : > { %v1402_v6 = vpop.eup %1401 }
 0x297   : > { %v947_v7 = vadd.f32 %v940_v0, %v843_v5  ;;  %979 = vperm.xlu2 %1376, %v1402_v6   ;;  %v959_v10 = vld [vmem:[#allocation4] sm:$0xff]  ;;  %v1404_v18 = vpop.eup %1403 }
 0x298   : > { %v898_v11 = vpop.f32.mrf.mxu1  ;;  %1405 = vrcp.f32 %v959_v10 }
 0x299   : > { %951 = vst.msk [vmem:[#allocation5 + $0x18] sm:$0xff] %vm452_vm1, %v947_v7  ;;  %v828_v12 = vpop.permute.xlu2 %827 }
 0x29a   : > { %v841_v13 = vmul.f32 %v828_v12, %v817_v9  ;;  %v942_v14 = vpop.f32.mrf.mxu3 }
 0x29b   : > { %v961_v15 = vld [vmem:[#allocation4 + $0x10] sm:$0xff] }
 0x29c   : > { %v945_v16 = vadd.f32 %v896_v60, %v841_v13  ;;  %v876_v17 = vpop.f32.mrf.mxu0  ;;  %1407 = vrcp.f32 %v961_v15  ;;  %v1383_v13 = vld [vmem:[%s1701_s7] ss:$0 sm:$0xff] }
 0x29d   : > { %1409 = vrcp.f32 %v1443_v56  ;;  %v1384_v15 = vld [vmem:[%s1702_s8] ss:$0 sm:$0xff] }
 0x29e   : > { %v1406_v19 = vpop.eup %1405  ;;  %949 = vst.msk [vmem:[#allocation5 + $0x8] sm:$0xff] %vm452_vm1, %v945_v16 }
 0x29f   : > { %1007 = vperm.xlu2 %1376, %v1404_v18   ;;  %970 = vperm.xlu0 %1377, %v1406_v19  }
 0x2a0   : > { %v1004_v30 = vld [vmem:[#allocation5 + $0x18] sm:$0xff] }
 0x2a2   : > { %v1408_v20 = vpop.eup %1407  ;;  %v918_v21 = vpop.f32.mrf.mxu2 }
 0x2a3   : > { %993 = vperm.xlu1 %1375, %v1408_v20   ;;  %v1410_v57 = vpop.eup %1409 }
 0x2a4   : > { %v1062_v58 = vmul.f32 32.0, %v1410_v57  ;;  %vm1066_vm8 = vweird.f32 %v1410_v57 }
 0x2a5   : > { %v833_v23 = vpop.permute.xlu1 %832  ;;  %v976_v27 = vld [vmem:[#allocation5 + $0x8] sm:$0xff] }
 0x2a6   : > { %v842_v24 = vmul.f32 %v833_v23, %v818_v22  ;;  %v1063_v59 = vsub.f32 1.0, %v1062_v58 }
 0x2a8   : > { %v946_v25 = vadd.f32 %v918_v21, %v842_v24  ;;  %v1064_v60 = vmul.f32 %v1410_v57, %v1063_v59 }
 0x2aa   : > { %950 = vst.msk [vmem:[#allocation5 + $0x10] sm:$0xff] %vm452_vm1, %v946_v25  ;;  %v920_v26 = vpop.f32.mrf.mxu2  ;;  %v1065_v61 = vadd.f32 %v1410_v57, %v1064_v60 }
 0x2ab   : > { %822 = vperm.xlu1 %1375, %v1400_v53  }
 0x2ac   : > { %v1067_v62 = vsel %vm1066_vm8, %v1410_v57, %v1065_v61 }
 0x2b1   : > { %v990_v33 = vld [vmem:[#allocation5 + $0x10] sm:$0xff] }
 0x2f1   : > { %v980_v28 = vpop.permute.xlu2 %979 }
 0x2f2   : > { %v982_v29 = vmul.f32 %v980_v28, %v976_v27 }
 0x2f4   : > { %984 = vrot.lane.b32.xlu2 %v982_v29, %s1440_s15 }
 0x2f9   : > { %v1008_v31 = vpop.permute.xlu2 %1007 }
 0x2fa   : > { %v1010_v32 = vmul.f32 %v1008_v31, %v1004_v30 }
 0x2fc   : > { %1012 = vrot.lane.b32.xlu0 %v1010_v32, %s1441_s16 }
 0x311   : > { %v971_v40 = vpop.permute.xlu0 %970 }
 0x315   : > { %v994_v34 = vpop.permute.xlu1 %993 }
 0x316   : > { %v996_v35 = vmul.f32 %v994_v34, %v990_v33 }
 0x318   : > { %998 = vrot.lane.b32.xlu1 %v996_v35, %s1442_s17 }
 0x31d   : > { %v823_v37 = vpop.permute.xlu1 %822 }
 0x31e   : > { %v840_v38 = vmul.f32 %v823_v37, %v816_v36 }
 0x320   : > { %v944_v39 = vadd.f32 %v874_v3, %v840_v38 }
 0x322   : > { %948 = vst.msk [vmem:[#allocation5] sm:$0xff] %vm452_vm1, %v944_v39 }
 0x329   : > { %v967_v41 = vld [vmem:[#allocation5] sm:$0xff] }
 0x32a   : > { %v973_v42 = vmul.f32 %v971_v40, %v967_v41 }
 0x32c   : > { %974 = vst.msk [vmem:[#allocation6] sm:$0xff] %vm452_vm1, %v973_v42 }
 0x34e   : > { %v985_v43 = vpop.permute.xlu2 %984 }
 0x34f   : > { %988 = vst.msk [vmem:[#allocation6] sm:$0xff] %vm987_vm5, %v985_v43 }
 0x36e   : > { %v1013_v47 = vpop.permute.xlu0 %1012 }
 0x38a   : > { %v999_v46 = vpop.permute.xlu1 %998 }
 0x38b   : > { %1002 = vst.msk [vmem:[#allocation6] sm:$0xff] %vm1001_vm6, %v999_v46 }
 0x38c   : > { %1016 = vst.msk [vmem:[#allocation6] sm:$0xff] %vm1015_vm7, %v1013_v47 }
 0x393   : > { %v1017_v48 = vld [vmem:[#allocation6] sm:$0xff] }
 0x394   : > { %v1018_v49 = vpack.c.bf16 %v1017_v48, %v1017_v48 }
 0x396   : > { %1321 = vmatmul.msk.bf16.vlgmr.msrb.gmra.mxu0 %vm479_vm0, %v1018_v49 }
 0x413   : > { %v1052_v51 = vpop.f32.mrf.mxu0 }
 0x414   : > { %v1053_v52 = vadd.f32 %v1382_v50, %v1052_v51 }
 0x416   : > { %v1057_v53 = vadd.f32 %v1053_v52, %v1544_v8 }
 0x418   : > { %v1058_v54 = vsel %vm479_vm0, %v1057_v53, 0.0 }
 0x419   : > { %1059 = vadd.xlane.f32.xlu2 %v1058_v54 }
 0x41b   : > { %v1054_v55 = vpop.f32.mrf.mxu0 }
 0x48c   : > { %v1060_v63 = vpop.xlane.xlu2 %1059 }
 0x48d   : > { %v1068_v0 = vmul.f32 %v1067_v62, %v1060_v63 }
 0x48f   : > { %v1069_v1 = vsub.f32 %v1057_v53, %v1068_v0 }
 0x491   : > { %v1070_v2 = vmul.f32 %v1069_v1, %v1069_v1 }
 0x493   : > { %v1071_v3 = vsel %vm479_vm0, %v1070_v2, 0.0 }
 0x494   : > { %1072 = vadd.xlane.f32.xlu1 %v1071_v3 }
 0x507   : > { %v1073_v8 = vpop.xlane.xlu1 %1072 }
 0x508   : > { %v1074_v4 = vmul.f32 %v1073_v8, %v1067_v62 }
 0x50a   : > { %v1075_v5 = vadd.f32 1e-05, %v1074_v4 }
 0x50c   : > { %1411 = vrsqrt.f32 %v1075_v5  ;;  %vm1082_vm10 = vweird.f32 %v1075_v5 }
 0x512   : > { %v1412_v6 = vpop.eup %1411 }
 0x513   : > { %v1077_v7 = vmul.f32 %v1412_v6, %v1075_v5  ;;  %vm1083_vm9 = vweird.f32 %v1412_v6 }
 0x514   : > { %vm1084_vm11 = vmor %vm1082_vm10, %vm1083_vm9 }
 0x515   : > { %v1078_v9 = vmul.f32 %v1412_v6, %v1077_v7 }
 0x517   : > { %v1079_v10 = vmul.f32 0.5, %v1078_v9 }
 0x519   : > { %v1080_v11 = vsub.f32 1.5, %v1079_v10 }
 0x51b   : > { %v1081_v12 = vmul.f32 %v1412_v6, %v1080_v11 }
 0x51d   : > { %v1085_v14 = vsel %vm1084_vm11, %v1412_v6, %v1081_v12 }
 0x51e   : > { %v1086_v16 = vmul.f32 %v1085_v14, %v1069_v1 }
 0x520   : > { %v1091_v17 = vmul.f32 %v1383_v13, %v1086_v16 }
 0x522   : > { %v1096_v18 = vadd.f32 %v1384_v15, %v1091_v17 }
 0x524   : > { %1097 = vst.msk [vmem:[%s437_s14] sm:$0xff] %vm479_vm0, %v1096_v18 }
 0x525 PF: > { %s19_s11 = sadd.s32 1, %s1435_s11   ;;  %s1704_s30 = smov %s1431_s10 }
 0x526   : > { %p16_p5 = scmp.ge.s32.totalorder %s19_s11, 4   ;;  %s1705_s10 = smov %s1707_s12 }
 0x528   :  { %18 = sbr.rel (!%p16_p5) target bundleno = 2 (0x2), region = 112 }

// kernel: decoder_layer.9
= control target key start
LH: loop header
LB: loop body
LE: loop exit
PB: predicated region body
PF: predicated region fallthrough
CT: control target
= control target key end

     0   :  { %s401_s0 = inlined_call_operand.vmem [shape: f32[16,32], index: 0, kind: input, shape index: {}]   ;;  %s402_s1 = inlined_call_operand.vmem [shape: bf16[32,64], index: 1, kind: input, shape index: {}]   ;;  %s403_s2 = inlined_call_operand.vmem [shape: f32[1,64], index: 2, kind: input, shape index: {}]   ;;  %s404_s3 = inlined_call_operand.vmem [shape: bf16[64,32], index: 3, kind: input, shape index: {}]   ;;  %s405_s4 = inlined_call_operand.vmem [shape: f32[1,32], index: 4, kind: input, shape index: {}]   ;;  %s406_s5 = inlined_call_operand.vmem [shape: f32[1,32], index: 5, kind: input, shape index: {}]   ;;  %s407_s6 = inlined_call_operand.vmem [shape: f32[1,32], index: 6, kind: input, shape index: {}]   ;;  %s408_s7 = inlined_call_operand.hbm [shape: f32[16,32], index: 7, kind: output, shape index: {}]  }
   0x1   :  { %v260_v0 = vld [vmem:[%s402_s1 + $0x8] sm:$0xff]  ;;  %v259_v1 = vld [vmem:[%s402_s1] sm:$0xff] }
   0x2   :  { %v35_v2 = vld [vmem:[%s401_s0] sm:$0xff]  ;;  %v36_v3 = vld [vmem:[%s401_s0 + $0x8] sm:$0xff]  ;;  %68 = vmatpush.bf16.msra.mxu0 %v260_v0 }
   0x3   :  { %12 = vsyncpa [#allocation4], 0  ;;  %v37_v4 = vpack.c.bf16 %v36_v3, %v35_v2  ;;  %vm32_vm0 = vcmask 261120   ;;  %v264_v5 = vld [vmem:[%s404_s3 + $0x18] sm:$0xff]  ;;  %v263_v6 = vld [vmem:[%s404_s3 + $0x10] sm:$0xff]  ;;  %v306_v9 = vmov 0.0  }
   0x4   :  { %121 = vmatpush.bf16.msra.mxu1 %v264_v5  ;;  %v262_v7 = vld [vmem:[%s404_s3 + $0x8] sm:$0xff]  ;;  %v261_v8 = vld [vmem:[%s404_s3] sm:$0xff]  ;;  %33 = vst.msk [vmem:[#allocation2] sm:$0xff] %vm32_vm0, %v306_v9  ;;  %vm113_vm1 = vcmask 523264   ;;  %v307_v33 = vmov 32.0   ;;  %s221_s23 = sshll.u32 %s408_s7, 4  ;;  %s222_s23 = int_to_ptr.hbm [resolvable:$true] %s221_s23 }
   0x5   :  { %34 = vst.msk [vmem:[#allocation2 + $0x8] sm:$0xff] %vm32_vm0, %v306_v9  ;;  %v270_v11 = vld [vmem:[%s403_s2] ss:$0 sm:$0xff]  ;;  %274 = vrcp.f32 %v307_v33  ;;  %s310_s24 = smov 8  }
   0x6   :  { %69 = vmatpush.bf16.msra.mxu0 %v259_v1  ;;  %v271_v24 = vld [vmem:[%s405_s4] ss:$0 sm:$0xff] }
   0x7   :  { %v272_v0 = vld [vmem:[%s406_s5] ss:$0 sm:$0xff]  ;;  %s308_s5 = smov [#allocation3]  }
   0x8   :  { %122 = vmatpush.bf16.msra.mxu1 %v263_v6  ;;  %s219_s20 = sshll.u32 %s308_s5, 4  ;;  %s220_s20 = int_to_ptr.vmem [resolvable:$true] %s219_s20 }
   0x9   :  { %241 = vmatmul.msk.bf16.vlgmr.msra.gmra.mxu0 %vm32_vm0, %v37_v4  ;;  %v273_v4 = vld [vmem:[%s407_s6] ss:$0 sm:$0xff]  ;;  %s309_s6 = smov 128  }
   0xb   :  { %v78_v18 = vld [vmem:[#allocation2] sm:$0xff]  ;;  %v275_v34 = vpop.eup %274 }
   0xc   :  { %123 = vmatpush.bf16.msra.mxu1 %v262_v7  ;;  %v79_v21 = vld [vmem:[#allocation2 + $0x8] sm:$0xff]  ;;  %v157_v35 = vmul.f32 32.0, %v275_v34  ;;  %vm161_vm2 = vweird.f32 %v275_v34 }
   0xe   :  { %v158_v36 = vsub.f32 1.0, %v157_v35 }
  0x10   :  { %124 = vmatpush.bf16.msra.mxu1 %v261_v8  ;;  %v159_v37 = vmul.f32 %v275_v34, %v158_v36 }
  0x12   :  { %v160_v38 = vadd.f32 %v275_v34, %v159_v37 }
  0x14   :  { %v162_v39 = vsel %vm161_vm2, %v275_v34, %v160_v38 }
  0x86   :  { %v71_v10 = vpop.f32.mrf.mxu0 }
  0x87   :  { %v72_v12 = vadd.f32 %v270_v11, %v71_v10 }
  0x89   :  { %v76_v15 = vmax.f32 %v72_v12, 0.0 }
  0x8e   :  { %v73_v13 = vpop.f32.mrf.mxu0 }
  0x8f   :  { %v74_v14 = vadd.f32 %v270_v11, %v73_v13 }
  0x91   :  { %v77_v16 = vmax.f32 %v74_v14, 0.0 }
  0x93   :  { %v80_v17 = vpack.c.bf16 %v77_v16, %v76_v15 }
  0x95   :  { %258 = vmatmul.msk.bf16.vlgmr.msra.gmra.mxu1 %vm113_vm1, %v80_v17 }
 0x112   :  { %v126_v19 = vpop.f32.mrf.mxu1 }
 0x113   :  { %v131_v20 = vadd.f32 %v126_v19, %v78_v18 }
 0x115   :  { %133 = vst.msk [vmem:[#allocation2] sm:$0xff] %vm32_vm0, %v131_v20 }
 0x11a   :  { %v128_v22 = vpop.f32.mrf.mxu1 }
 0x11b   :  { %v132_v23 = vadd.f32 %v128_v22, %v79_v21 }
 0x11c   :  { %v140_v25 = vld [vmem:[#allocation2] sm:$0xff] }
 0x11d   :  { %134 = vst.msk [vmem:[#allocation2 + $0x8] sm:$0xff] %vm32_vm0, %v132_v23  ;;  %v142_v26 = vadd.f32 %v140_v25, %v35_v2 }
 0x11f   :  { %v148_v27 = vadd.f32 %v271_v24, %v142_v26 }
 0x121   :  { %v150_v28 = vsel %vm32_vm0, %v148_v27, 0.0 }
 0x122   :  { %151 = vadd.xlane.f32.xlu0 %v150_v28 }
 0x124   :  { %v141_v29 = vld [vmem:[#allocation2 + $0x8] sm:$0xff] }
 0x125   :  { %v143_v30 = vadd.f32 %v141_v29, %v36_v3 }
 0x127   :  { %v149_v31 = vadd.f32 %v271_v24, %v143_v30 }
 0x129   :  { %v153_v32 = vsel %vm32_vm0, %v149_v31, 0.0 }
 0x12a   :  { %154 = vadd.xlane.f32.xlu0 %v153_v32 }
 0x195   :  { %v152_v40 = vpop.xlane.xlu0 %151 }
 0x196   :  { %v163_v41 = vmul.f32 %v162_v39, %v152_v40 }
 0x198   :  { %v165_v42 = vsub.f32 %v148_v27, %v163_v41 }
 0x19a   :  { %v167_v43 = vmul.f32 %v165_v42, %v165_v42 }
 0x19c   :  { %v169_v44 = vsel %vm32_vm0, %v167_v43, 0.0 }
 0x19d   :  { %170 = vadd.xlane.f32.xlu1 %v169_v44  ;;  %v155_v45 = vpop.xlane.xlu0 %154 }
 0x19e   :  { %v164_v46 = vmul.f32 %v162_v39, %v155_v45 }
 0x1a0   :  { %v166_v47 = vsub.f32 %v149_v31, %v164_v46 }
 0x1a2   :  { %v168_v48 = vmul.f32 %v166_v47, %v166_v47 }
 0x1a4   :  { %v172_v49 = vsel %vm32_vm0, %v168_v48, 0.0 }
 0x1a5   :  { %173 = vadd.xlane.f32.xlu1 %v172_v49 }
 0x210   :  { %v171_v50 = vpop.xlane.xlu1 %170 }
 0x211   :  { %v175_v51 = vmul.f32 %v171_v50, %v162_v39 }
 0x213   :  { %v177_v52 = vadd.f32 1e-05, %v175_v51 }
 0x215   :  { %276 = vrsqrt.f32 %v177_v52  ;;  %vm185_vm4 = vweird.f32 %v177_v52 }
 0x218   :  { %v174_v53 = vpop.xlane.xlu1 %173 }
 0x219   :  { %v176_v54 = vmul.f32 %v174_v53, %v162_v39 }
 0x21b   :  { %v277_v55 = vpop.eup %276  ;;  %v178_v56 = vadd.f32 1e-05, %v176_v54 }
 0x21c   :  { %v180_v57 = vmul.f32 %v277_v55, %v177_v52  ;;  %vm186_vm3 = vweird.f32 %v277_v55 }
 0x21d   :  { %278 = vrsqrt.f32 %v178_v56  ;;  %vm187_vm5 = vmor %vm185_vm4, %vm186_vm3  ;;  %vm195_vm7 = vweird.f32 %v178_v56 }
 0x21e   :  { %v181_v58 = vmul.f32 %v277_v55, %v180_v57 }
 0x220   :  { %v182_v59 = vmul.f32 0.5, %v181_v58 }
 0x222   :  { %v183_v60 = vsub.f32 1.5, %v182_v59 }
 0x223   :  { %v279_v61 = vpop.eup %278 }
 0x224   :  { %v184_v62 = vmul.f32 %v277_v55, %v183_v60  ;;  %v190_v63 = vmul.f32 %v279_v61, %v178_v56  ;;  %vm196_vm6 = vweird.f32 %v279_v61 }
 0x225   :  { %vm197_vm8 = vmor %vm195_vm7, %vm196_vm6 }
 0x226   :  { %v188_v1 = vsel %vm187_vm5, %v277_v55, %v184_v62  ;;  %v191_v2 = vmul.f32 %v279_v61, %v190_v63 }
 0x227   :  { %v199_v3 = vmul.f32 %v188_v1, %v165_v42 }
 0x228   :  { %v192_v5 = vmul.f32 0.5, %v191_v2 }
 0x229   :  { %v205_v6 = vmul.f32 %v272_v0, %v199_v3 }
 0x22a   :  { %v193_v7 = vsub.f32 1.5, %v192_v5 }
 0x22b   :  { %v211_v8 = vadd.f32 %v273_v4, %v205_v6 }
 0x22c   :  { %v194_v9 = vmul.f32 %v279_v61, %v193_v7 }
 0x22d   :  { %213 = vst.msk [vmem:[#allocation3] sm:$0xff] %vm32_vm0, %v211_v8 }
 0x22e   :  { %v198_v10 = vsel %vm197_vm8, %v279_v61, %v194_v9 }
 0x22f   :  { %v200_v11 = vmul.f32 %v198_v10, %v166_v47 }
 0x231   :  { %v206_v12 = vmul.f32 %v272_v0, %v200_v11 }
 0x233   :  { %v212_v13 = vadd.f32 %v273_v4, %v206_v12 }
 0x235   :  { %214 = vst.msk [vmem:[#allocation3 + $0x8] sm:$0xff] %vm32_vm0, %v212_v13 }
 0x236   :  { %227 = dma.vmem_to_hbm [thread:$0]  %s220_s20, 256, %s222_s23, [#allocation4], %s309_s6, %s309_s6, %s310_s24  }
 0x237   :  { %304 = dma.done.wait [#allocation4], 256  }
 0x238   :  { %305 = vsyncadd [#allocation4], 4294967040 }
 0x239   :  { %232 = vsyncpa [#allocation4], 1 }

</bundles_post_ra>
